<compile_context>
chip_gen: v5e
topology: v5e:2x2
jax: 0.10.0
libtpu: 0.0.40
codegen_flags: <defaults>
</compile_context>

<pallas_src>
import functools

import jax
import jax.numpy as jnp
from jax.experimental import pallas as pl
from jax.experimental.pallas import tpu as pltpu

LEAK = 0.2        # LeakyReLU negative slope
K = 7             # conv kernel size (single-rate convs)
PAD = 3           # ReflectionPad1d(3)
CMAX = 16         # packed channel width (== hidden_channels)
C_OUT = 4         # out_channels
HIDDEN = 16       # hidden_channels
PHK = 5           # polyphase taps: extended phase offsets -2..+2
PHW = 2 * CMAX    # phase row width: [even half | odd half]

# indices into the packed single-rate conv stacks
IDX_LP, IDX_HP1, IDX_HPD, IDX_HP2 = range(4)
# indices into the packed polyphase (FineTune) conv stacks
IDX_FT1, IDX_FTD, IDX_FT2 = range(3)


# ----------------------------------------------------------------------------
# Fused Pallas kernel (one batch *block* per grid step, batch folded into rows)
# ----------------------------------------------------------------------------
def _fused_kernel(sig_ref, wlh_ref, blh_ref, wft_ref, bft_ref,
                  linw_ref, linb_ref, lp_ref, hp_ref, fbp_ref,
                  pad_ref, php_ref, *, t, bpb):
    rs = pad_ref.shape[0] // bpb     # single-rate pad-region rows per element
    rp = php_ref.shape[0] // bpb     # polyphase pad-region rows per element

    # Lanes >= the real channel count only ever meet zero weight rows, but they
    # must be finite (0 * NaN = NaN).  Zero them once, not every grid step.
    @pl.when(pl.program_id(0) == 0)
    def _init():
        pad_ref[...] = jnp.zeros_like(pad_ref)
        php_ref[...] = jnp.zeros_like(php_ref)

    def leaky(v):
        return jnp.where(v >= 0, v, LEAK * v)

    def conv_lh(y, idx, pre_act=None, post_act=None):
        """Single-rate reflection-padded 7-tap conv as ONE im2col matmul.

        y: [bpb*t, Cin] rows stacked batch-major.  Returns [bpb*t, CMAX];
        packed output columns beyond the real ones are exactly 0.
        """
        cin = y.shape[-1]
        if pre_act == "leaky":
            y = leaky(y)
        for b in range(bpb):
            r0 = b * rs
            pad_ref[r0 + PAD:r0 + PAD + t, 0:cin] = y[b * t:(b + 1) * t, :]
            # ReflectionPad1d(3): left pad = y[3],y[2],y[1]; right = y[t-2..t-4]
            pad_ref[r0 + 0:r0 + 1, :] = pad_ref[r0 + 6:r0 + 7, :]
            pad_ref[r0 + 1:r0 + 2, :] = pad_ref[r0 + 5:r0 + 6, :]
            pad_ref[r0 + 2:r0 + 3, :] = pad_ref[r0 + 4:r0 + 5, :]
            pad_ref[r0 + t + 3:r0 + t + 4, :] = pad_ref[r0 + t + 1:r0 + t + 2, :]
            pad_ref[r0 + t + 4:r0 + t + 5, :] = pad_ref[r0 + t:r0 + t + 1, :]
            pad_ref[r0 + t + 5:r0 + t + 6, :] = pad_ref[r0 + t - 1:r0 + t, :]
        # im2col operand assembled in vregs (no VMEM round trip through a
        # col scratch): col[s, k*CMAX + i] = ypad[s + k, i]
        cols = []
        for b in range(bpb):
            r0 = b * rs
            cols.append(jnp.concatenate(
                [pad_ref[r0 + k:r0 + k + t, :] for k in range(K)], axis=-1))
        col = cols[0] if bpb == 1 else jnp.concatenate(cols, axis=0)
        out = jnp.dot(col, wlh_ref[idx], preferred_element_type=jnp.float32)
        out = out + blh_ref[idx:idx + 1, :]
        if post_act == "tanh":
            out = jnp.tanh(out)
        return out

    def conv_ft(ph, idx, pre_act=None, post_act=None):
        """FineTune conv in polyphase form: lanes [0:CMAX) = even output
        samples, lanes [CMAX:2*CMAX) = odd output samples.  One im2col matmul
        [bpb*t, 160] @ [160, 32]; no interleave/scatter anywhere.
        """
        if pre_act == "leaky":
            ph = leaky(ph)
        for b in range(bpb):
            r0 = b * rp
            # interior: row (2 + s) holds phase sample s
            php_ref[r0 + 2:r0 + 2 + t, :] = ph[b * t:(b + 1) * t, :]
            # ReflectionPad1d(3) of the interleaved length-2t signal, per phase:
            #   e[-1] = e[1], o[-1] = o[0], o[-2] = o[1],
            #   e[t]  = e[t-1], o[t] = o[t-2], e[t+1] = e[t-2]
            # (e[-2] / o[t+1] are never read -> any finite filler is fine.)
            php_ref[r0 + 1:r0 + 2, 0:CMAX] = php_ref[r0 + 3:r0 + 4, 0:CMAX]
            php_ref[r0 + 1:r0 + 2, CMAX:PHW] = php_ref[r0 + 2:r0 + 3, CMAX:PHW]
            php_ref[r0 + 0:r0 + 1, :] = php_ref[r0 + 3:r0 + 4, :]
            php_ref[r0 + t + 2:r0 + t + 3, 0:CMAX] = \
                php_ref[r0 + t + 1:r0 + t + 2, 0:CMAX]
            php_ref[r0 + t + 2:r0 + t + 3, CMAX:PHW] = \
                php_ref[r0 + t:r0 + t + 1, CMAX:PHW]
            php_ref[r0 + t + 3:r0 + t + 4, :] = php_ref[r0 + t:r0 + t + 1, :]
        cols = []
        for b in range(bpb):
            r0 = b * rp
            cols.append(jnp.concatenate(
                [php_ref[r0 + d:r0 + d + t, :] for d in range(PHK)], axis=-1))
        col = cols[0] if bpb == 1 else jnp.concatenate(cols, axis=0)
        out = jnp.dot(col, wft_ref[idx], preferred_element_type=jnp.float32)
        out = out + bft_ref[idx:idx + 1, :]
        if post_act == "tanh":
            out = jnp.tanh(out)
        return out

    x = sig_ref[...]                                     # [bpb*t, 1]

    # ---- LowPassModule: signal + ConditionalBias(signal) -> leaky -> WNConv1d
    y0 = x + (x * linw_ref[...] + linb_ref[...])         # [bpb*t, 4]
    lp_full = conv_lh(y0, IDX_LP, pre_act="leaky")       # [bpb*t, 16]
    lp_ref[...] = lp_full[:, 0:C_OUT]

    # ---- HighPassModule (parallel=True: raw signal input) ----
    h = conv_lh(x, IDX_HP1, post_act="tanh")
    h = conv_lh(h, IDX_HPD, pre_act="leaky")
    hp_full = conv_lh(h, IDX_HP2, pre_act="leaky")
    hp_ref[...] = hp_full[:, 0:C_OUT]

    # ---- SpCombModule (concat + PixelShuffle1D(2)) is folded into the packed
    # output columns of the LP / HP2 weights: cols 4:8 hold the even-phase
    # full-band channels, cols 8:12 the odd-phase ones.  No shuffle matmuls,
    # no scatter -- the pixel shuffle became a column permutation done once in
    # prepare_params.
    g = lp_full + hp_full
    fe = g[:, C_OUT:2 * C_OUT]                           # full[2s,   :]
    fo = g[:, 2 * C_OUT:3 * C_OUT]                       # full[2s+1, :]
    zpad = jnp.zeros((bpb * t, CMAX - C_OUT), jnp.float32)
    ph = jnp.concatenate([fe, zpad, fo, zpad], axis=-1)  # [bpb*t, 32]

    # ---- FineTuneModule: [pad,conv,tanh] -> [leaky,pad,conv] -> [leaky,pad,conv]
    # run entirely in polyphase form.
    ph = conv_ft(ph, IDX_FT1, post_act="tanh")
    ph = conv_ft(ph, IDX_FTD, pre_act="leaky")
    ph = conv_ft(ph, IDX_FT2, pre_act="leaky")
    fbp_ref[...] = ph[:, 0:2 * C_OUT]                    # [even c0..3 | odd c0..3]


# ----------------------------------------------------------------------------
# Parameter packing (done once) and the wrapper around pallas_call
# ----------------------------------------------------------------------------
def prepare_params(raw):
    """Pack weights once (f32, zero-padded): fold the SpComb pixel shuffle into
    the LP / HP2 output columns, and the FineTune convs into polyphase
    (even/odd output sample) weight matrices.
    TODO(synk): fold the weight-norm scale g/||v|| here for trained checkpoints.
    """
    def pack_lh(w, b, col_map=None):
        kk, cin, cout = w.shape
        w = w.astype(jnp.float32)
        b = b.astype(jnp.float32)
        if col_map is None:
            col_map = [(o, o) for o in range(cout)]
        wp = jnp.zeros((K * CMAX, CMAX), jnp.float32)
        bp = jnp.zeros((CMAX,), jnp.float32)
        for src, dst in col_map:
            colw = jnp.pad(w[:, :, src], ((0, 0), (0, CMAX - cin)))  # [K, CMAX]
            wp = wp.at[:, dst].set(colw.reshape(K * CMAX))           # row k*CMAX+i
            bp = bp.at[dst].set(b[src])
        return wp, bp

    def pack_ft(w, b, oc_e, oc_o):
        # Polyphase split of a 7-tap reflect-padded conv on the interleaved
        # signal.  Operand column (d*PHW + half*CMAX + i) is phase sample
        # (s + d - 2), half 0 = even, half 1 = odd, channel i.
        kk, cin, cout = w.shape
        w = w.astype(jnp.float32)
        b = b.astype(jnp.float32)
        wp = jnp.zeros((PHK * PHW, PHW), jnp.float32)
        bp = jnp.zeros((PHW,), jnp.float32)
        even_from_e = [(-1, 1), (0, 3), (1, 5)]            # (phase offset, tap k)
        even_from_o = [(-2, 0), (-1, 2), (0, 4), (1, 6)]
        odd_from_e = [(-1, 0), (0, 2), (1, 4), (2, 6)]
        odd_from_o = [(-1, 1), (0, 3), (1, 5)]

        def put(wp, taps, half, oc):
            for delta, k in taps:
                r0 = (delta + 2) * PHW + half * CMAX
                wp = wp.at[r0:r0 + cin, oc:oc + cout].set(w[k])
            return wp

        wp = put(wp, even_from_e, 0, oc_e)
        wp = put(wp, even_from_o, 1, oc_e)
        wp = put(wp, odd_from_e, 0, oc_o)
        wp = put(wp, odd_from_o, 1, oc_o)
        bp = bp.at[oc_e:oc_e + cout].set(b)
        bp = bp.at[oc_o:oc_o + cout].set(b)
        return wp, bp

    ident4 = [(o, o) for o in range(C_OUT)]
    # SpComb pixel shuffle as output-column packing:
    #   even full-band sample = [lp0, lp2, hp0, hp2] -> packed cols 4..7
    #   odd  full-band sample = [lp1, lp3, hp1, hp3] -> packed cols 8..11
    lp_map = ident4 + [(0, 4), (2, 5), (1, 8), (3, 9)]
    hp2_map = ident4 + [(0, 6), (2, 7), (1, 10), (3, 11)]

    w_lp, b_lp = pack_lh(raw["lp_w"], raw["lp_b"], lp_map)
    w_hp1, b_hp1 = pack_lh(raw["hp1_w"], raw["hp1_b"])
    w_hpd, b_hpd = pack_lh(raw["hpd_w"], raw["hpd_b"])
    w_hp2, b_hp2 = pack_lh(raw["hp2_w"], raw["hp2_b"], hp2_map)

    w_ft1, b_ft1 = pack_ft(raw["ft1_w"], raw["ft1_b"], 0, CMAX)   # hidden x 2 phases
    w_ftd, b_ftd = pack_ft(raw["ftd_w"], raw["ftd_b"], 0, CMAX)
    w_ft2, b_ft2 = pack_ft(raw["ft2_w"], raw["ft2_b"], 0, C_OUT)  # even 0:4, odd 4:8

    return {
        "W_lh": jnp.stack([w_lp, w_hp1, w_hpd, w_hp2]),   # [4, 112, 16]
        "B_lh": jnp.stack([b_lp, b_hp1, b_hpd, b_hp2]),   # [4, 16]
        "W_ft": jnp.stack([w_ft1, w_ftd, w_ft2]),         # [3, 160, 32]
        "B_ft": jnp.stack([b_ft1, b_ftd, b_ft2]),         # [3, 32]
        "lin_w": raw["lin_w"].astype(jnp.float32),                 # [1, 4]
        "lin_b": raw["lin_b"].reshape(1, -1).astype(jnp.float32),  # [1, 4]
    }


def interponet_forward(prep, signal_ntc, num_batch_blocks=1):
    """signal_ntc: [B, T, 1] f32.  Returns dict of NTC outputs.

    num_batch_blocks=1 folds the whole batch into one grid step (best on
    single-TensorCore v5e/v6e for small B); use 2 on v7x so each TC takes a
    batch block.
    """
    bsz, t, _ = signal_ntc.shape
    assert t % 8 == 0 and t >= 8, "time axis must be a multiple of 8 (>= 8)"
    assert bsz % num_batch_blocks == 0
    bpb = bsz // num_batch_blocks
    n = bpb * t
    rs = -(-(t + 2 * PAD) // 8) * 8      # 8-aligned per-element pad region rows
    rp = -(-(t + 4) // 8) * 8

    sig2d = signal_ntc.reshape(bsz * t, 1)
    kernel = functools.partial(_fused_kernel, t=t, bpb=bpb)

    lp2d, hp2d, fbp2d = pl.pallas_call(
        kernel,
        out_shape=(
            jax.ShapeDtypeStruct((bsz * t, C_OUT), jnp.float32),
            jax.ShapeDtypeStruct((bsz * t, C_OUT), jnp.float32),
            jax.ShapeDtypeStruct((bsz * t, 2 * C_OUT), jnp.float32),
        ),
        grid=(num_batch_blocks,),
        in_specs=[
            pl.BlockSpec((n, 1), lambda g: (g, 0)),                  # signal rows
            pl.BlockSpec((4, K * CMAX, CMAX), lambda g: (0, 0, 0)),  # W_lh
            pl.BlockSpec((4, CMAX), lambda g: (0, 0)),               # B_lh
            pl.BlockSpec((3, PHK * PHW, PHW), lambda g: (0, 0, 0)),  # W_ft
            pl.BlockSpec((3, PHW), lambda g: (0, 0)),                # B_ft
            pl.BlockSpec((1, C_OUT), lambda g: (0, 0)),              # lin_w
            pl.BlockSpec((1, C_OUT), lambda g: (0, 0)),              # lin_b
        ],
        out_specs=(
            pl.BlockSpec((n, C_OUT), lambda g: (g, 0)),
            pl.BlockSpec((n, C_OUT), lambda g: (g, 0)),
            pl.BlockSpec((n, 2 * C_OUT), lambda g: (g, 0)),
        ),
        scratch_shapes=[
            pltpu.VMEM((bpb * rs, CMAX), jnp.float32),   # single-rate reflect pad
            pltpu.VMEM((bpb * rp, PHW), jnp.float32),    # polyphase reflect pad
        ],
        compiler_params=pltpu.CompilerParams(
            dimension_semantics=("parallel",)),
    )(sig2d, prep["W_lh"], prep["B_lh"], prep["W_ft"], prep["B_ft"],
      prep["lin_w"], prep["lin_b"])

    lp = lp2d.reshape(bsz, t, C_OUT)
    hp = hp2d.reshape(bsz, t, C_OUT)
    # phase-packed rows -> interleaved time axis: a free row-major view in HBM.
    fb = fbp2d.reshape(bsz, t, 2, C_OUT).reshape(bsz, 2 * t, C_OUT)
    return {"full_band": fb, "low_pass": lp, "high_pass": [hp]}


interponet_forward_jit = jax.jit(
    interponet_forward, static_argnames=("num_batch_blocks",))


# ----------------------------------------------------------------------------
# Deterministic synthetic parameters
# ----------------------------------------------------------------------------
def init_params(key, c_out=4, hidden=16):
    ks = list(jax.random.split(key, 16))

    def w(k, shape, scale=0.1):
        return (scale * jax.random.normal(k, shape)).astype(jnp.float32)

    return {
        # LowPassModule
        "lin_w": w(ks[0], (1, c_out)),            # nn.Linear(1, out_channels)
        "lin_b": w(ks[1], (c_out,)),
        "lp_w": w(ks[2], (K, c_out, c_out)),      # WNConv1d(out, out, 7)
        "lp_b": w(ks[3], (c_out,)),
        # HighPassModule (in=1, hidden, out), depth=1, residual_layers=0
        "hp1_w": w(ks[4], (K, 1, hidden)), "hp1_b": w(ks[5], (hidden,)),
        "hpd_w": w(ks[6], (K, hidden, hidden)), "hpd_b": w(ks[7], (hidden,)),
        "hp2_w": w(ks[8], (K, hidden, c_out)), "hp2_b": w(ks[9], (c_out,)),
        # FineTuneModule (in=out_channels, hidden, out=out_channels), depth=1
        "ft1_w": w(ks[10], (K, c_out, hidden)), "ft1_b": w(ks[11], (hidden,)),
        "ftd_w": w(ks[12], (K, hidden, hidden)), "ftd_b": w(ks[13], (hidden,)),
        "ft2_w": w(ks[14], (K, hidden, c_out)), "ft2_b": w(ks[15], (c_out,)),
    }


# ----------------------------------------------------------------------------
# Pure-JAX reference of the full forward (sanity check only)
# ----------------------------------------------------------------------------
def _leaky(x):
    return jnp.where(x >= 0, x, LEAK * x)


def conv1d_refl_ref(x, w, b, pre_act=None, post_act=None):
    kk = w.shape[0]
    pad = (kk - 1) // 2
    if pre_act == "leaky":
        x = _leaky(x)
    xpad = jnp.pad(x, ((0, 0), (pad, pad), (0, 0)), mode="reflect")
    t = x.shape[1]
    taps = jnp.stack([xpad[:, k:k + t] for k in range(kk)], axis=2)  # [B,T,K,Cin]
    out = jnp.einsum("btki,kio->bto", taps, w) + b.reshape(1, 1, -1)
    if post_act == "tanh":
        out = jnp.tanh(out)
    return out


def pixel_shuffle_1d_ntc(x, r):
    bsz, t, c = x.shape
    x = x.reshape(bsz, t, c // r, r)
    x = jnp.transpose(x, (0, 1, 3, 2))
    return x.reshape(bsz, t * r, c // r)


def interponet_forward_ref(raw, signal_ntc):
    p = raw
    bias = signal_ntc * p["lin_w"] + p["lin_b"]        # [B,T,1]*[1,4]+[4] -> [B,T,4]
    y = signal_ntc + bias
    low = conv1d_refl_ref(y, p["lp_w"], p["lp_b"], pre_act="leaky")
    h = conv1d_refl_ref(signal_ntc, p["hp1_w"], p["hp1_b"], post_act="tanh")
    h = conv1d_refl_ref(h, p["hpd_w"], p["hpd_b"], pre_act="leaky")
    high = conv1d_refl_ref(h, p["hp2_w"], p["hp2_b"], pre_act="leaky")
    full = pixel_shuffle_1d_ntc(jnp.concatenate([low, high], axis=-1), 2)
    f = conv1d_refl_ref(full, p["ft1_w"], p["ft1_b"], post_act="tanh")
    f = conv1d_refl_ref(f, p["ftd_w"], p["ftd_b"], pre_act="leaky")
    f = conv1d_refl_ref(f, p["ft2_w"], p["ft2_b"], pre_act="leaky")
    return {"full_band": f, "low_pass": low, "high_pass": [high]}


if __name__ == "__main__":
    bsz, c_in, t = 2, 1, 32                     # PyTorch signal: [B, 1, T] (NCT)
    key = jax.random.PRNGKey(0)
    k_sig, k_par = jax.random.split(key)

    signal_nct = jax.random.normal(k_sig, (bsz, c_in, t), dtype=jnp.float32)
    signal_ntc = jnp.transpose(signal_nct, (0, 2, 1))          # [B, T, 1]

    raw = init_params(k_par, c_out=C_OUT, hidden=HIDDEN)
    prep = prepare_params(raw)

    out = interponet_forward_jit(prep, signal_ntc)
    jax.block_until_ready(out["full_band"])

    # shape checks (NTC layout)
    assert out["low_pass"].shape == (bsz, t, C_OUT)
    assert out["high_pass"][0].shape == (bsz, t, C_OUT)
    assert out["full_band"].shape == (bsz, 2 * t, C_OUT)

    # end-to-end numeric check of the fused kernel against a pure-JAX/XLA
    # reference; tolerance covers MXU default-precision f32 matmul differences.
    ref = interponet_forward_ref(raw, signal_ntc)
    for got, want in [
        (out["low_pass"], ref["low_pass"]),
        (out["high_pass"][0], ref["high_pass"][0]),
        (out["full_band"], ref["full_band"]),
    ]:
        assert jnp.allclose(got, want, atol=1e-2, rtol=1e-2), \
            float(jnp.max(jnp.abs(got - want)))

    print("KERNEL_OK")
</pallas_src>

<mosaic_0001>
module attributes {stable_mosaic.version = 11 : i64} {
  func.func @_fused_kernel(%arg0: i32, %arg1: memref<64x1xf32, #tpu.memory_space<vmem>>, %arg2: memref<4x112x16xf32, #tpu.memory_space<vmem>>, %arg3: memref<4x16xf32, #tpu.memory_space<vmem>>, %arg4: memref<3x160x32xf32, #tpu.memory_space<vmem>>, %arg5: memref<3x32xf32, #tpu.memory_space<vmem>>, %arg6: memref<1x4xf32, #tpu.memory_space<vmem>>, %arg7: memref<1x4xf32, #tpu.memory_space<vmem>>, %arg8: memref<64x4xf32, #tpu.memory_space<vmem>>, %arg9: memref<64x4xf32, #tpu.memory_space<vmem>>, %arg10: memref<64x8xf32, #tpu.memory_space<vmem>>, %arg11: memref<80x16xf32, #tpu.memory_space<vmem>>, %arg12: memref<80x32xf32, #tpu.memory_space<vmem>>) attributes {dimension_semantics = [#tpu.dimension_semantics<parallel>], iteration_bounds = array<i64: 1>, scalar_prefetch = 0 : i64, scratch_operands = 2 : i64, tpu.core_type = #tpu.core_type<tc>, window_params = [{transform_indices = @transform_0, window_bounds = array<i64: 64, 1>}, {pipeline_mode = #tpu.pipeline_mode<synchronous>, transform_indices = @transform_1, window_bounds = array<i64: 4, 112, 16>}, {pipeline_mode = #tpu.pipeline_mode<synchronous>, transform_indices = @transform_2, window_bounds = array<i64: 4, 16>}, {pipeline_mode = #tpu.pipeline_mode<synchronous>, transform_indices = @transform_3, window_bounds = array<i64: 3, 160, 32>}, {pipeline_mode = #tpu.pipeline_mode<synchronous>, transform_indices = @transform_4, window_bounds = array<i64: 3, 32>}, {pipeline_mode = #tpu.pipeline_mode<synchronous>, transform_indices = @transform_5, window_bounds = array<i64: 1, 4>}, {pipeline_mode = #tpu.pipeline_mode<synchronous>, transform_indices = @transform_6, window_bounds = array<i64: 1, 4>}, {transform_indices = @transform_7, window_bounds = array<i64: 64, 4>}, {transform_indices = @transform_8, window_bounds = array<i64: 64, 4>}, {transform_indices = @transform_9, window_bounds = array<i64: 64, 8>}]} {
    %c0_i32 = arith.constant 0 : i32
    %0 = arith.cmpi eq, %arg0, %c0_i32 : i32
    %1 = arith.extui %0 : i1 to i32
    %c0_i32_0 = arith.constant 0 : i32
    %2 = arith.cmpi ne, %1, %c0_i32_0 : i32
    scf.if %2 {
      %cst_572 = arith.constant 0.000000e+00 : f32
      %396 = vector.broadcast %cst_572 : f32 to vector<80x16xf32>
      %c0_573 = arith.constant 0 : index
      %c0_574 = arith.constant 0 : index
      %397 = vector.load %arg11[%c0_573, %c0_574] : memref<80x16xf32, #tpu.memory_space<vmem>>, vector<80x16xf32>
      tpu.vector_store %arg11[%c0_573, %c0_574], %396 {strides = array<i32>} : memref<80x16xf32, #tpu.memory_space<vmem>>, vector<80x16xf32>,
      %cst_575 = arith.constant 0.000000e+00 : f32
      %398 = vector.broadcast %cst_575 : f32 to vector<80x32xf32>
      %c0_576 = arith.constant 0 : index
      %c0_577 = arith.constant 0 : index
      %399 = vector.load %arg12[%c0_576, %c0_577] : memref<80x32xf32, #tpu.memory_space<vmem>>, vector<80x32xf32>
      tpu.vector_store %arg12[%c0_576, %c0_577], %398 {strides = array<i32>} : memref<80x32xf32, #tpu.memory_space<vmem>>, vector<80x32xf32>,
    } else {
    }
    %c0 = arith.constant 0 : index
    %c0_1 = arith.constant 0 : index
    %3 = vector.load %arg1[%c0, %c0_1] : memref<64x1xf32, #tpu.memory_space<vmem>>, vector<64x1xf32>
    %c0_2 = arith.constant 0 : index
    %c0_3 = arith.constant 0 : index
    %4 = vector.load %arg6[%c0_2, %c0_3] : memref<1x4xf32, #tpu.memory_space<vmem>>, vector<1x4xf32>
    %5 = vector.broadcast %3 : vector<64x1xf32> to vector<64x4xf32>
    %6 = vector.broadcast %4 : vector<1x4xf32> to vector<64x4xf32>
    %7 = arith.mulf %5, %6 : vector<64x4xf32>
    %c0_4 = arith.constant 0 : index
    %c0_5 = arith.constant 0 : index
    %8 = vector.load %arg7[%c0_4, %c0_5] : memref<1x4xf32, #tpu.memory_space<vmem>>, vector<1x4xf32>
    %9 = vector.broadcast %8 : vector<1x4xf32> to vector<64x4xf32>
    %10 = arith.addf %7, %9 : vector<64x4xf32>
    %11 = vector.broadcast %3 : vector<64x1xf32> to vector<64x4xf32>
    %12 = arith.addf %11, %10 : vector<64x4xf32>
    %cst = arith.constant 0.000000e+00 : f32
    %13 = vector.broadcast %cst : f32 to vector<64x4xf32>
    %14 = arith.cmpf oge, %12, %13 : vector<64x4xf32>
    %cst_6 = arith.constant 2.000000e-01 : f32
    %15 = vector.broadcast %cst_6 : f32 to vector<64x4xf32>
    %16 = arith.mulf %15, %12 : vector<64x4xf32>
    %17 = arith.select %14, %12, %16 : vector<64x4xi1>, vector<64x4xf32>
    %18 = vector.extract_strided_slice %17 {offsets = [0, 0], sizes = [32, 4], strides = [1, 1]} : vector<64x4xf32> to vector<32x4xf32>
    %c3 = arith.constant 3 : index
    %c0_7 = arith.constant 0 : index
    %19 = vector.load %arg11[%c3, %c0_7] : memref<80x16xf32, #tpu.memory_space<vmem>>, vector<32x4xf32>
    tpu.vector_store %arg11[%c3, %c0_7], %18 {strides = array<i32>} : memref<80x16xf32, #tpu.memory_space<vmem>>, vector<32x4xf32>,
    %c6 = arith.constant 6 : index
    %c0_8 = arith.constant 0 : index
    %20 = vector.load %arg11[%c6, %c0_8] : memref<80x16xf32, #tpu.memory_space<vmem>>, vector<1x16xf32>
    %c0_9 = arith.constant 0 : index
    %c0_10 = arith.constant 0 : index
    %21 = vector.load %arg11[%c0_9, %c0_10] : memref<80x16xf32, #tpu.memory_space<vmem>>, vector<1x16xf32>
    tpu.vector_store %arg11[%c0_9, %c0_10], %20 {strides = array<i32>} : memref<80x16xf32, #tpu.memory_space<vmem>>, vector<1x16xf32>,
    %c5 = arith.constant 5 : index
    %c0_11 = arith.constant 0 : index
    %22 = vector.load %arg11[%c5, %c0_11] : memref<80x16xf32, #tpu.memory_space<vmem>>, vector<1x16xf32>
    %c1 = arith.constant 1 : index
    %c0_12 = arith.constant 0 : index
    %23 = vector.load %arg11[%c1, %c0_12] : memref<80x16xf32, #tpu.memory_space<vmem>>, vector<1x16xf32>
    tpu.vector_store %arg11[%c1, %c0_12], %22 {strides = array<i32>} : memref<80x16xf32, #tpu.memory_space<vmem>>, vector<1x16xf32>,
    %c4 = arith.constant 4 : index
    %c0_13 = arith.constant 0 : index
    %24 = vector.load %arg11[%c4, %c0_13] : memref<80x16xf32, #tpu.memory_space<vmem>>, vector<1x16xf32>
    %c2 = arith.constant 2 : index
    %c0_14 = arith.constant 0 : index
    %25 = vector.load %arg11[%c2, %c0_14] : memref<80x16xf32, #tpu.memory_space<vmem>>, vector<1x16xf32>
    tpu.vector_store %arg11[%c2, %c0_14], %24 {strides = array<i32>} : memref<80x16xf32, #tpu.memory_space<vmem>>, vector<1x16xf32>,
    %c33 = arith.constant 33 : index
    %c0_15 = arith.constant 0 : index
    %26 = vector.load %arg11[%c33, %c0_15] : memref<80x16xf32, #tpu.memory_space<vmem>>, vector<1x16xf32>
    %c35 = arith.constant 35 : index
    %c0_16 = arith.constant 0 : index
    %27 = vector.load %arg11[%c35, %c0_16] : memref<80x16xf32, #tpu.memory_space<vmem>>, vector<1x16xf32>
    tpu.vector_store %arg11[%c35, %c0_16], %26 {strides = array<i32>} : memref<80x16xf32, #tpu.memory_space<vmem>>, vector<1x16xf32>,
    %c32 = arith.constant 32 : index
    %c0_17 = arith.constant 0 : index
    %28 = vector.load %arg11[%c32, %c0_17] : memref<80x16xf32, #tpu.memory_space<vmem>>, vector<1x16xf32>
    %c36 = arith.constant 36 : index
    %c0_18 = arith.constant 0 : index
    %29 = vector.load %arg11[%c36, %c0_18] : memref<80x16xf32, #tpu.memory_space<vmem>>, vector<1x16xf32>
    tpu.vector_store %arg11[%c36, %c0_18], %28 {strides = array<i32>} : memref<80x16xf32, #tpu.memory_space<vmem>>, vector<1x16xf32>,
    %c31 = arith.constant 31 : index
    %c0_19 = arith.constant 0 : index
    %30 = vector.load %arg11[%c31, %c0_19] : memref<80x16xf32, #tpu.memory_space<vmem>>, vector<1x16xf32>
    %c37 = arith.constant 37 : index
    %c0_20 = arith.constant 0 : index
    %31 = vector.load %arg11[%c37, %c0_20] : memref<80x16xf32, #tpu.memory_space<vmem>>, vector<1x16xf32>
    tpu.vector_store %arg11[%c37, %c0_20], %30 {strides = array<i32>} : memref<80x16xf32, #tpu.memory_space<vmem>>, vector<1x16xf32>,
    %32 = vector.extract_strided_slice %17 {offsets = [32, 0], sizes = [32, 4], strides = [1, 1]} : vector<64x4xf32> to vector<32x4xf32>
    %c43 = arith.constant 43 : index
    %c0_21 = arith.constant 0 : index
    %33 = vector.load %arg11[%c43, %c0_21] : memref<80x16xf32, #tpu.memory_space<vmem>>, vector<32x4xf32>
    tpu.vector_store %arg11[%c43, %c0_21], %32 {strides = array<i32>} : memref<80x16xf32, #tpu.memory_space<vmem>>, vector<32x4xf32>,
    %c46 = arith.constant 46 : index
    %c0_22 = arith.constant 0 : index
    %34 = vector.load %arg11[%c46, %c0_22] : memref<80x16xf32, #tpu.memory_space<vmem>>, vector<1x16xf32>
    %c40 = arith.constant 40 : index
    %c0_23 = arith.constant 0 : index
    %35 = vector.load %arg11[%c40, %c0_23] : memref<80x16xf32, #tpu.memory_space<vmem>>, vector<1x16xf32>
    tpu.vector_store %arg11[%c40, %c0_23], %34 {strides = array<i32>} : memref<80x16xf32, #tpu.memory_space<vmem>>, vector<1x16xf32>,
    %c45 = arith.constant 45 : index
    %c0_24 = arith.constant 0 : index
    %36 = vector.load %arg11[%c45, %c0_24] : memref<80x16xf32, #tpu.memory_space<vmem>>, vector<1x16xf32>
    %c41 = arith.constant 41 : index
    %c0_25 = arith.constant 0 : index
    %37 = vector.load %arg11[%c41, %c0_25] : memref<80x16xf32, #tpu.memory_space<vmem>>, vector<1x16xf32>
    tpu.vector_store %arg11[%c41, %c0_25], %36 {strides = array<i32>} : memref<80x16xf32, #tpu.memory_space<vmem>>, vector<1x16xf32>,
    %c44 = arith.constant 44 : index
    %c0_26 = arith.constant 0 : index
    %38 = vector.load %arg11[%c44, %c0_26] : memref<80x16xf32, #tpu.memory_space<vmem>>, vector<1x16xf32>
    %c42 = arith.constant 42 : index
    %c0_27 = arith.constant 0 : index
    %39 = vector.load %arg11[%c42, %c0_27] : memref<80x16xf32, #tpu.memory_space<vmem>>, vector<1x16xf32>
    tpu.vector_store %arg11[%c42, %c0_27], %38 {strides = array<i32>} : memref<80x16xf32, #tpu.memory_space<vmem>>, vector<1x16xf32>,
    %c73 = arith.constant 73 : index
    %c0_28 = arith.constant 0 : index
    %40 = vector.load %arg11[%c73, %c0_28] : memref<80x16xf32, #tpu.memory_space<vmem>>, vector<1x16xf32>
    %c75 = arith.constant 75 : index
    %c0_29 = arith.constant 0 : index
    %41 = vector.load %arg11[%c75, %c0_29] : memref<80x16xf32, #tpu.memory_space<vmem>>, vector<1x16xf32>
    tpu.vector_store %arg11[%c75, %c0_29], %40 {strides = array<i32>} : memref<80x16xf32, #tpu.memory_space<vmem>>, vector<1x16xf32>,
    %c72 = arith.constant 72 : index
    %c0_30 = arith.constant 0 : index
    %42 = vector.load %arg11[%c72, %c0_30] : memref<80x16xf32, #tpu.memory_space<vmem>>, vector<1x16xf32>
    %c76 = arith.constant 76 : index
    %c0_31 = arith.constant 0 : index
    %43 = vector.load %arg11[%c76, %c0_31] : memref<80x16xf32, #tpu.memory_space<vmem>>, vector<1x16xf32>
    tpu.vector_store %arg11[%c76, %c0_31], %42 {strides = array<i32>} : memref<80x16xf32, #tpu.memory_space<vmem>>, vector<1x16xf32>,
    %c71 = arith.constant 71 : index
    %c0_32 = arith.constant 0 : index
    %44 = vector.load %arg11[%c71, %c0_32] : memref<80x16xf32, #tpu.memory_space<vmem>>, vector<1x16xf32>
    %c77 = arith.constant 77 : index
    %c0_33 = arith.constant 0 : index
    %45 = vector.load %arg11[%c77, %c0_33] : memref<80x16xf32, #tpu.memory_space<vmem>>, vector<1x16xf32>
    tpu.vector_store %arg11[%c77, %c0_33], %44 {strides = array<i32>} : memref<80x16xf32, #tpu.memory_space<vmem>>, vector<1x16xf32>,
    %c0_34 = arith.constant 0 : index
    %c0_35 = arith.constant 0 : index
    %46 = vector.load %arg11[%c0_34, %c0_35] : memref<80x16xf32, #tpu.memory_space<vmem>>, vector<32x16xf32>
    %c1_36 = arith.constant 1 : index
    %c0_37 = arith.constant 0 : index
    %47 = vector.load %arg11[%c1_36, %c0_37] : memref<80x16xf32, #tpu.memory_space<vmem>>, vector<32x16xf32>
    %c2_38 = arith.constant 2 : index
    %c0_39 = arith.constant 0 : index
    %48 = vector.load %arg11[%c2_38, %c0_39] : memref<80x16xf32, #tpu.memory_space<vmem>>, vector<32x16xf32>
    %c3_40 = arith.constant 3 : index
    %c0_41 = arith.constant 0 : index
    %49 = vector.load %arg11[%c3_40, %c0_41] : memref<80x16xf32, #tpu.memory_space<vmem>>, vector<32x16xf32>
    %c4_42 = arith.constant 4 : index
    %c0_43 = arith.constant 0 : index
    %50 = vector.load %arg11[%c4_42, %c0_43] : memref<80x16xf32, #tpu.memory_space<vmem>>, vector<32x16xf32>
    %c5_44 = arith.constant 5 : index
    %c0_45 = arith.constant 0 : index
    %51 = vector.load %arg11[%c5_44, %c0_45] : memref<80x16xf32, #tpu.memory_space<vmem>>, vector<32x16xf32>
    %c6_46 = arith.constant 6 : index
    %c0_47 = arith.constant 0 : index
    %52 = vector.load %arg11[%c6_46, %c0_47] : memref<80x16xf32, #tpu.memory_space<vmem>>, vector<32x16xf32>
    %53 = tpu.concatenate %46, %47, %48, %49, %50, %51, %52 in 1 : vector<32x16xf32>, vector<32x16xf32>, vector<32x16xf32>, vector<32x16xf32>, vector<32x16xf32>, vector<32x16xf32>, vector<32x16xf32> -> vector<32x112xf32>
    %c40_48 = arith.constant 40 : index
    %c0_49 = arith.constant 0 : index
    %54 = vector.load %arg11[%c40_48, %c0_49] : memref<80x16xf32, #tpu.memory_space<vmem>>, vector<32x16xf32>
    %c41_50 = arith.constant 41 : index
    %c0_51 = arith.constant 0 : index
    %55 = vector.load %arg11[%c41_50, %c0_51] : memref<80x16xf32, #tpu.memory_space<vmem>>, vector<32x16xf32>
    %c42_52 = arith.constant 42 : index
    %c0_53 = arith.constant 0 : index
    %56 = vector.load %arg11[%c42_52, %c0_53] : memref<80x16xf32, #tpu.memory_space<vmem>>, vector<32x16xf32>
    %c43_54 = arith.constant 43 : index
    %c0_55 = arith.constant 0 : index
    %57 = vector.load %arg11[%c43_54, %c0_55] : memref<80x16xf32, #tpu.memory_space<vmem>>, vector<32x16xf32>
    %c44_56 = arith.constant 44 : index
    %c0_57 = arith.constant 0 : index
    %58 = vector.load %arg11[%c44_56, %c0_57] : memref<80x16xf32, #tpu.memory_space<vmem>>, vector<32x16xf32>
    %c45_58 = arith.constant 45 : index
    %c0_59 = arith.constant 0 : index
    %59 = vector.load %arg11[%c45_58, %c0_59] : memref<80x16xf32, #tpu.memory_space<vmem>>, vector<32x16xf32>
    %c46_60 = arith.constant 46 : index
    %c0_61 = arith.constant 0 : index
    %60 = vector.load %arg11[%c46_60, %c0_61] : memref<80x16xf32, #tpu.memory_space<vmem>>, vector<32x16xf32>
    %61 = tpu.concatenate %54, %55, %56, %57, %58, %59, %60 in 1 : vector<32x16xf32>, vector<32x16xf32>, vector<32x16xf32>, vector<32x16xf32>, vector<32x16xf32>, vector<32x16xf32>, vector<32x16xf32> -> vector<32x112xf32>
    %62 = tpu.concatenate %53, %61 in 0 : vector<32x112xf32>, vector<32x112xf32> -> vector<64x112xf32>
    %c0_62 = arith.constant 0 : index
    %c0_63 = arith.constant 0 : index
    %c0_64 = arith.constant 0 : index
    %63 = vector.load %arg2[%c0_62, %c0_63, %c0_64] : memref<4x112x16xf32, #tpu.memory_space<vmem>>, vector<1x112x16xf32>
    %64 = vector.shape_cast %63 : vector<1x112x16xf32> to vector<112x16xf32>
    %cst_65 = arith.constant dense<0.000000e+00> : vector<64x16xf32>
    %65 = tpu.matmul %62, %64, %cst_65 {dimension_numbers = #tpu.dot_dimension_numbers<[1], [0], [0], [1], [0, 0, 1, 1], [], []>} : vector<64x112xf32>, vector<112x16xf32>, vector<64x16xf32> -> vector<64x16xf32>
    %c0_66 = arith.constant 0 : index
    %c0_67 = arith.constant 0 : index
    %66 = vector.load %arg3[%c0_66, %c0_67] : memref<4x16xf32, #tpu.memory_space<vmem>>, vector<1x16xf32>
    %67 = vector.broadcast %66 : vector<1x16xf32> to vector<64x16xf32>
    %68 = arith.addf %65, %67 : vector<64x16xf32>
    %69 = vector.extract_strided_slice %68 {offsets = [0, 0], sizes = [64, 4], strides = [1, 1]} : vector<64x16xf32> to vector<64x4xf32>
    %c0_68 = arith.constant 0 : index
    %c0_69 = arith.constant 0 : index
    %70 = vector.load %arg8[%c0_68, %c0_69] : memref<64x4xf32, #tpu.memory_space<vmem>>, vector<64x4xf32>
    tpu.vector_store %arg8[%c0_68, %c0_69], %69 {strides = array<i32>} : memref<64x4xf32, #tpu.memory_space<vmem>>, vector<64x4xf32>,
    %71 = vector.extract_strided_slice %3 {offsets = [0, 0], sizes = [32, 1], strides = [1, 1]} : vector<64x1xf32> to vector<32x1xf32>
    %c3_70 = arith.constant 3 : index
    %c0_71 = arith.constant 0 : index
    %72 = vector.load %arg11[%c3_70, %c0_71] : memref<80x16xf32, #tpu.memory_space<vmem>>, vector<32x1xf32>
    tpu.vector_store %arg11[%c3_70, %c0_71], %71 {strides = array<i32>} : memref<80x16xf32, #tpu.memory_space<vmem>>, vector<32x1xf32>,
    %c6_72 = arith.constant 6 : index
    %c0_73 = arith.constant 0 : index
    %73 = vector.load %arg11[%c6_72, %c0_73] : memref<80x16xf32, #tpu.memory_space<vmem>>, vector<1x16xf32>
    %c0_74 = arith.constant 0 : index
    %c0_75 = arith.constant 0 : index
    %74 = vector.load %arg11[%c0_74, %c0_75] : memref<80x16xf32, #tpu.memory_space<vmem>>, vector<1x16xf32>
    tpu.vector_store %arg11[%c0_74, %c0_75], %73 {strides = array<i32>} : memref<80x16xf32, #tpu.memory_space<vmem>>, vector<1x16xf32>,
    %c5_76 = arith.constant 5 : index
    %c0_77 = arith.constant 0 : index
    %75 = vector.load %arg11[%c5_76, %c0_77] : memref<80x16xf32, #tpu.memory_space<vmem>>, vector<1x16xf32>
    %c1_78 = arith.constant 1 : index
    %c0_79 = arith.constant 0 : index
    %76 = vector.load %arg11[%c1_78, %c0_79] : memref<80x16xf32, #tpu.memory_space<vmem>>, vector<1x16xf32>
    tpu.vector_store %arg11[%c1_78, %c0_79], %75 {strides = array<i32>} : memref<80x16xf32, #tpu.memory_space<vmem>>, vector<1x16xf32>,
    %c4_80 = arith.constant 4 : index
    %c0_81 = arith.constant 0 : index
    %77 = vector.load %arg11[%c4_80, %c0_81] : memref<80x16xf32, #tpu.memory_space<vmem>>, vector<1x16xf32>
    %c2_82 = arith.constant 2 : index
    %c0_83 = arith.constant 0 : index
    %78 = vector.load %arg11[%c2_82, %c0_83] : memref<80x16xf32, #tpu.memory_space<vmem>>, vector<1x16xf32>
    tpu.vector_store %arg11[%c2_82, %c0_83], %77 {strides = array<i32>} : memref<80x16xf32, #tpu.memory_space<vmem>>, vector<1x16xf32>,
    %c33_84 = arith.constant 33 : index
    %c0_85 = arith.constant 0 : index
    %79 = vector.load %arg11[%c33_84, %c0_85] : memref<80x16xf32, #tpu.memory_space<vmem>>, vector<1x16xf32>
    %c35_86 = arith.constant 35 : index
    %c0_87 = arith.constant 0 : index
    %80 = vector.load %arg11[%c35_86, %c0_87] : memref<80x16xf32, #tpu.memory_space<vmem>>, vector<1x16xf32>
    tpu.vector_store %arg11[%c35_86, %c0_87], %79 {strides = array<i32>} : memref<80x16xf32, #tpu.memory_space<vmem>>, vector<1x16xf32>,
    %c32_88 = arith.constant 32 : index
    %c0_89 = arith.constant 0 : index
    %81 = vector.load %arg11[%c32_88, %c0_89] : memref<80x16xf32, #tpu.memory_space<vmem>>, vector<1x16xf32>
    %c36_90 = arith.constant 36 : index
    %c0_91 = arith.constant 0 : index
    %82 = vector.load %arg11[%c36_90, %c0_91] : memref<80x16xf32, #tpu.memory_space<vmem>>, vector<1x16xf32>
    tpu.vector_store %arg11[%c36_90, %c0_91], %81 {strides = array<i32>} : memref<80x16xf32, #tpu.memory_space<vmem>>, vector<1x16xf32>,
    %c31_92 = arith.constant 31 : index
    %c0_93 = arith.constant 0 : index
    %83 = vector.load %arg11[%c31_92, %c0_93] : memref<80x16xf32, #tpu.memory_space<vmem>>, vector<1x16xf32>
    %c37_94 = arith.constant 37 : index
    %c0_95 = arith.constant 0 : index
    %84 = vector.load %arg11[%c37_94, %c0_95] : memref<80x16xf32, #tpu.memory_space<vmem>>, vector<1x16xf32>
    tpu.vector_store %arg11[%c37_94, %c0_95], %83 {strides = array<i32>} : memref<80x16xf32, #tpu.memory_space<vmem>>, vector<1x16xf32>,
    %85 = vector.extract_strided_slice %3 {offsets = [32, 0], sizes = [32, 1], strides = [1, 1]} : vector<64x1xf32> to vector<32x1xf32>
    %c43_96 = arith.constant 43 : index
    %c0_97 = arith.constant 0 : index
    %86 = vector.load %arg11[%c43_96, %c0_97] : memref<80x16xf32, #tpu.memory_space<vmem>>, vector<32x1xf32>
    tpu.vector_store %arg11[%c43_96, %c0_97], %85 {strides = array<i32>} : memref<80x16xf32, #tpu.memory_space<vmem>>, vector<32x1xf32>,
    %c46_98 = arith.constant 46 : index
    %c0_99 = arith.constant 0 : index
    %87 = vector.load %arg11[%c46_98, %c0_99] : memref<80x16xf32, #tpu.memory_space<vmem>>, vector<1x16xf32>
    %c40_100 = arith.constant 40 : index
    %c0_101 = arith.constant 0 : index
    %88 = vector.load %arg11[%c40_100, %c0_101] : memref<80x16xf32, #tpu.memory_space<vmem>>, vector<1x16xf32>
    tpu.vector_store %arg11[%c40_100, %c0_101], %87 {strides = array<i32>} : memref<80x16xf32, #tpu.memory_space<vmem>>, vector<1x16xf32>,
    %c45_102 = arith.constant 45 : index
    %c0_103 = arith.constant 0 : index
    %89 = vector.load %arg11[%c45_102, %c0_103] : memref<80x16xf32, #tpu.memory_space<vmem>>, vector<1x16xf32>
    %c41_104 = arith.constant 41 : index
    %c0_105 = arith.constant 0 : index
    %90 = vector.load %arg11[%c41_104, %c0_105] : memref<80x16xf32, #tpu.memory_space<vmem>>, vector<1x16xf32>
    tpu.vector_store %arg11[%c41_104, %c0_105], %89 {strides = array<i32>} : memref<80x16xf32, #tpu.memory_space<vmem>>, vector<1x16xf32>,
    %c44_106 = arith.constant 44 : index
    %c0_107 = arith.constant 0 : index
    %91 = vector.load %arg11[%c44_106, %c0_107] : memref<80x16xf32, #tpu.memory_space<vmem>>, vector<1x16xf32>
    %c42_108 = arith.constant 42 : index
    %c0_109 = arith.constant 0 : index
    %92 = vector.load %arg11[%c42_108, %c0_109] : memref<80x16xf32, #tpu.memory_space<vmem>>, vector<1x16xf32>
    tpu.vector_store %arg11[%c42_108, %c0_109], %91 {strides = array<i32>} : memref<80x16xf32, #tpu.memory_space<vmem>>, vector<1x16xf32>,
    %c73_110 = arith.constant 73 : index
    %c0_111 = arith.constant 0 : index
    %93 = vector.load %arg11[%c73_110, %c0_111] : memref<80x16xf32, #tpu.memory_space<vmem>>, vector<1x16xf32>
    %c75_112 = arith.constant 75 : index
    %c0_113 = arith.constant 0 : index
    %94 = vector.load %arg11[%c75_112, %c0_113] : memref<80x16xf32, #tpu.memory_space<vmem>>, vector<1x16xf32>
    tpu.vector_store %arg11[%c75_112, %c0_113], %93 {strides = array<i32>} : memref<80x16xf32, #tpu.memory_space<vmem>>, vector<1x16xf32>,
    %c72_114 = arith.constant 72 : index
    %c0_115 = arith.constant 0 : index
    %95 = vector.load %arg11[%c72_114, %c0_115] : memref<80x16xf32, #tpu.memory_space<vmem>>, vector<1x16xf32>
    %c76_116 = arith.constant 76 : index
    %c0_117 = arith.constant 0 : index
    %96 = vector.load %arg11[%c76_116, %c0_117] : memref<80x16xf32, #tpu.memory_space<vmem>>, vector<1x16xf32>
    tpu.vector_store %arg11[%c76_116, %c0_117], %95 {strides = array<i32>} : memref<80x16xf32, #tpu.memory_space<vmem>>, vector<1x16xf32>,
    %c71_118 = arith.constant 71 : index
    %c0_119 = arith.constant 0 : index
    %97 = vector.load %arg11[%c71_118, %c0_119] : memref<80x16xf32, #tpu.memory_space<vmem>>, vector<1x16xf32>
    %c77_120 = arith.constant 77 : index
    %c0_121 = arith.constant 0 : index
    %98 = vector.load %arg11[%c77_120, %c0_121] : memref<80x16xf32, #tpu.memory_space<vmem>>, vector<1x16xf32>
    tpu.vector_store %arg11[%c77_120, %c0_121], %97 {strides = array<i32>} : memref<80x16xf32, #tpu.memory_space<vmem>>, vector<1x16xf32>,
    %c0_122 = arith.constant 0 : index
    %c0_123 = arith.constant 0 : index
    %99 = vector.load %arg11[%c0_122, %c0_123] : memref<80x16xf32, #tpu.memory_space<vmem>>, vector<32x16xf32>
    %c1_124 = arith.constant 1 : index
    %c0_125 = arith.constant 0 : index
    %100 = vector.load %arg11[%c1_124, %c0_125] : memref<80x16xf32, #tpu.memory_space<vmem>>, vector<32x16xf32>
    %c2_126 = arith.constant 2 : index
    %c0_127 = arith.constant 0 : index
    %101 = vector.load %arg11[%c2_126, %c0_127] : memref<80x16xf32, #tpu.memory_space<vmem>>, vector<32x16xf32>
    %c3_128 = arith.constant 3 : index
    %c0_129 = arith.constant 0 : index
    %102 = vector.load %arg11[%c3_128, %c0_129] : memref<80x16xf32, #tpu.memory_space<vmem>>, vector<32x16xf32>
    %c4_130 = arith.constant 4 : index
    %c0_131 = arith.constant 0 : index
    %103 = vector.load %arg11[%c4_130, %c0_131] : memref<80x16xf32, #tpu.memory_space<vmem>>, vector<32x16xf32>
    %c5_132 = arith.constant 5 : index
    %c0_133 = arith.constant 0 : index
    %104 = vector.load %arg11[%c5_132, %c0_133] : memref<80x16xf32, #tpu.memory_space<vmem>>, vector<32x16xf32>
    %c6_134 = arith.constant 6 : index
    %c0_135 = arith.constant 0 : index
    %105 = vector.load %arg11[%c6_134, %c0_135] : memref<80x16xf32, #tpu.memory_space<vmem>>, vector<32x16xf32>
    %106 = tpu.concatenate %99, %100, %101, %102, %103, %104, %105 in 1 : vector<32x16xf32>, vector<32x16xf32>, vector<32x16xf32>, vector<32x16xf32>, vector<32x16xf32>, vector<32x16xf32>, vector<32x16xf32> -> vector<32x112xf32>
    %c40_136 = arith.constant 40 : index
    %c0_137 = arith.constant 0 : index
    %107 = vector.load %arg11[%c40_136, %c0_137] : memref<80x16xf32, #tpu.memory_space<vmem>>, vector<32x16xf32>
    %c41_138 = arith.constant 41 : index
    %c0_139 = arith.constant 0 : index
    %108 = vector.load %arg11[%c41_138, %c0_139] : memref<80x16xf32, #tpu.memory_space<vmem>>, vector<32x16xf32>
    %c42_140 = arith.constant 42 : index
    %c0_141 = arith.constant 0 : index
    %109 = vector.load %arg11[%c42_140, %c0_141] : memref<80x16xf32, #tpu.memory_space<vmem>>, vector<32x16xf32>
    %c43_142 = arith.constant 43 : index
    %c0_143 = arith.constant 0 : index
    %110 = vector.load %arg11[%c43_142, %c0_143] : memref<80x16xf32, #tpu.memory_space<vmem>>, vector<32x16xf32>
    %c44_144 = arith.constant 44 : index
    %c0_145 = arith.constant 0 : index
    %111 = vector.load %arg11[%c44_144, %c0_145] : memref<80x16xf32, #tpu.memory_space<vmem>>, vector<32x16xf32>
    %c45_146 = arith.constant 45 : index
    %c0_147 = arith.constant 0 : index
    %112 = vector.load %arg11[%c45_146, %c0_147] : memref<80x16xf32, #tpu.memory_space<vmem>>, vector<32x16xf32>
    %c46_148 = arith.constant 46 : index
    %c0_149 = arith.constant 0 : index
    %113 = vector.load %arg11[%c46_148, %c0_149] : memref<80x16xf32, #tpu.memory_space<vmem>>, vector<32x16xf32>
    %114 = tpu.concatenate %107, %108, %109, %110, %111, %112, %113 in 1 : vector<32x16xf32>, vector<32x16xf32>, vector<32x16xf32>, vector<32x16xf32>, vector<32x16xf32>, vector<32x16xf32>, vector<32x16xf32> -> vector<32x112xf32>
    %115 = tpu.concatenate %106, %114 in 0 : vector<32x112xf32>, vector<32x112xf32> -> vector<64x112xf32>
    %c1_150 = arith.constant 1 : index
    %c0_151 = arith.constant 0 : index
    %c0_152 = arith.constant 0 : index
    %116 = vector.load %arg2[%c1_150, %c0_151, %c0_152] : memref<4x112x16xf32, #tpu.memory_space<vmem>>, vector<1x112x16xf32>
    %117 = vector.shape_cast %116 : vector<1x112x16xf32> to vector<112x16xf32>
    %cst_153 = arith.constant dense<0.000000e+00> : vector<64x16xf32>
    %118 = tpu.matmul %115, %117, %cst_153 {dimension_numbers = #tpu.dot_dimension_numbers<[1], [0], [0], [1], [0, 0, 1, 1], [], []>} : vector<64x112xf32>, vector<112x16xf32>, vector<64x16xf32> -> vector<64x16xf32>
    %c1_154 = arith.constant 1 : index
    %c0_155 = arith.constant 0 : index
    %119 = vector.load %arg3[%c1_154, %c0_155] : memref<4x16xf32, #tpu.memory_space<vmem>>, vector<1x16xf32>
    %120 = vector.broadcast %119 : vector<1x16xf32> to vector<64x16xf32>
    %121 = arith.addf %118, %120 : vector<64x16xf32>
    %122 = math.tanh %121 : vector<64x16xf32>
    %cst_156 = arith.constant 0.000000e+00 : f32
    %123 = vector.broadcast %cst_156 : f32 to vector<64x16xf32>
    %124 = arith.cmpf oge, %122, %123 : vector<64x16xf32>
    %cst_157 = arith.constant 2.000000e-01 : f32
    %125 = vector.broadcast %cst_157 : f32 to vector<64x16xf32>
    %126 = arith.mulf %125, %122 : vector<64x16xf32>
    %127 = arith.select %124, %122, %126 : vector<64x16xi1>, vector<64x16xf32>
    %128 = vector.extract_strided_slice %127 {offsets = [0, 0], sizes = [32, 16], strides = [1, 1]} : vector<64x16xf32> to vector<32x16xf32>
    %c3_158 = arith.constant 3 : index
    %c0_159 = arith.constant 0 : index
    %129 = vector.load %arg11[%c3_158, %c0_159] : memref<80x16xf32, #tpu.memory_space<vmem>>, vector<32x16xf32>
    tpu.vector_store %arg11[%c3_158, %c0_159], %128 {strides = array<i32>} : memref<80x16xf32, #tpu.memory_space<vmem>>, vector<32x16xf32>,
    %c6_160 = arith.constant 6 : index
    %c0_161 = arith.constant 0 : index
    %130 = vector.load %arg11[%c6_160, %c0_161] : memref<80x16xf32, #tpu.memory_space<vmem>>, vector<1x16xf32>
    %c0_162 = arith.constant 0 : index
    %c0_163 = arith.constant 0 : index
    %131 = vector.load %arg11[%c0_162, %c0_163] : memref<80x16xf32, #tpu.memory_space<vmem>>, vector<1x16xf32>
    tpu.vector_store %arg11[%c0_162, %c0_163], %130 {strides = array<i32>} : memref<80x16xf32, #tpu.memory_space<vmem>>, vector<1x16xf32>,
    %c5_164 = arith.constant 5 : index
    %c0_165 = arith.constant 0 : index
    %132 = vector.load %arg11[%c5_164, %c0_165] : memref<80x16xf32, #tpu.memory_space<vmem>>, vector<1x16xf32>
    %c1_166 = arith.constant 1 : index
    %c0_167 = arith.constant 0 : index
    %133 = vector.load %arg11[%c1_166, %c0_167] : memref<80x16xf32, #tpu.memory_space<vmem>>, vector<1x16xf32>
    tpu.vector_store %arg11[%c1_166, %c0_167], %132 {strides = array<i32>} : memref<80x16xf32, #tpu.memory_space<vmem>>, vector<1x16xf32>,
    %c4_168 = arith.constant 4 : index
    %c0_169 = arith.constant 0 : index
    %134 = vector.load %arg11[%c4_168, %c0_169] : memref<80x16xf32, #tpu.memory_space<vmem>>, vector<1x16xf32>
    %c2_170 = arith.constant 2 : index
    %c0_171 = arith.constant 0 : index
    %135 = vector.load %arg11[%c2_170, %c0_171] : memref<80x16xf32, #tpu.memory_space<vmem>>, vector<1x16xf32>
    tpu.vector_store %arg11[%c2_170, %c0_171], %134 {strides = array<i32>} : memref<80x16xf32, #tpu.memory_space<vmem>>, vector<1x16xf32>,
    %c33_172 = arith.constant 33 : index
    %c0_173 = arith.constant 0 : index
    %136 = vector.load %arg11[%c33_172, %c0_173] : memref<80x16xf32, #tpu.memory_space<vmem>>, vector<1x16xf32>
    %c35_174 = arith.constant 35 : index
    %c0_175 = arith.constant 0 : index
    %137 = vector.load %arg11[%c35_174, %c0_175] : memref<80x16xf32, #tpu.memory_space<vmem>>, vector<1x16xf32>
    tpu.vector_store %arg11[%c35_174, %c0_175], %136 {strides = array<i32>} : memref<80x16xf32, #tpu.memory_space<vmem>>, vector<1x16xf32>,
    %c32_176 = arith.constant 32 : index
    %c0_177 = arith.constant 0 : index
    %138 = vector.load %arg11[%c32_176, %c0_177] : memref<80x16xf32, #tpu.memory_space<vmem>>, vector<1x16xf32>
    %c36_178 = arith.constant 36 : index
    %c0_179 = arith.constant 0 : index
    %139 = vector.load %arg11[%c36_178, %c0_179] : memref<80x16xf32, #tpu.memory_space<vmem>>, vector<1x16xf32>
    tpu.vector_store %arg11[%c36_178, %c0_179], %138 {strides = array<i32>} : memref<80x16xf32, #tpu.memory_space<vmem>>, vector<1x16xf32>,
    %c31_180 = arith.constant 31 : index
    %c0_181 = arith.constant 0 : index
    %140 = vector.load %arg11[%c31_180, %c0_181] : memref<80x16xf32, #tpu.memory_space<vmem>>, vector<1x16xf32>
    %c37_182 = arith.constant 37 : index
    %c0_183 = arith.constant 0 : index
    %141 = vector.load %arg11[%c37_182, %c0_183] : memref<80x16xf32, #tpu.memory_space<vmem>>, vector<1x16xf32>
    tpu.vector_store %arg11[%c37_182, %c0_183], %140 {strides = array<i32>} : memref<80x16xf32, #tpu.memory_space<vmem>>, vector<1x16xf32>,
    %142 = vector.extract_strided_slice %127 {offsets = [32, 0], sizes = [32, 16], strides = [1, 1]} : vector<64x16xf32> to vector<32x16xf32>
    %c43_184 = arith.constant 43 : index
    %c0_185 = arith.constant 0 : index
    %143 = vector.load %arg11[%c43_184, %c0_185] : memref<80x16xf32, #tpu.memory_space<vmem>>, vector<32x16xf32>
    tpu.vector_store %arg11[%c43_184, %c0_185], %142 {strides = array<i32>} : memref<80x16xf32, #tpu.memory_space<vmem>>, vector<32x16xf32>,
    %c46_186 = arith.constant 46 : index
    %c0_187 = arith.constant 0 : index
    %144 = vector.load %arg11[%c46_186, %c0_187] : memref<80x16xf32, #tpu.memory_space<vmem>>, vector<1x16xf32>
    %c40_188 = arith.constant 40 : index
    %c0_189 = arith.constant 0 : index
    %145 = vector.load %arg11[%c40_188, %c0_189] : memref<80x16xf32, #tpu.memory_space<vmem>>, vector<1x16xf32>
    tpu.vector_store %arg11[%c40_188, %c0_189], %144 {strides = array<i32>} : memref<80x16xf32, #tpu.memory_space<vmem>>, vector<1x16xf32>,
    %c45_190 = arith.constant 45 : index
    %c0_191 = arith.constant 0 : index
    %146 = vector.load %arg11[%c45_190, %c0_191] : memref<80x16xf32, #tpu.memory_space<vmem>>, vector<1x16xf32>
    %c41_192 = arith.constant 41 : index
    %c0_193 = arith.constant 0 : index
    %147 = vector.load %arg11[%c41_192, %c0_193] : memref<80x16xf32, #tpu.memory_space<vmem>>, vector<1x16xf32>
    tpu.vector_store %arg11[%c41_192, %c0_193], %146 {strides = array<i32>} : memref<80x16xf32, #tpu.memory_space<vmem>>, vector<1x16xf32>,
    %c44_194 = arith.constant 44 : index
    %c0_195 = arith.constant 0 : index
    %148 = vector.load %arg11[%c44_194, %c0_195] : memref<80x16xf32, #tpu.memory_space<vmem>>, vector<1x16xf32>
    %c42_196 = arith.constant 42 : index
    %c0_197 = arith.constant 0 : index
    %149 = vector.load %arg11[%c42_196, %c0_197] : memref<80x16xf32, #tpu.memory_space<vmem>>, vector<1x16xf32>
    tpu.vector_store %arg11[%c42_196, %c0_197], %148 {strides = array<i32>} : memref<80x16xf32, #tpu.memory_space<vmem>>, vector<1x16xf32>,
    %c73_198 = arith.constant 73 : index
    %c0_199 = arith.constant 0 : index
    %150 = vector.load %arg11[%c73_198, %c0_199] : memref<80x16xf32, #tpu.memory_space<vmem>>, vector<1x16xf32>
    %c75_200 = arith.constant 75 : index
    %c0_201 = arith.constant 0 : index
    %151 = vector.load %arg11[%c75_200, %c0_201] : memref<80x16xf32, #tpu.memory_space<vmem>>, vector<1x16xf32>
    tpu.vector_store %arg11[%c75_200, %c0_201], %150 {strides = array<i32>} : memref<80x16xf32, #tpu.memory_space<vmem>>, vector<1x16xf32>,
    %c72_202 = arith.constant 72 : index
    %c0_203 = arith.constant 0 : index
    %152 = vector.load %arg11[%c72_202, %c0_203] : memref<80x16xf32, #tpu.memory_space<vmem>>, vector<1x16xf32>
    %c76_204 = arith.constant 76 : index
    %c0_205 = arith.constant 0 : index
    %153 = vector.load %arg11[%c76_204, %c0_205] : memref<80x16xf32, #tpu.memory_space<vmem>>, vector<1x16xf32>
    tpu.vector_store %arg11[%c76_204, %c0_205], %152 {strides = array<i32>} : memref<80x16xf32, #tpu.memory_space<vmem>>, vector<1x16xf32>,
    %c71_206 = arith.constant 71 : index
    %c0_207 = arith.constant 0 : index
    %154 = vector.load %arg11[%c71_206, %c0_207] : memref<80x16xf32, #tpu.memory_space<vmem>>, vector<1x16xf32>
    %c77_208 = arith.constant 77 : index
    %c0_209 = arith.constant 0 : index
    %155 = vector.load %arg11[%c77_208, %c0_209] : memref<80x16xf32, #tpu.memory_space<vmem>>, vector<1x16xf32>
    tpu.vector_store %arg11[%c77_208, %c0_209], %154 {strides = array<i32>} : memref<80x16xf32, #tpu.memory_space<vmem>>, vector<1x16xf32>,
    %c0_210 = arith.constant 0 : index
    %c0_211 = arith.constant 0 : index
    %156 = vector.load %arg11[%c0_210, %c0_211] : memref<80x16xf32, #tpu.memory_space<vmem>>, vector<32x16xf32>
    %c1_212 = arith.constant 1 : index
    %c0_213 = arith.constant 0 : index
    %157 = vector.load %arg11[%c1_212, %c0_213] : memref<80x16xf32, #tpu.memory_space<vmem>>, vector<32x16xf32>
    %c2_214 = arith.constant 2 : index
    %c0_215 = arith.constant 0 : index
    %158 = vector.load %arg11[%c2_214, %c0_215] : memref<80x16xf32, #tpu.memory_space<vmem>>, vector<32x16xf32>
    %c3_216 = arith.constant 3 : index
    %c0_217 = arith.constant 0 : index
    %159 = vector.load %arg11[%c3_216, %c0_217] : memref<80x16xf32, #tpu.memory_space<vmem>>, vector<32x16xf32>
    %c4_218 = arith.constant 4 : index
    %c0_219 = arith.constant 0 : index
    %160 = vector.load %arg11[%c4_218, %c0_219] : memref<80x16xf32, #tpu.memory_space<vmem>>, vector<32x16xf32>
    %c5_220 = arith.constant 5 : index
    %c0_221 = arith.constant 0 : index
    %161 = vector.load %arg11[%c5_220, %c0_221] : memref<80x16xf32, #tpu.memory_space<vmem>>, vector<32x16xf32>
    %c6_222 = arith.constant 6 : index
    %c0_223 = arith.constant 0 : index
    %162 = vector.load %arg11[%c6_222, %c0_223] : memref<80x16xf32, #tpu.memory_space<vmem>>, vector<32x16xf32>
    %163 = tpu.concatenate %156, %157, %158, %159, %160, %161, %162 in 1 : vector<32x16xf32>, vector<32x16xf32>, vector<32x16xf32>, vector<32x16xf32>, vector<32x16xf32>, vector<32x16xf32>, vector<32x16xf32> -> vector<32x112xf32>
    %c40_224 = arith.constant 40 : index
    %c0_225 = arith.constant 0 : index
    %164 = vector.load %arg11[%c40_224, %c0_225] : memref<80x16xf32, #tpu.memory_space<vmem>>, vector<32x16xf32>
    %c41_226 = arith.constant 41 : index
    %c0_227 = arith.constant 0 : index
    %165 = vector.load %arg11[%c41_226, %c0_227] : memref<80x16xf32, #tpu.memory_space<vmem>>, vector<32x16xf32>
    %c42_228 = arith.constant 42 : index
    %c0_229 = arith.constant 0 : index
    %166 = vector.load %arg11[%c42_228, %c0_229] : memref<80x16xf32, #tpu.memory_space<vmem>>, vector<32x16xf32>
    %c43_230 = arith.constant 43 : index
    %c0_231 = arith.constant 0 : index
    %167 = vector.load %arg11[%c43_230, %c0_231] : memref<80x16xf32, #tpu.memory_space<vmem>>, vector<32x16xf32>
    %c44_232 = arith.constant 44 : index
    %c0_233 = arith.constant 0 : index
    %168 = vector.load %arg11[%c44_232, %c0_233] : memref<80x16xf32, #tpu.memory_space<vmem>>, vector<32x16xf32>
    %c45_234 = arith.constant 45 : index
    %c0_235 = arith.constant 0 : index
    %169 = vector.load %arg11[%c45_234, %c0_235] : memref<80x16xf32, #tpu.memory_space<vmem>>, vector<32x16xf32>
    %c46_236 = arith.constant 46 : index
    %c0_237 = arith.constant 0 : index
    %170 = vector.load %arg11[%c46_236, %c0_237] : memref<80x16xf32, #tpu.memory_space<vmem>>, vector<32x16xf32>
    %171 = tpu.concatenate %164, %165, %166, %167, %168, %169, %170 in 1 : vector<32x16xf32>, vector<32x16xf32>, vector<32x16xf32>, vector<32x16xf32>, vector<32x16xf32>, vector<32x16xf32>, vector<32x16xf32> -> vector<32x112xf32>
    %172 = tpu.concatenate %163, %171 in 0 : vector<32x112xf32>, vector<32x112xf32> -> vector<64x112xf32>
    %c2_238 = arith.constant 2 : index
    %c0_239 = arith.constant 0 : index
    %c0_240 = arith.constant 0 : index
    %173 = vector.load %arg2[%c2_238, %c0_239, %c0_240] : memref<4x112x16xf32, #tpu.memory_space<vmem>>, vector<1x112x16xf32>
    %174 = vector.shape_cast %173 : vector<1x112x16xf32> to vector<112x16xf32>
    %cst_241 = arith.constant dense<0.000000e+00> : vector<64x16xf32>
    %175 = tpu.matmul %172, %174, %cst_241 {dimension_numbers = #tpu.dot_dimension_numbers<[1], [0], [0], [1], [0, 0, 1, 1], [], []>} : vector<64x112xf32>, vector<112x16xf32>, vector<64x16xf32> -> vector<64x16xf32>
    %c2_242 = arith.constant 2 : index
    %c0_243 = arith.constant 0 : index
    %176 = vector.load %arg3[%c2_242, %c0_243] : memref<4x16xf32, #tpu.memory_space<vmem>>, vector<1x16xf32>
    %177 = vector.broadcast %176 : vector<1x16xf32> to vector<64x16xf32>
    %178 = arith.addf %175, %177 : vector<64x16xf32>
    %cst_244 = arith.constant 0.000000e+00 : f32
    %179 = vector.broadcast %cst_244 : f32 to vector<64x16xf32>
    %180 = arith.cmpf oge, %178, %179 : vector<64x16xf32>
    %cst_245 = arith.constant 2.000000e-01 : f32
    %181 = vector.broadcast %cst_245 : f32 to vector<64x16xf32>
    %182 = arith.mulf %181, %178 : vector<64x16xf32>
    %183 = arith.select %180, %178, %182 : vector<64x16xi1>, vector<64x16xf32>
    %184 = vector.extract_strided_slice %183 {offsets = [0, 0], sizes = [32, 16], strides = [1, 1]} : vector<64x16xf32> to vector<32x16xf32>
    %c3_246 = arith.constant 3 : index
    %c0_247 = arith.constant 0 : index
    %185 = vector.load %arg11[%c3_246, %c0_247] : memref<80x16xf32, #tpu.memory_space<vmem>>, vector<32x16xf32>
    tpu.vector_store %arg11[%c3_246, %c0_247], %184 {strides = array<i32>} : memref<80x16xf32, #tpu.memory_space<vmem>>, vector<32x16xf32>,
    %c6_248 = arith.constant 6 : index
    %c0_249 = arith.constant 0 : index
    %186 = vector.load %arg11[%c6_248, %c0_249] : memref<80x16xf32, #tpu.memory_space<vmem>>, vector<1x16xf32>
    %c0_250 = arith.constant 0 : index
    %c0_251 = arith.constant 0 : index
    %187 = vector.load %arg11[%c0_250, %c0_251] : memref<80x16xf32, #tpu.memory_space<vmem>>, vector<1x16xf32>
    tpu.vector_store %arg11[%c0_250, %c0_251], %186 {strides = array<i32>} : memref<80x16xf32, #tpu.memory_space<vmem>>, vector<1x16xf32>,
    %c5_252 = arith.constant 5 : index
    %c0_253 = arith.constant 0 : index
    %188 = vector.load %arg11[%c5_252, %c0_253] : memref<80x16xf32, #tpu.memory_space<vmem>>, vector<1x16xf32>
    %c1_254 = arith.constant 1 : index
    %c0_255 = arith.constant 0 : index
    %189 = vector.load %arg11[%c1_254, %c0_255] : memref<80x16xf32, #tpu.memory_space<vmem>>, vector<1x16xf32>
    tpu.vector_store %arg11[%c1_254, %c0_255], %188 {strides = array<i32>} : memref<80x16xf32, #tpu.memory_space<vmem>>, vector<1x16xf32>,
    %c4_256 = arith.constant 4 : index
    %c0_257 = arith.constant 0 : index
    %190 = vector.load %arg11[%c4_256, %c0_257] : memref<80x16xf32, #tpu.memory_space<vmem>>, vector<1x16xf32>
    %c2_258 = arith.constant 2 : index
    %c0_259 = arith.constant 0 : index
    %191 = vector.load %arg11[%c2_258, %c0_259] : memref<80x16xf32, #tpu.memory_space<vmem>>, vector<1x16xf32>
    tpu.vector_store %arg11[%c2_258, %c0_259], %190 {strides = array<i32>} : memref<80x16xf32, #tpu.memory_space<vmem>>, vector<1x16xf32>,
    %c33_260 = arith.constant 33 : index
    %c0_261 = arith.constant 0 : index
    %192 = vector.load %arg11[%c33_260, %c0_261] : memref<80x16xf32, #tpu.memory_space<vmem>>, vector<1x16xf32>
    %c35_262 = arith.constant 35 : index
    %c0_263 = arith.constant 0 : index
    %193 = vector.load %arg11[%c35_262, %c0_263] : memref<80x16xf32, #tpu.memory_space<vmem>>, vector<1x16xf32>
    tpu.vector_store %arg11[%c35_262, %c0_263], %192 {strides = array<i32>} : memref<80x16xf32, #tpu.memory_space<vmem>>, vector<1x16xf32>,
    %c32_264 = arith.constant 32 : index
    %c0_265 = arith.constant 0 : index
    %194 = vector.load %arg11[%c32_264, %c0_265] : memref<80x16xf32, #tpu.memory_space<vmem>>, vector<1x16xf32>
    %c36_266 = arith.constant 36 : index
    %c0_267 = arith.constant 0 : index
    %195 = vector.load %arg11[%c36_266, %c0_267] : memref<80x16xf32, #tpu.memory_space<vmem>>, vector<1x16xf32>
    tpu.vector_store %arg11[%c36_266, %c0_267], %194 {strides = array<i32>} : memref<80x16xf32, #tpu.memory_space<vmem>>, vector<1x16xf32>,
    %c31_268 = arith.constant 31 : index
    %c0_269 = arith.constant 0 : index
    %196 = vector.load %arg11[%c31_268, %c0_269] : memref<80x16xf32, #tpu.memory_space<vmem>>, vector<1x16xf32>
    %c37_270 = arith.constant 37 : index
    %c0_271 = arith.constant 0 : index
    %197 = vector.load %arg11[%c37_270, %c0_271] : memref<80x16xf32, #tpu.memory_space<vmem>>, vector<1x16xf32>
    tpu.vector_store %arg11[%c37_270, %c0_271], %196 {strides = array<i32>} : memref<80x16xf32, #tpu.memory_space<vmem>>, vector<1x16xf32>,
    %198 = vector.extract_strided_slice %183 {offsets = [32, 0], sizes = [32, 16], strides = [1, 1]} : vector<64x16xf32> to vector<32x16xf32>
    %c43_272 = arith.constant 43 : index
    %c0_273 = arith.constant 0 : index
    %199 = vector.load %arg11[%c43_272, %c0_273] : memref<80x16xf32, #tpu.memory_space<vmem>>, vector<32x16xf32>
    tpu.vector_store %arg11[%c43_272, %c0_273], %198 {strides = array<i32>} : memref<80x16xf32, #tpu.memory_space<vmem>>, vector<32x16xf32>,
    %c46_274 = arith.constant 46 : index
    %c0_275 = arith.constant 0 : index
    %200 = vector.load %arg11[%c46_274, %c0_275] : memref<80x16xf32, #tpu.memory_space<vmem>>, vector<1x16xf32>
    %c40_276 = arith.constant 40 : index
    %c0_277 = arith.constant 0 : index
    %201 = vector.load %arg11[%c40_276, %c0_277] : memref<80x16xf32, #tpu.memory_space<vmem>>, vector<1x16xf32>
    tpu.vector_store %arg11[%c40_276, %c0_277], %200 {strides = array<i32>} : memref<80x16xf32, #tpu.memory_space<vmem>>, vector<1x16xf32>,
    %c45_278 = arith.constant 45 : index
    %c0_279 = arith.constant 0 : index
    %202 = vector.load %arg11[%c45_278, %c0_279] : memref<80x16xf32, #tpu.memory_space<vmem>>, vector<1x16xf32>
    %c41_280 = arith.constant 41 : index
    %c0_281 = arith.constant 0 : index
    %203 = vector.load %arg11[%c41_280, %c0_281] : memref<80x16xf32, #tpu.memory_space<vmem>>, vector<1x16xf32>
    tpu.vector_store %arg11[%c41_280, %c0_281], %202 {strides = array<i32>} : memref<80x16xf32, #tpu.memory_space<vmem>>, vector<1x16xf32>,
    %c44_282 = arith.constant 44 : index
    %c0_283 = arith.constant 0 : index
    %204 = vector.load %arg11[%c44_282, %c0_283] : memref<80x16xf32, #tpu.memory_space<vmem>>, vector<1x16xf32>
    %c42_284 = arith.constant 42 : index
    %c0_285 = arith.constant 0 : index
    %205 = vector.load %arg11[%c42_284, %c0_285] : memref<80x16xf32, #tpu.memory_space<vmem>>, vector<1x16xf32>
    tpu.vector_store %arg11[%c42_284, %c0_285], %204 {strides = array<i32>} : memref<80x16xf32, #tpu.memory_space<vmem>>, vector<1x16xf32>,
    %c73_286 = arith.constant 73 : index
    %c0_287 = arith.constant 0 : index
    %206 = vector.load %arg11[%c73_286, %c0_287] : memref<80x16xf32, #tpu.memory_space<vmem>>, vector<1x16xf32>
    %c75_288 = arith.constant 75 : index
    %c0_289 = arith.constant 0 : index
    %207 = vector.load %arg11[%c75_288, %c0_289] : memref<80x16xf32, #tpu.memory_space<vmem>>, vector<1x16xf32>
    tpu.vector_store %arg11[%c75_288, %c0_289], %206 {strides = array<i32>} : memref<80x16xf32, #tpu.memory_space<vmem>>, vector<1x16xf32>,
    %c72_290 = arith.constant 72 : index
    %c0_291 = arith.constant 0 : index
    %208 = vector.load %arg11[%c72_290, %c0_291] : memref<80x16xf32, #tpu.memory_space<vmem>>, vector<1x16xf32>
    %c76_292 = arith.constant 76 : index
    %c0_293 = arith.constant 0 : index
    %209 = vector.load %arg11[%c76_292, %c0_293] : memref<80x16xf32, #tpu.memory_space<vmem>>, vector<1x16xf32>
    tpu.vector_store %arg11[%c76_292, %c0_293], %208 {strides = array<i32>} : memref<80x16xf32, #tpu.memory_space<vmem>>, vector<1x16xf32>,
    %c71_294 = arith.constant 71 : index
    %c0_295 = arith.constant 0 : index
    %210 = vector.load %arg11[%c71_294, %c0_295] : memref<80x16xf32, #tpu.memory_space<vmem>>, vector<1x16xf32>
    %c77_296 = arith.constant 77 : index
    %c0_297 = arith.constant 0 : index
    %211 = vector.load %arg11[%c77_296, %c0_297] : memref<80x16xf32, #tpu.memory_space<vmem>>, vector<1x16xf32>
    tpu.vector_store %arg11[%c77_296, %c0_297], %210 {strides = array<i32>} : memref<80x16xf32, #tpu.memory_space<vmem>>, vector<1x16xf32>,
    %c0_298 = arith.constant 0 : index
    %c0_299 = arith.constant 0 : index
    %212 = vector.load %arg11[%c0_298, %c0_299] : memref<80x16xf32, #tpu.memory_space<vmem>>, vector<32x16xf32>
    %c1_300 = arith.constant 1 : index
    %c0_301 = arith.constant 0 : index
    %213 = vector.load %arg11[%c1_300, %c0_301] : memref<80x16xf32, #tpu.memory_space<vmem>>, vector<32x16xf32>
    %c2_302 = arith.constant 2 : index
    %c0_303 = arith.constant 0 : index
    %214 = vector.load %arg11[%c2_302, %c0_303] : memref<80x16xf32, #tpu.memory_space<vmem>>, vector<32x16xf32>
    %c3_304 = arith.constant 3 : index
    %c0_305 = arith.constant 0 : index
    %215 = vector.load %arg11[%c3_304, %c0_305] : memref<80x16xf32, #tpu.memory_space<vmem>>, vector<32x16xf32>
    %c4_306 = arith.constant 4 : index
    %c0_307 = arith.constant 0 : index
    %216 = vector.load %arg11[%c4_306, %c0_307] : memref<80x16xf32, #tpu.memory_space<vmem>>, vector<32x16xf32>
    %c5_308 = arith.constant 5 : index
    %c0_309 = arith.constant 0 : index
    %217 = vector.load %arg11[%c5_308, %c0_309] : memref<80x16xf32, #tpu.memory_space<vmem>>, vector<32x16xf32>
    %c6_310 = arith.constant 6 : index
    %c0_311 = arith.constant 0 : index
    %218 = vector.load %arg11[%c6_310, %c0_311] : memref<80x16xf32, #tpu.memory_space<vmem>>, vector<32x16xf32>
    %219 = tpu.concatenate %212, %213, %214, %215, %216, %217, %218 in 1 : vector<32x16xf32>, vector<32x16xf32>, vector<32x16xf32>, vector<32x16xf32>, vector<32x16xf32>, vector<32x16xf32>, vector<32x16xf32> -> vector<32x112xf32>
    %c40_312 = arith.constant 40 : index
    %c0_313 = arith.constant 0 : index
    %220 = vector.load %arg11[%c40_312, %c0_313] : memref<80x16xf32, #tpu.memory_space<vmem>>, vector<32x16xf32>
    %c41_314 = arith.constant 41 : index
    %c0_315 = arith.constant 0 : index
    %221 = vector.load %arg11[%c41_314, %c0_315] : memref<80x16xf32, #tpu.memory_space<vmem>>, vector<32x16xf32>
    %c42_316 = arith.constant 42 : index
    %c0_317 = arith.constant 0 : index
    %222 = vector.load %arg11[%c42_316, %c0_317] : memref<80x16xf32, #tpu.memory_space<vmem>>, vector<32x16xf32>
    %c43_318 = arith.constant 43 : index
    %c0_319 = arith.constant 0 : index
    %223 = vector.load %arg11[%c43_318, %c0_319] : memref<80x16xf32, #tpu.memory_space<vmem>>, vector<32x16xf32>
    %c44_320 = arith.constant 44 : index
    %c0_321 = arith.constant 0 : index
    %224 = vector.load %arg11[%c44_320, %c0_321] : memref<80x16xf32, #tpu.memory_space<vmem>>, vector<32x16xf32>
    %c45_322 = arith.constant 45 : index
    %c0_323 = arith.constant 0 : index
    %225 = vector.load %arg11[%c45_322, %c0_323] : memref<80x16xf32, #tpu.memory_space<vmem>>, vector<32x16xf32>
    %c46_324 = arith.constant 46 : index
    %c0_325 = arith.constant 0 : index
    %226 = vector.load %arg11[%c46_324, %c0_325] : memref<80x16xf32, #tpu.memory_space<vmem>>, vector<32x16xf32>
    %227 = tpu.concatenate %220, %221, %222, %223, %224, %225, %226 in 1 : vector<32x16xf32>, vector<32x16xf32>, vector<32x16xf32>, vector<32x16xf32>, vector<32x16xf32>, vector<32x16xf32>, vector<32x16xf32> -> vector<32x112xf32>
    %228 = tpu.concatenate %219, %227 in 0 : vector<32x112xf32>, vector<32x112xf32> -> vector<64x112xf32>
    %c3_326 = arith.constant 3 : index
    %c0_327 = arith.constant 0 : index
    %c0_328 = arith.constant 0 : index
    %229 = vector.load %arg2[%c3_326, %c0_327, %c0_328] : memref<4x112x16xf32, #tpu.memory_space<vmem>>, vector<1x112x16xf32>
    %230 = vector.shape_cast %229 : vector<1x112x16xf32> to vector<112x16xf32>
    %cst_329 = arith.constant dense<0.000000e+00> : vector<64x16xf32>
    %231 = tpu.matmul %228, %230, %cst_329 {dimension_numbers = #tpu.dot_dimension_numbers<[1], [0], [0], [1], [0, 0, 1, 1], [], []>} : vector<64x112xf32>, vector<112x16xf32>, vector<64x16xf32> -> vector<64x16xf32>
    %c3_330 = arith.constant 3 : index
    %c0_331 = arith.constant 0 : index
    %232 = vector.load %arg3[%c3_330, %c0_331] : memref<4x16xf32, #tpu.memory_space<vmem>>, vector<1x16xf32>
    %233 = vector.broadcast %232 : vector<1x16xf32> to vector<64x16xf32>
    %234 = arith.addf %231, %233 : vector<64x16xf32>
    %235 = vector.extract_strided_slice %234 {offsets = [0, 0], sizes = [64, 4], strides = [1, 1]} : vector<64x16xf32> to vector<64x4xf32>
    %c0_332 = arith.constant 0 : index
    %c0_333 = arith.constant 0 : index
    %236 = vector.load %arg9[%c0_332, %c0_333] : memref<64x4xf32, #tpu.memory_space<vmem>>, vector<64x4xf32>
    tpu.vector_store %arg9[%c0_332, %c0_333], %235 {strides = array<i32>} : memref<64x4xf32, #tpu.memory_space<vmem>>, vector<64x4xf32>,
    %237 = arith.addf %68, %234 : vector<64x16xf32>
    %238 = vector.extract_strided_slice %237 {offsets = [0, 4], sizes = [64, 4], strides = [1, 1]} : vector<64x16xf32> to vector<64x4xf32>
    %239 = vector.extract_strided_slice %237 {offsets = [0, 8], sizes = [64, 4], strides = [1, 1]} : vector<64x16xf32> to vector<64x4xf32>
    %cst_334 = arith.constant 0.000000e+00 : f32
    %240 = vector.broadcast %cst_334 : f32 to vector<64x12xf32>
    %241 = tpu.concatenate %238, %240, %239, %240 in 1 : vector<64x4xf32>, vector<64x12xf32>, vector<64x4xf32>, vector<64x12xf32> -> vector<64x32xf32>
    %242 = vector.extract_strided_slice %241 {offsets = [0, 0], sizes = [32, 32], strides = [1, 1]} : vector<64x32xf32> to vector<32x32xf32>
    %c2_335 = arith.constant 2 : index
    %c0_336 = arith.constant 0 : index
    %243 = vector.load %arg12[%c2_335, %c0_336] : memref<80x32xf32, #tpu.memory_space<vmem>>, vector<32x32xf32>
    tpu.vector_store %arg12[%c2_335, %c0_336], %242 {strides = array<i32>} : memref<80x32xf32, #tpu.memory_space<vmem>>, vector<32x32xf32>,
    %c3_337 = arith.constant 3 : index
    %c0_338 = arith.constant 0 : index
    %244 = vector.load %arg12[%c3_337, %c0_338] : memref<80x32xf32, #tpu.memory_space<vmem>>, vector<1x16xf32>
    %c1_339 = arith.constant 1 : index
    %c0_340 = arith.constant 0 : index
    %245 = vector.load %arg12[%c1_339, %c0_340] : memref<80x32xf32, #tpu.memory_space<vmem>>, vector<1x16xf32>
    tpu.vector_store %arg12[%c1_339, %c0_340], %244 {strides = array<i32>} : memref<80x32xf32, #tpu.memory_space<vmem>>, vector<1x16xf32>,
    %c2_341 = arith.constant 2 : index
    %c16 = arith.constant 16 : index
    %246 = vector.load %arg12[%c2_341, %c16] : memref<80x32xf32, #tpu.memory_space<vmem>>, vector<1x16xf32>
    %c1_342 = arith.constant 1 : index
    %c16_343 = arith.constant 16 : index
    %247 = vector.load %arg12[%c1_342, %c16_343] : memref<80x32xf32, #tpu.memory_space<vmem>>, vector<1x16xf32>
    tpu.vector_store %arg12[%c1_342, %c16_343], %246 {strides = array<i32>} : memref<80x32xf32, #tpu.memory_space<vmem>>, vector<1x16xf32>,
    %c3_344 = arith.constant 3 : index
    %c0_345 = arith.constant 0 : index
    %248 = vector.load %arg12[%c3_344, %c0_345] : memref<80x32xf32, #tpu.memory_space<vmem>>, vector<1x32xf32>
    %c0_346 = arith.constant 0 : index
    %c0_347 = arith.constant 0 : index
    %249 = vector.load %arg12[%c0_346, %c0_347] : memref<80x32xf32, #tpu.memory_space<vmem>>, vector<1x32xf32>
    tpu.vector_store %arg12[%c0_346, %c0_347], %248 {strides = array<i32>} : memref<80x32xf32, #tpu.memory_space<vmem>>, vector<1x32xf32>,
    %c33_348 = arith.constant 33 : index
    %c0_349 = arith.constant 0 : index
    %250 = vector.load %arg12[%c33_348, %c0_349] : memref<80x32xf32, #tpu.memory_space<vmem>>, vector<1x16xf32>
    %c34 = arith.constant 34 : index
    %c0_350 = arith.constant 0 : index
    %251 = vector.load %arg12[%c34, %c0_350] : memref<80x32xf32, #tpu.memory_space<vmem>>, vector<1x16xf32>
    tpu.vector_store %arg12[%c34, %c0_350], %250 {strides = array<i32>} : memref<80x32xf32, #tpu.memory_space<vmem>>, vector<1x16xf32>,
    %c32_351 = arith.constant 32 : index
    %c16_352 = arith.constant 16 : index
    %252 = vector.load %arg12[%c32_351, %c16_352] : memref<80x32xf32, #tpu.memory_space<vmem>>, vector<1x16xf32>
    %c34_353 = arith.constant 34 : index
    %c16_354 = arith.constant 16 : index
    %253 = vector.load %arg12[%c34_353, %c16_354] : memref<80x32xf32, #tpu.memory_space<vmem>>, vector<1x16xf32>
    tpu.vector_store %arg12[%c34_353, %c16_354], %252 {strides = array<i32>} : memref<80x32xf32, #tpu.memory_space<vmem>>, vector<1x16xf32>,
    %c32_355 = arith.constant 32 : index
    %c0_356 = arith.constant 0 : index
    %254 = vector.load %arg12[%c32_355, %c0_356] : memref<80x32xf32, #tpu.memory_space<vmem>>, vector<1x32xf32>
    %c35_357 = arith.constant 35 : index
    %c0_358 = arith.constant 0 : index
    %255 = vector.load %arg12[%c35_357, %c0_358] : memref<80x32xf32, #tpu.memory_space<vmem>>, vector<1x32xf32>
    tpu.vector_store %arg12[%c35_357, %c0_358], %254 {strides = array<i32>} : memref<80x32xf32, #tpu.memory_space<vmem>>, vector<1x32xf32>,
    %256 = vector.extract_strided_slice %241 {offsets = [32, 0], sizes = [32, 32], strides = [1, 1]} : vector<64x32xf32> to vector<32x32xf32>
    %c42_359 = arith.constant 42 : index
    %c0_360 = arith.constant 0 : index
    %257 = vector.load %arg12[%c42_359, %c0_360] : memref<80x32xf32, #tpu.memory_space<vmem>>, vector<32x32xf32>
    tpu.vector_store %arg12[%c42_359, %c0_360], %256 {strides = array<i32>} : memref<80x32xf32, #tpu.memory_space<vmem>>, vector<32x32xf32>,
    %c43_361 = arith.constant 43 : index
    %c0_362 = arith.constant 0 : index
    %258 = vector.load %arg12[%c43_361, %c0_362] : memref<80x32xf32, #tpu.memory_space<vmem>>, vector<1x16xf32>
    %c41_363 = arith.constant 41 : index
    %c0_364 = arith.constant 0 : index
    %259 = vector.load %arg12[%c41_363, %c0_364] : memref<80x32xf32, #tpu.memory_space<vmem>>, vector<1x16xf32>
    tpu.vector_store %arg12[%c41_363, %c0_364], %258 {strides = array<i32>} : memref<80x32xf32, #tpu.memory_space<vmem>>, vector<1x16xf32>,
    %c42_365 = arith.constant 42 : index
    %c16_366 = arith.constant 16 : index
    %260 = vector.load %arg12[%c42_365, %c16_366] : memref<80x32xf32, #tpu.memory_space<vmem>>, vector<1x16xf32>
    %c41_367 = arith.constant 41 : index
    %c16_368 = arith.constant 16 : index
    %261 = vector.load %arg12[%c41_367, %c16_368] : memref<80x32xf32, #tpu.memory_space<vmem>>, vector<1x16xf32>
    tpu.vector_store %arg12[%c41_367, %c16_368], %260 {strides = array<i32>} : memref<80x32xf32, #tpu.memory_space<vmem>>, vector<1x16xf32>,
    %c43_369 = arith.constant 43 : index
    %c0_370 = arith.constant 0 : index
    %262 = vector.load %arg12[%c43_369, %c0_370] : memref<80x32xf32, #tpu.memory_space<vmem>>, vector<1x32xf32>
    %c40_371 = arith.constant 40 : index
    %c0_372 = arith.constant 0 : index
    %263 = vector.load %arg12[%c40_371, %c0_372] : memref<80x32xf32, #tpu.memory_space<vmem>>, vector<1x32xf32>
    tpu.vector_store %arg12[%c40_371, %c0_372], %262 {strides = array<i32>} : memref<80x32xf32, #tpu.memory_space<vmem>>, vector<1x32xf32>,
    %c73_373 = arith.constant 73 : index
    %c0_374 = arith.constant 0 : index
    %264 = vector.load %arg12[%c73_373, %c0_374] : memref<80x32xf32, #tpu.memory_space<vmem>>, vector<1x16xf32>
    %c74 = arith.constant 74 : index
    %c0_375 = arith.constant 0 : index
    %265 = vector.load %arg12[%c74, %c0_375] : memref<80x32xf32, #tpu.memory_space<vmem>>, vector<1x16xf32>
    tpu.vector_store %arg12[%c74, %c0_375], %264 {strides = array<i32>} : memref<80x32xf32, #tpu.memory_space<vmem>>, vector<1x16xf32>,
    %c72_376 = arith.constant 72 : index
    %c16_377 = arith.constant 16 : index
    %266 = vector.load %arg12[%c72_376, %c16_377] : memref<80x32xf32, #tpu.memory_space<vmem>>, vector<1x16xf32>
    %c74_378 = arith.constant 74 : index
    %c16_379 = arith.constant 16 : index
    %267 = vector.load %arg12[%c74_378, %c16_379] : memref<80x32xf32, #tpu.memory_space<vmem>>, vector<1x16xf32>
    tpu.vector_store %arg12[%c74_378, %c16_379], %266 {strides = array<i32>} : memref<80x32xf32, #tpu.memory_space<vmem>>, vector<1x16xf32>,
    %c72_380 = arith.constant 72 : index
    %c0_381 = arith.constant 0 : index
    %268 = vector.load %arg12[%c72_380, %c0_381] : memref<80x32xf32, #tpu.memory_space<vmem>>, vector<1x32xf32>
    %c75_382 = arith.constant 75 : index
    %c0_383 = arith.constant 0 : index
    %269 = vector.load %arg12[%c75_382, %c0_383] : memref<80x32xf32, #tpu.memory_space<vmem>>, vector<1x32xf32>
    tpu.vector_store %arg12[%c75_382, %c0_383], %268 {strides = array<i32>} : memref<80x32xf32, #tpu.memory_space<vmem>>, vector<1x32xf32>,
    %c0_384 = arith.constant 0 : index
    %c0_385 = arith.constant 0 : index
    %270 = vector.load %arg12[%c0_384, %c0_385] : memref<80x32xf32, #tpu.memory_space<vmem>>, vector<32x32xf32>
    %c1_386 = arith.constant 1 : index
    %c0_387 = arith.constant 0 : index
    %271 = vector.load %arg12[%c1_386, %c0_387] : memref<80x32xf32, #tpu.memory_space<vmem>>, vector<32x32xf32>
    %c2_388 = arith.constant 2 : index
    %c0_389 = arith.constant 0 : index
    %272 = vector.load %arg12[%c2_388, %c0_389] : memref<80x32xf32, #tpu.memory_space<vmem>>, vector<32x32xf32>
    %c3_390 = arith.constant 3 : index
    %c0_391 = arith.constant 0 : index
    %273 = vector.load %arg12[%c3_390, %c0_391] : memref<80x32xf32, #tpu.memory_space<vmem>>, vector<32x32xf32>
    %c4_392 = arith.constant 4 : index
    %c0_393 = arith.constant 0 : index
    %274 = vector.load %arg12[%c4_392, %c0_393] : memref<80x32xf32, #tpu.memory_space<vmem>>, vector<32x32xf32>
    %275 = tpu.concatenate %270, %271, %272, %273, %274 in 1 : vector<32x32xf32>, vector<32x32xf32>, vector<32x32xf32>, vector<32x32xf32>, vector<32x32xf32> -> vector<32x160xf32>
    %c40_394 = arith.constant 40 : index
    %c0_395 = arith.constant 0 : index
    %276 = vector.load %arg12[%c40_394, %c0_395] : memref<80x32xf32, #tpu.memory_space<vmem>>, vector<32x32xf32>
    %c41_396 = arith.constant 41 : index
    %c0_397 = arith.constant 0 : index
    %277 = vector.load %arg12[%c41_396, %c0_397] : memref<80x32xf32, #tpu.memory_space<vmem>>, vector<32x32xf32>
    %c42_398 = arith.constant 42 : index
    %c0_399 = arith.constant 0 : index
    %278 = vector.load %arg12[%c42_398, %c0_399] : memref<80x32xf32, #tpu.memory_space<vmem>>, vector<32x32xf32>
    %c43_400 = arith.constant 43 : index
    %c0_401 = arith.constant 0 : index
    %279 = vector.load %arg12[%c43_400, %c0_401] : memref<80x32xf32, #tpu.memory_space<vmem>>, vector<32x32xf32>
    %c44_402 = arith.constant 44 : index
    %c0_403 = arith.constant 0 : index
    %280 = vector.load %arg12[%c44_402, %c0_403] : memref<80x32xf32, #tpu.memory_space<vmem>>, vector<32x32xf32>
    %281 = tpu.concatenate %276, %277, %278, %279, %280 in 1 : vector<32x32xf32>, vector<32x32xf32>, vector<32x32xf32>, vector<32x32xf32>, vector<32x32xf32> -> vector<32x160xf32>
    %282 = tpu.concatenate %275, %281 in 0 : vector<32x160xf32>, vector<32x160xf32> -> vector<64x160xf32>
    %c0_404 = arith.constant 0 : index
    %c0_405 = arith.constant 0 : index
    %c0_406 = arith.constant 0 : index
    %283 = vector.load %arg4[%c0_404, %c0_405, %c0_406] : memref<3x160x32xf32, #tpu.memory_space<vmem>>, vector<1x160x32xf32>
    %284 = vector.shape_cast %283 : vector<1x160x32xf32> to vector<160x32xf32>
    %cst_407 = arith.constant dense<0.000000e+00> : vector<64x32xf32>
    %285 = tpu.matmul %282, %284, %cst_407 {dimension_numbers = #tpu.dot_dimension_numbers<[1], [0], [0], [1], [0, 0, 1, 1], [], []>} : vector<64x160xf32>, vector<160x32xf32>, vector<64x32xf32> -> vector<64x32xf32>
    %c0_408 = arith.constant 0 : index
    %c0_409 = arith.constant 0 : index
    %286 = vector.load %arg5[%c0_408, %c0_409] : memref<3x32xf32, #tpu.memory_space<vmem>>, vector<1x32xf32>
    %287 = vector.broadcast %286 : vector<1x32xf32> to vector<64x32xf32>
    %288 = arith.addf %285, %287 : vector<64x32xf32>
    %289 = math.tanh %288 : vector<64x32xf32>
    %cst_410 = arith.constant 0.000000e+00 : f32
    %290 = vector.broadcast %cst_410 : f32 to vector<64x32xf32>
    %291 = arith.cmpf oge, %289, %290 : vector<64x32xf32>
    %cst_411 = arith.constant 2.000000e-01 : f32
    %292 = vector.broadcast %cst_411 : f32 to vector<64x32xf32>
    %293 = arith.mulf %292, %289 : vector<64x32xf32>
    %294 = arith.select %291, %289, %293 : vector<64x32xi1>, vector<64x32xf32>
    %295 = vector.extract_strided_slice %294 {offsets = [0, 0], sizes = [32, 32], strides = [1, 1]} : vector<64x32xf32> to vector<32x32xf32>
    %c2_412 = arith.constant 2 : index
    %c0_413 = arith.constant 0 : index
    %296 = vector.load %arg12[%c2_412, %c0_413] : memref<80x32xf32, #tpu.memory_space<vmem>>, vector<32x32xf32>
    tpu.vector_store %arg12[%c2_412, %c0_413], %295 {strides = array<i32>} : memref<80x32xf32, #tpu.memory_space<vmem>>, vector<32x32xf32>,
    %c3_414 = arith.constant 3 : index
    %c0_415 = arith.constant 0 : index
    %297 = vector.load %arg12[%c3_414, %c0_415] : memref<80x32xf32, #tpu.memory_space<vmem>>, vector<1x16xf32>
    %c1_416 = arith.constant 1 : index
    %c0_417 = arith.constant 0 : index
    %298 = vector.load %arg12[%c1_416, %c0_417] : memref<80x32xf32, #tpu.memory_space<vmem>>, vector<1x16xf32>
    tpu.vector_store %arg12[%c1_416, %c0_417], %297 {strides = array<i32>} : memref<80x32xf32, #tpu.memory_space<vmem>>, vector<1x16xf32>,
    %c2_418 = arith.constant 2 : index
    %c16_419 = arith.constant 16 : index
    %299 = vector.load %arg12[%c2_418, %c16_419] : memref<80x32xf32, #tpu.memory_space<vmem>>, vector<1x16xf32>
    %c1_420 = arith.constant 1 : index
    %c16_421 = arith.constant 16 : index
    %300 = vector.load %arg12[%c1_420, %c16_421] : memref<80x32xf32, #tpu.memory_space<vmem>>, vector<1x16xf32>
    tpu.vector_store %arg12[%c1_420, %c16_421], %299 {strides = array<i32>} : memref<80x32xf32, #tpu.memory_space<vmem>>, vector<1x16xf32>,
    %c3_422 = arith.constant 3 : index
    %c0_423 = arith.constant 0 : index
    %301 = vector.load %arg12[%c3_422, %c0_423] : memref<80x32xf32, #tpu.memory_space<vmem>>, vector<1x32xf32>
    %c0_424 = arith.constant 0 : index
    %c0_425 = arith.constant 0 : index
    %302 = vector.load %arg12[%c0_424, %c0_425] : memref<80x32xf32, #tpu.memory_space<vmem>>, vector<1x32xf32>
    tpu.vector_store %arg12[%c0_424, %c0_425], %301 {strides = array<i32>} : memref<80x32xf32, #tpu.memory_space<vmem>>, vector<1x32xf32>,
    %c33_426 = arith.constant 33 : index
    %c0_427 = arith.constant 0 : index
    %303 = vector.load %arg12[%c33_426, %c0_427] : memref<80x32xf32, #tpu.memory_space<vmem>>, vector<1x16xf32>
    %c34_428 = arith.constant 34 : index
    %c0_429 = arith.constant 0 : index
    %304 = vector.load %arg12[%c34_428, %c0_429] : memref<80x32xf32, #tpu.memory_space<vmem>>, vector<1x16xf32>
    tpu.vector_store %arg12[%c34_428, %c0_429], %303 {strides = array<i32>} : memref<80x32xf32, #tpu.memory_space<vmem>>, vector<1x16xf32>,
    %c32_430 = arith.constant 32 : index
    %c16_431 = arith.constant 16 : index
    %305 = vector.load %arg12[%c32_430, %c16_431] : memref<80x32xf32, #tpu.memory_space<vmem>>, vector<1x16xf32>
    %c34_432 = arith.constant 34 : index
    %c16_433 = arith.constant 16 : index
    %306 = vector.load %arg12[%c34_432, %c16_433] : memref<80x32xf32, #tpu.memory_space<vmem>>, vector<1x16xf32>
    tpu.vector_store %arg12[%c34_432, %c16_433], %305 {strides = array<i32>} : memref<80x32xf32, #tpu.memory_space<vmem>>, vector<1x16xf32>,
    %c32_434 = arith.constant 32 : index
    %c0_435 = arith.constant 0 : index
    %307 = vector.load %arg12[%c32_434, %c0_435] : memref<80x32xf32, #tpu.memory_space<vmem>>, vector<1x32xf32>
    %c35_436 = arith.constant 35 : index
    %c0_437 = arith.constant 0 : index
    %308 = vector.load %arg12[%c35_436, %c0_437] : memref<80x32xf32, #tpu.memory_space<vmem>>, vector<1x32xf32>
    tpu.vector_store %arg12[%c35_436, %c0_437], %307 {strides = array<i32>} : memref<80x32xf32, #tpu.memory_space<vmem>>, vector<1x32xf32>,
    %309 = vector.extract_strided_slice %294 {offsets = [32, 0], sizes = [32, 32], strides = [1, 1]} : vector<64x32xf32> to vector<32x32xf32>
    %c42_438 = arith.constant 42 : index
    %c0_439 = arith.constant 0 : index
    %310 = vector.load %arg12[%c42_438, %c0_439] : memref<80x32xf32, #tpu.memory_space<vmem>>, vector<32x32xf32>
    tpu.vector_store %arg12[%c42_438, %c0_439], %309 {strides = array<i32>} : memref<80x32xf32, #tpu.memory_space<vmem>>, vector<32x32xf32>,
    %c43_440 = arith.constant 43 : index
    %c0_441 = arith.constant 0 : index
    %311 = vector.load %arg12[%c43_440, %c0_441] : memref<80x32xf32, #tpu.memory_space<vmem>>, vector<1x16xf32>
    %c41_442 = arith.constant 41 : index
    %c0_443 = arith.constant 0 : index
    %312 = vector.load %arg12[%c41_442, %c0_443] : memref<80x32xf32, #tpu.memory_space<vmem>>, vector<1x16xf32>
    tpu.vector_store %arg12[%c41_442, %c0_443], %311 {strides = array<i32>} : memref<80x32xf32, #tpu.memory_space<vmem>>, vector<1x16xf32>,
    %c42_444 = arith.constant 42 : index
    %c16_445 = arith.constant 16 : index
    %313 = vector.load %arg12[%c42_444, %c16_445] : memref<80x32xf32, #tpu.memory_space<vmem>>, vector<1x16xf32>
    %c41_446 = arith.constant 41 : index
    %c16_447 = arith.constant 16 : index
    %314 = vector.load %arg12[%c41_446, %c16_447] : memref<80x32xf32, #tpu.memory_space<vmem>>, vector<1x16xf32>
    tpu.vector_store %arg12[%c41_446, %c16_447], %313 {strides = array<i32>} : memref<80x32xf32, #tpu.memory_space<vmem>>, vector<1x16xf32>,
    %c43_448 = arith.constant 43 : index
    %c0_449 = arith.constant 0 : index
    %315 = vector.load %arg12[%c43_448, %c0_449] : memref<80x32xf32, #tpu.memory_space<vmem>>, vector<1x32xf32>
    %c40_450 = arith.constant 40 : index
    %c0_451 = arith.constant 0 : index
    %316 = vector.load %arg12[%c40_450, %c0_451] : memref<80x32xf32, #tpu.memory_space<vmem>>, vector<1x32xf32>
    tpu.vector_store %arg12[%c40_450, %c0_451], %315 {strides = array<i32>} : memref<80x32xf32, #tpu.memory_space<vmem>>, vector<1x32xf32>,
    %c73_452 = arith.constant 73 : index
    %c0_453 = arith.constant 0 : index
    %317 = vector.load %arg12[%c73_452, %c0_453] : memref<80x32xf32, #tpu.memory_space<vmem>>, vector<1x16xf32>
    %c74_454 = arith.constant 74 : index
    %c0_455 = arith.constant 0 : index
    %318 = vector.load %arg12[%c74_454, %c0_455] : memref<80x32xf32, #tpu.memory_space<vmem>>, vector<1x16xf32>
    tpu.vector_store %arg12[%c74_454, %c0_455], %317 {strides = array<i32>} : memref<80x32xf32, #tpu.memory_space<vmem>>, vector<1x16xf32>,
    %c72_456 = arith.constant 72 : index
    %c16_457 = arith.constant 16 : index
    %319 = vector.load %arg12[%c72_456, %c16_457] : memref<80x32xf32, #tpu.memory_space<vmem>>, vector<1x16xf32>
    %c74_458 = arith.constant 74 : index
    %c16_459 = arith.constant 16 : index
    %320 = vector.load %arg12[%c74_458, %c16_459] : memref<80x32xf32, #tpu.memory_space<vmem>>, vector<1x16xf32>
    tpu.vector_store %arg12[%c74_458, %c16_459], %319 {strides = array<i32>} : memref<80x32xf32, #tpu.memory_space<vmem>>, vector<1x16xf32>,
    %c72_460 = arith.constant 72 : index
    %c0_461 = arith.constant 0 : index
    %321 = vector.load %arg12[%c72_460, %c0_461] : memref<80x32xf32, #tpu.memory_space<vmem>>, vector<1x32xf32>
    %c75_462 = arith.constant 75 : index
    %c0_463 = arith.constant 0 : index
    %322 = vector.load %arg12[%c75_462, %c0_463] : memref<80x32xf32, #tpu.memory_space<vmem>>, vector<1x32xf32>
    tpu.vector_store %arg12[%c75_462, %c0_463], %321 {strides = array<i32>} : memref<80x32xf32, #tpu.memory_space<vmem>>, vector<1x32xf32>,
    %c0_464 = arith.constant 0 : index
    %c0_465 = arith.constant 0 : index
    %323 = vector.load %arg12[%c0_464, %c0_465] : memref<80x32xf32, #tpu.memory_space<vmem>>, vector<32x32xf32>
    %c1_466 = arith.constant 1 : index
    %c0_467 = arith.constant 0 : index
    %324 = vector.load %arg12[%c1_466, %c0_467] : memref<80x32xf32, #tpu.memory_space<vmem>>, vector<32x32xf32>
    %c2_468 = arith.constant 2 : index
    %c0_469 = arith.constant 0 : index
    %325 = vector.load %arg12[%c2_468, %c0_469] : memref<80x32xf32, #tpu.memory_space<vmem>>, vector<32x32xf32>
    %c3_470 = arith.constant 3 : index
    %c0_471 = arith.constant 0 : index
    %326 = vector.load %arg12[%c3_470, %c0_471] : memref<80x32xf32, #tpu.memory_space<vmem>>, vector<32x32xf32>
    %c4_472 = arith.constant 4 : index
    %c0_473 = arith.constant 0 : index
    %327 = vector.load %arg12[%c4_472, %c0_473] : memref<80x32xf32, #tpu.memory_space<vmem>>, vector<32x32xf32>
    %328 = tpu.concatenate %323, %324, %325, %326, %327 in 1 : vector<32x32xf32>, vector<32x32xf32>, vector<32x32xf32>, vector<32x32xf32>, vector<32x32xf32> -> vector<32x160xf32>
    %c40_474 = arith.constant 40 : index
    %c0_475 = arith.constant 0 : index
    %329 = vector.load %arg12[%c40_474, %c0_475] : memref<80x32xf32, #tpu.memory_space<vmem>>, vector<32x32xf32>
    %c41_476 = arith.constant 41 : index
    %c0_477 = arith.constant 0 : index
    %330 = vector.load %arg12[%c41_476, %c0_477] : memref<80x32xf32, #tpu.memory_space<vmem>>, vector<32x32xf32>
    %c42_478 = arith.constant 42 : index
    %c0_479 = arith.constant 0 : index
    %331 = vector.load %arg12[%c42_478, %c0_479] : memref<80x32xf32, #tpu.memory_space<vmem>>, vector<32x32xf32>
    %c43_480 = arith.constant 43 : index
    %c0_481 = arith.constant 0 : index
    %332 = vector.load %arg12[%c43_480, %c0_481] : memref<80x32xf32, #tpu.memory_space<vmem>>, vector<32x32xf32>
    %c44_482 = arith.constant 44 : index
    %c0_483 = arith.constant 0 : index
    %333 = vector.load %arg12[%c44_482, %c0_483] : memref<80x32xf32, #tpu.memory_space<vmem>>, vector<32x32xf32>
    %334 = tpu.concatenate %329, %330, %331, %332, %333 in 1 : vector<32x32xf32>, vector<32x32xf32>, vector<32x32xf32>, vector<32x32xf32>, vector<32x32xf32> -> vector<32x160xf32>
    %335 = tpu.concatenate %328, %334 in 0 : vector<32x160xf32>, vector<32x160xf32> -> vector<64x160xf32>
    %c1_484 = arith.constant 1 : index
    %c0_485 = arith.constant 0 : index
    %c0_486 = arith.constant 0 : index
    %336 = vector.load %arg4[%c1_484, %c0_485, %c0_486] : memref<3x160x32xf32, #tpu.memory_space<vmem>>, vector<1x160x32xf32>
    %337 = vector.shape_cast %336 : vector<1x160x32xf32> to vector<160x32xf32>
    %cst_487 = arith.constant dense<0.000000e+00> : vector<64x32xf32>
    %338 = tpu.matmul %335, %337, %cst_487 {dimension_numbers = #tpu.dot_dimension_numbers<[1], [0], [0], [1], [0, 0, 1, 1], [], []>} : vector<64x160xf32>, vector<160x32xf32>, vector<64x32xf32> -> vector<64x32xf32>
    %c1_488 = arith.constant 1 : index
    %c0_489 = arith.constant 0 : index
    %339 = vector.load %arg5[%c1_488, %c0_489] : memref<3x32xf32, #tpu.memory_space<vmem>>, vector<1x32xf32>
    %340 = vector.broadcast %339 : vector<1x32xf32> to vector<64x32xf32>
    %341 = arith.addf %338, %340 : vector<64x32xf32>
    %cst_490 = arith.constant 0.000000e+00 : f32
    %342 = vector.broadcast %cst_490 : f32 to vector<64x32xf32>
    %343 = arith.cmpf oge, %341, %342 : vector<64x32xf32>
    %cst_491 = arith.constant 2.000000e-01 : f32
    %344 = vector.broadcast %cst_491 : f32 to vector<64x32xf32>
    %345 = arith.mulf %344, %341 : vector<64x32xf32>
    %346 = arith.select %343, %341, %345 : vector<64x32xi1>, vector<64x32xf32>
    %347 = vector.extract_strided_slice %346 {offsets = [0, 0], sizes = [32, 32], strides = [1, 1]} : vector<64x32xf32> to vector<32x32xf32>
    %c2_492 = arith.constant 2 : index
    %c0_493 = arith.constant 0 : index
    %348 = vector.load %arg12[%c2_492, %c0_493] : memref<80x32xf32, #tpu.memory_space<vmem>>, vector<32x32xf32>
    tpu.vector_store %arg12[%c2_492, %c0_493], %347 {strides = array<i32>} : memref<80x32xf32, #tpu.memory_space<vmem>>, vector<32x32xf32>,
    %c3_494 = arith.constant 3 : index
    %c0_495 = arith.constant 0 : index
    %349 = vector.load %arg12[%c3_494, %c0_495] : memref<80x32xf32, #tpu.memory_space<vmem>>, vector<1x16xf32>
    %c1_496 = arith.constant 1 : index
    %c0_497 = arith.constant 0 : index
    %350 = vector.load %arg12[%c1_496, %c0_497] : memref<80x32xf32, #tpu.memory_space<vmem>>, vector<1x16xf32>
    tpu.vector_store %arg12[%c1_496, %c0_497], %349 {strides = array<i32>} : memref<80x32xf32, #tpu.memory_space<vmem>>, vector<1x16xf32>,
    %c2_498 = arith.constant 2 : index
    %c16_499 = arith.constant 16 : index
    %351 = vector.load %arg12[%c2_498, %c16_499] : memref<80x32xf32, #tpu.memory_space<vmem>>, vector<1x16xf32>
    %c1_500 = arith.constant 1 : index
    %c16_501 = arith.constant 16 : index
    %352 = vector.load %arg12[%c1_500, %c16_501] : memref<80x32xf32, #tpu.memory_space<vmem>>, vector<1x16xf32>
    tpu.vector_store %arg12[%c1_500, %c16_501], %351 {strides = array<i32>} : memref<80x32xf32, #tpu.memory_space<vmem>>, vector<1x16xf32>,
    %c3_502 = arith.constant 3 : index
    %c0_503 = arith.constant 0 : index
    %353 = vector.load %arg12[%c3_502, %c0_503] : memref<80x32xf32, #tpu.memory_space<vmem>>, vector<1x32xf32>
    %c0_504 = arith.constant 0 : index
    %c0_505 = arith.constant 0 : index
    %354 = vector.load %arg12[%c0_504, %c0_505] : memref<80x32xf32, #tpu.memory_space<vmem>>, vector<1x32xf32>
    tpu.vector_store %arg12[%c0_504, %c0_505], %353 {strides = array<i32>} : memref<80x32xf32, #tpu.memory_space<vmem>>, vector<1x32xf32>,
    %c33_506 = arith.constant 33 : index
    %c0_507 = arith.constant 0 : index
    %355 = vector.load %arg12[%c33_506, %c0_507] : memref<80x32xf32, #tpu.memory_space<vmem>>, vector<1x16xf32>
    %c34_508 = arith.constant 34 : index
    %c0_509 = arith.constant 0 : index
    %356 = vector.load %arg12[%c34_508, %c0_509] : memref<80x32xf32, #tpu.memory_space<vmem>>, vector<1x16xf32>
    tpu.vector_store %arg12[%c34_508, %c0_509], %355 {strides = array<i32>} : memref<80x32xf32, #tpu.memory_space<vmem>>, vector<1x16xf32>,
    %c32_510 = arith.constant 32 : index
    %c16_511 = arith.constant 16 : index
    %357 = vector.load %arg12[%c32_510, %c16_511] : memref<80x32xf32, #tpu.memory_space<vmem>>, vector<1x16xf32>
    %c34_512 = arith.constant 34 : index
    %c16_513 = arith.constant 16 : index
    %358 = vector.load %arg12[%c34_512, %c16_513] : memref<80x32xf32, #tpu.memory_space<vmem>>, vector<1x16xf32>
    tpu.vector_store %arg12[%c34_512, %c16_513], %357 {strides = array<i32>} : memref<80x32xf32, #tpu.memory_space<vmem>>, vector<1x16xf32>,
    %c32_514 = arith.constant 32 : index
    %c0_515 = arith.constant 0 : index
    %359 = vector.load %arg12[%c32_514, %c0_515] : memref<80x32xf32, #tpu.memory_space<vmem>>, vector<1x32xf32>
    %c35_516 = arith.constant 35 : index
    %c0_517 = arith.constant 0 : index
    %360 = vector.load %arg12[%c35_516, %c0_517] : memref<80x32xf32, #tpu.memory_space<vmem>>, vector<1x32xf32>
    tpu.vector_store %arg12[%c35_516, %c0_517], %359 {strides = array<i32>} : memref<80x32xf32, #tpu.memory_space<vmem>>, vector<1x32xf32>,
    %361 = vector.extract_strided_slice %346 {offsets = [32, 0], sizes = [32, 32], strides = [1, 1]} : vector<64x32xf32> to vector<32x32xf32>
    %c42_518 = arith.constant 42 : index
    %c0_519 = arith.constant 0 : index
    %362 = vector.load %arg12[%c42_518, %c0_519] : memref<80x32xf32, #tpu.memory_space<vmem>>, vector<32x32xf32>
    tpu.vector_store %arg12[%c42_518, %c0_519], %361 {strides = array<i32>} : memref<80x32xf32, #tpu.memory_space<vmem>>, vector<32x32xf32>,
    %c43_520 = arith.constant 43 : index
    %c0_521 = arith.constant 0 : index
    %363 = vector.load %arg12[%c43_520, %c0_521] : memref<80x32xf32, #tpu.memory_space<vmem>>, vector<1x16xf32>
    %c41_522 = arith.constant 41 : index
    %c0_523 = arith.constant 0 : index
    %364 = vector.load %arg12[%c41_522, %c0_523] : memref<80x32xf32, #tpu.memory_space<vmem>>, vector<1x16xf32>
    tpu.vector_store %arg12[%c41_522, %c0_523], %363 {strides = array<i32>} : memref<80x32xf32, #tpu.memory_space<vmem>>, vector<1x16xf32>,
    %c42_524 = arith.constant 42 : index
    %c16_525 = arith.constant 16 : index
    %365 = vector.load %arg12[%c42_524, %c16_525] : memref<80x32xf32, #tpu.memory_space<vmem>>, vector<1x16xf32>
    %c41_526 = arith.constant 41 : index
    %c16_527 = arith.constant 16 : index
    %366 = vector.load %arg12[%c41_526, %c16_527] : memref<80x32xf32, #tpu.memory_space<vmem>>, vector<1x16xf32>
    tpu.vector_store %arg12[%c41_526, %c16_527], %365 {strides = array<i32>} : memref<80x32xf32, #tpu.memory_space<vmem>>, vector<1x16xf32>,
    %c43_528 = arith.constant 43 : index
    %c0_529 = arith.constant 0 : index
    %367 = vector.load %arg12[%c43_528, %c0_529] : memref<80x32xf32, #tpu.memory_space<vmem>>, vector<1x32xf32>
    %c40_530 = arith.constant 40 : index
    %c0_531 = arith.constant 0 : index
    %368 = vector.load %arg12[%c40_530, %c0_531] : memref<80x32xf32, #tpu.memory_space<vmem>>, vector<1x32xf32>
    tpu.vector_store %arg12[%c40_530, %c0_531], %367 {strides = array<i32>} : memref<80x32xf32, #tpu.memory_space<vmem>>, vector<1x32xf32>,
    %c73_532 = arith.constant 73 : index
    %c0_533 = arith.constant 0 : index
    %369 = vector.load %arg12[%c73_532, %c0_533] : memref<80x32xf32, #tpu.memory_space<vmem>>, vector<1x16xf32>
    %c74_534 = arith.constant 74 : index
    %c0_535 = arith.constant 0 : index
    %370 = vector.load %arg12[%c74_534, %c0_535] : memref<80x32xf32, #tpu.memory_space<vmem>>, vector<1x16xf32>
    tpu.vector_store %arg12[%c74_534, %c0_535], %369 {strides = array<i32>} : memref<80x32xf32, #tpu.memory_space<vmem>>, vector<1x16xf32>,
    %c72_536 = arith.constant 72 : index
    %c16_537 = arith.constant 16 : index
    %371 = vector.load %arg12[%c72_536, %c16_537] : memref<80x32xf32, #tpu.memory_space<vmem>>, vector<1x16xf32>
    %c74_538 = arith.constant 74 : index
    %c16_539 = arith.constant 16 : index
    %372 = vector.load %arg12[%c74_538, %c16_539] : memref<80x32xf32, #tpu.memory_space<vmem>>, vector<1x16xf32>
    tpu.vector_store %arg12[%c74_538, %c16_539], %371 {strides = array<i32>} : memref<80x32xf32, #tpu.memory_space<vmem>>, vector<1x16xf32>,
    %c72_540 = arith.constant 72 : index
    %c0_541 = arith.constant 0 : index
    %373 = vector.load %arg12[%c72_540, %c0_541] : memref<80x32xf32, #tpu.memory_space<vmem>>, vector<1x32xf32>
    %c75_542 = arith.constant 75 : index
    %c0_543 = arith.constant 0 : index
    %374 = vector.load %arg12[%c75_542, %c0_543] : memref<80x32xf32, #tpu.memory_space<vmem>>, vector<1x32xf32>
    tpu.vector_store %arg12[%c75_542, %c0_543], %373 {strides = array<i32>} : memref<80x32xf32, #tpu.memory_space<vmem>>, vector<1x32xf32>,
    %c0_544 = arith.constant 0 : index
    %c0_545 = arith.constant 0 : index
    %375 = vector.load %arg12[%c0_544, %c0_545] : memref<80x32xf32, #tpu.memory_space<vmem>>, vector<32x32xf32>
    %c1_546 = arith.constant 1 : index
    %c0_547 = arith.constant 0 : index
    %376 = vector.load %arg12[%c1_546, %c0_547] : memref<80x32xf32, #tpu.memory_space<vmem>>, vector<32x32xf32>
    %c2_548 = arith.constant 2 : index
    %c0_549 = arith.constant 0 : index
    %377 = vector.load %arg12[%c2_548, %c0_549] : memref<80x32xf32, #tpu.memory_space<vmem>>, vector<32x32xf32>
    %c3_550 = arith.constant 3 : index
    %c0_551 = arith.constant 0 : index
    %378 = vector.load %arg12[%c3_550, %c0_551] : memref<80x32xf32, #tpu.memory_space<vmem>>, vector<32x32xf32>
    %c4_552 = arith.constant 4 : index
    %c0_553 = arith.constant 0 : index
    %379 = vector.load %arg12[%c4_552, %c0_553] : memref<80x32xf32, #tpu.memory_space<vmem>>, vector<32x32xf32>
    %380 = tpu.concatenate %375, %376, %377, %378, %379 in 1 : vector<32x32xf32>, vector<32x32xf32>, vector<32x32xf32>, vector<32x32xf32>, vector<32x32xf32> -> vector<32x160xf32>
    %c40_554 = arith.constant 40 : index
    %c0_555 = arith.constant 0 : index
    %381 = vector.load %arg12[%c40_554, %c0_555] : memref<80x32xf32, #tpu.memory_space<vmem>>, vector<32x32xf32>
    %c41_556 = arith.constant 41 : index
    %c0_557 = arith.constant 0 : index
    %382 = vector.load %arg12[%c41_556, %c0_557] : memref<80x32xf32, #tpu.memory_space<vmem>>, vector<32x32xf32>
    %c42_558 = arith.constant 42 : index
    %c0_559 = arith.constant 0 : index
    %383 = vector.load %arg12[%c42_558, %c0_559] : memref<80x32xf32, #tpu.memory_space<vmem>>, vector<32x32xf32>
    %c43_560 = arith.constant 43 : index
    %c0_561 = arith.constant 0 : index
    %384 = vector.load %arg12[%c43_560, %c0_561] : memref<80x32xf32, #tpu.memory_space<vmem>>, vector<32x32xf32>
    %c44_562 = arith.constant 44 : index
    %c0_563 = arith.constant 0 : index
    %385 = vector.load %arg12[%c44_562, %c0_563] : memref<80x32xf32, #tpu.memory_space<vmem>>, vector<32x32xf32>
    %386 = tpu.concatenate %381, %382, %383, %384, %385 in 1 : vector<32x32xf32>, vector<32x32xf32>, vector<32x32xf32>, vector<32x32xf32>, vector<32x32xf32> -> vector<32x160xf32>
    %387 = tpu.concatenate %380, %386 in 0 : vector<32x160xf32>, vector<32x160xf32> -> vector<64x160xf32>
    %c2_564 = arith.constant 2 : index
    %c0_565 = arith.constant 0 : index
    %c0_566 = arith.constant 0 : index
    %388 = vector.load %arg4[%c2_564, %c0_565, %c0_566] : memref<3x160x32xf32, #tpu.memory_space<vmem>>, vector<1x160x32xf32>
    %389 = vector.shape_cast %388 : vector<1x160x32xf32> to vector<160x32xf32>
    %cst_567 = arith.constant dense<0.000000e+00> : vector<64x32xf32>
    %390 = tpu.matmul %387, %389, %cst_567 {dimension_numbers = #tpu.dot_dimension_numbers<[1], [0], [0], [1], [0, 0, 1, 1], [], []>} : vector<64x160xf32>, vector<160x32xf32>, vector<64x32xf32> -> vector<64x32xf32>
    %c2_568 = arith.constant 2 : index
    %c0_569 = arith.constant 0 : index
    %391 = vector.load %arg5[%c2_568, %c0_569] : memref<3x32xf32, #tpu.memory_space<vmem>>, vector<1x32xf32>
    %392 = vector.broadcast %391 : vector<1x32xf32> to vector<64x32xf32>
    %393 = arith.addf %390, %392 : vector<64x32xf32>
    %394 = vector.extract_strided_slice %393 {offsets = [0, 0], sizes = [64, 8], strides = [1, 1]} : vector<64x32xf32> to vector<64x8xf32>
    %c0_570 = arith.constant 0 : index
    %c0_571 = arith.constant 0 : index
    %395 = vector.load %arg10[%c0_570, %c0_571] : memref<64x8xf32, #tpu.memory_space<vmem>>, vector<64x8xf32>
    tpu.vector_store %arg10[%c0_570, %c0_571], %394 {strides = array<i32>} : memref<64x8xf32, #tpu.memory_space<vmem>>, vector<64x8xf32>,
    return
  }
  func.func @transform_0(%arg0: i32) -> (i32, i32) {
    %c0_i32 = arith.constant 0 : i32
    %c0_i32_0 = arith.constant 0 : i32
    return %arg0, %c0_i32 : i32, i32
  }
  func.func @transform_1(%arg0: i32) -> (i32, i32, i32) {
    %c0_i32 = arith.constant 0 : i32
    %c0_i32_0 = arith.constant 0 : i32
    %c0_i32_1 = arith.constant 0 : i32
    %c0_i32_2 = arith.constant 0 : i32
    return %c0_i32, %c0_i32_0, %c0_i32_1 : i32, i32, i32
  }
  func.func @transform_2(%arg0: i32) -> (i32, i32) {
    %c0_i32 = arith.constant 0 : i32
    %c0_i32_0 = arith.constant 0 : i32
    %c0_i32_1 = arith.constant 0 : i32
    return %c0_i32, %c0_i32_0 : i32, i32
  }
  func.func @transform_3(%arg0: i32) -> (i32, i32, i32) {
    %c0_i32 = arith.constant 0 : i32
    %c0_i32_0 = arith.constant 0 : i32
    %c0_i32_1 = arith.constant 0 : i32
    %c0_i32_2 = arith.constant 0 : i32
    return %c0_i32, %c0_i32_0, %c0_i32_1 : i32, i32, i32
  }
  func.func @transform_4(%arg0: i32) -> (i32, i32) {
    %c0_i32 = arith.constant 0 : i32
    %c0_i32_0 = arith.constant 0 : i32
    %c0_i32_1 = arith.constant 0 : i32
    return %c0_i32, %c0_i32_0 : i32, i32
  }
  func.func @transform_5(%arg0: i32) -> (i32, i32) {
    %c0_i32 = arith.constant 0 : i32
    %c0_i32_0 = arith.constant 0 : i32
    %c0_i32_1 = arith.constant 0 : i32
    return %c0_i32, %c0_i32_0 : i32, i32
  }
  func.func @transform_6(%arg0: i32) -> (i32, i32) {
    %c0_i32 = arith.constant 0 : i32
    %c0_i32_0 = arith.constant 0 : i32
    %c0_i32_1 = arith.constant 0 : i32
    return %c0_i32, %c0_i32_0 : i32, i32
  }
  func.func @transform_7(%arg0: i32) -> (i32, i32) {
    %c0_i32 = arith.constant 0 : i32
    %c0_i32_0 = arith.constant 0 : i32
    return %arg0, %c0_i32 : i32, i32
  }
  func.func @transform_8(%arg0: i32) -> (i32, i32) {
    %c0_i32 = arith.constant 0 : i32
    %c0_i32_0 = arith.constant 0 : i32
    return %arg0, %c0_i32 : i32, i32
  }
  func.func @transform_9(%arg0: i32) -> (i32, i32) {
    %c0_i32 = arith.constant 0 : i32
    %c0_i32_0 = arith.constant 0 : i32
    return %arg0, %c0_i32 : i32, i32
  }
}

</mosaic_0001>

<bundles_post_ra>
// kernel: interponet_forward.1
= control target key start
LH: loop header
LB: loop body
LE: loop exit
PB: predicated region body
PF: predicated region fallthrough
CT: control target
= control target key end

     0   :  { %vm33_vm0 = vcmask 130048   ;;  %v3281_v0 = vmov 0   ;;  %v5009_v3 = vmov 0.0   ;;  %vm159_vm1 = vcmask 31744   ;;  %s3286_s29 = smov 96   ;;  %s3287_s30 = smov 32   ;;  %s4999_s0 = inlined_call_operand.vmem [shape: f32[64,1], index: 0, kind: input, shape index: {}]   ;;  %s5000_s5 = inlined_call_operand.vmem [shape: f32[1,4], index: 5, kind: input, shape index: {}]   ;;  %s5001_s6 = inlined_call_operand.vmem [shape: f32[1,4], index: 6, kind: input, shape index: {}]   ;;  %s5002_s1 = inlined_call_operand.vmem [shape: f32[4,112,16], index: 1, kind: input, shape index: {}]   ;;  %s5003_s2 = inlined_call_operand.vmem [shape: f32[4,16], index: 2, kind: input, shape index: {}]   ;;  %s5004_s7 = inlined_call_operand.vmem [shape: f32[64,4], index: 7, kind: output, shape index: {0}]   ;;  %s5005_s8 = inlined_call_operand.vmem [shape: f32[64,4], index: 8, kind: output, shape index: {1}]   ;;  %s5006_s3 = inlined_call_operand.vmem [shape: f32[3,160,32], index: 3, kind: input, shape index: {}]   ;;  %s5007_s4 = inlined_call_operand.vmem [shape: f32[3,32], index: 4, kind: input, shape index: {}]   ;;  %s5008_s9 = inlined_call_operand.vmem [shape: f32[64,8], index: 9, kind: output, shape index: {2}]  }
   0x1   :  { %3187 = vset.pattern.permute.xlu1 %v3281_v0  ;;  %3186 = vset.pattern.permute.xlu0 %v3281_v0  ;;  %v3344_v1 = vld [vmem:[%s4999_s0 + $0x10] sm:$0xff]  ;;  %v3349_v2 = vld [vmem:[%s4999_s0] sm:$0xff]  ;;  %37 = vst.msk [vmem:[#allocation2 + $0x18] sm:$0xff] %vm33_vm0, %v5009_v3  ;;  %v3360_v4 = vld [vmem:[%s4999_s0 + $0x18] sm:$0xff]  ;;  %vm165_vm3 = vcmask 122880   ;;  %vm585_vm9 = vcmask 7168  }
   0x2   :  { %76 = vperm.xlu1 %3187, %v3344_v1   ;;  %66 = vperm.xlu0 %3186, %v3349_v2   ;;  %38 = vst.msk [vmem:[#allocation2 + $0x20] sm:$0xff] %vm33_vm0, %v5009_v3  ;;  %v3372_v5 = vld [vmem:[%s4999_s0 + $0x20] sm:$0xff]  ;;  %v3377_v6 = vld [vmem:[%s4999_s0 + $0x8] sm:$0xff]  ;;  %v3400_v8 = vld [vmem:[%s4999_s0 + $0x38] sm:$0xff]  ;;  %s3288_s10 = smov 16   ;;  %vm44_vm12 = vcmask 261120  }
   0x3   :  { %3188 = vset.pattern.permute.xlu2 %v3281_v0  ;;  %34 = vst.msk [vmem:[#allocation2] sm:$0xff] %vm33_vm0, %v5009_v3  ;;  %v3386_v7 = vld [vmem:[%s4999_s0 + $0x28] sm:$0xff]  ;;  %v3405_v9 = vld [vmem:[%s4999_s0 + $0x30] sm:$0xff]  ;;  %v3239_v10 = vld [vmem:[%s5000_s5] ss:$0 sm:$0xff]  ;;  %s3283_s0 = smov 48  }
   0x4   :  { %81 = vperm.xlu2 %3188, %v3360_v4   ;;  %35 = vst.msk [vmem:[#allocation2 + $0x8] sm:$0xff] %vm33_vm0, %v5009_v3  ;;  %v3415_v11 = vld [vmem:[%s5001_s6] ss:$0 sm:$0xff]  ;;  %s3284_s5 = smov 80   ;;  %s3285_s6 = smov 64   ;;  %vm327_vm13 = vcmask 392192  }
   0x5   :  { %36 = vst.msk [vmem:[#allocation2 + $0x10] sm:$0xff] %vm33_vm0, %v5009_v3  ;;  %vm332_vm14 = vcmask 523264   ;;  %vm337_vm15 = vcmask 654336   ;;  %s3289_s20 = smov 8   ;;  %s3290_s21 = smov 124  }
   0x6   :  { %39 = vst.msk [vmem:[#allocation2 + $0x28] sm:$0xff] %vm33_vm0, %v5009_v3 }
   0x7   :  { %40 = vst.msk [vmem:[#allocation2 + $0x30] sm:$0xff] %vm33_vm0, %v5009_v3 }
   0x8   :  { %41 = vst.msk [vmem:[#allocation2 + $0x38] sm:$0xff] %vm33_vm0, %v5009_v3 }
   0x9   :  { %42 = vst.msk [vmem:[#allocation2 + $0x40] sm:$0xff] %vm33_vm0, %v5009_v3 }
   0xa   :  { %86 = vperm.xlu1 %3187, %v3372_v5   ;;  %71 = vperm.xlu0 %3186, %v3377_v6   ;;  %43 = vst.msk [vmem:[#allocation2 + $0x48] sm:$0xff] %vm33_vm0, %v5009_v3 }
   0xc   :  { %91 = vperm.xlu2 %3188, %v3386_v7  }
  0x12   :  { %101 = vperm.xlu1 %3187, %v3400_v8   ;;  %96 = vperm.xlu0 %3186, %v3405_v9  }
  0x5e   :  { %v82_v12 = vpop.permute.xlu2 %81 }
  0x5f   :  { %v110_v13 = vmul.f32 %v3239_v10, %v82_v12 }
  0x61   :  { %v122_v14 = vadd.f32 %v3415_v11, %v110_v13 }
  0x63   :  { %v130_v15 = vadd.f32 %v122_v14, %v82_v12 }
  0x65   :  { %vm138_vm2 = vcmp.ge.f32.partialorder %v130_v15, 0.0  ;;  %v146_v16 = vmul.f32 0.2, %v130_v15 }
  0x66   :  { %v92_v17 = vpop.permute.xlu2 %91 }
  0x67   :  { %v154_v18 = vsel %vm138_vm2, %v130_v15, %v146_v16  ;;  %v112_v19 = vmul.f32 %v3239_v10, %v92_v17  ;;  %vm342_vm2 = vcmask 785408  }
  0x68   :  { %163 = vst.msk [vmem:[#allocation2 + $0x1b] sm:$0xff] %vm159_vm1, %v154_v18 }
  0x69   :  { %v124_v20 = vadd.f32 %v3415_v11, %v112_v19 }
  0x6b   :  { %v132_v21 = vadd.f32 %v124_v20, %v92_v17 }
  0x6d   :  { %vm140_vm4 = vcmp.ge.f32.partialorder %v132_v21, 0.0  ;;  %v148_v22 = vmul.f32 0.2, %v132_v21 }
  0x6f   :  { %v171_v23 = vld [vmem:[#allocation2 + $0x21] sm:$0x1]  ;;  %v173_v24 = vld [vmem:[#allocation2 + $0x20] sm:$0x1]  ;;  %v175_v25 = vld [vmem:[#allocation2 + $0x1f] sm:$0x1]  ;;  %v156_v26 = vsel %vm140_vm4, %v132_v21, %v148_v22 }
  0x70   :  { %172 = vst.msk [vmem:[#allocation2 + $0x23] sm:$0x1] %vm165_vm3, %v171_v23  ;;  %v3434_v59 = vld [vmem:[#allocation2 + $0x1b] sm:$0xff]  ;;  %vm511_vm4 = vcmask 916480  }
  0x71   :  { %174 = vst.msk [vmem:[#allocation2 + $0x24] sm:$0x1] %vm165_vm3, %v173_v24 }
  0x72   :  { %176 = vst.msk [vmem:[#allocation2 + $0x25] sm:$0x1] %vm165_vm3, %v175_v25 }
  0x73   :  { %178 = vst.msk [vmem:[#allocation2 + $0x33] sm:$0xff] %vm159_vm1, %v156_v26 }
  0x74   :  { %v77_v27 = vpop.permute.xlu1 %76  ;;  %v67_v28 = vpop.permute.xlu0 %66 }
  0x75   :  { %v109_v29 = vmul.f32 %v3239_v10, %v77_v27  ;;  %v107_v30 = vmul.f32 %v3239_v10, %v67_v28 }
  0x77   :  { %v121_v31 = vadd.f32 %v3415_v11, %v109_v29  ;;  %v119_v32 = vadd.f32 %v3415_v11, %v107_v30  ;;  %v3436_v60 = vld [vmem:[#allocation2 + $0x1c] sm:$0xff] }
  0x78   :  { %5011 = vst [vmem:[#allocation4_spill] sm:$0xff] %v3436_v60  ;;  %v3438_v61 = vld [vmem:[#allocation2 + $0x1d] sm:$0xff] }
  0x79   :  { %v129_v33 = vadd.f32 %v121_v31, %v77_v27  ;;  %v127_v34 = vadd.f32 %v119_v32, %v67_v28  ;;  %5012 = vst [vmem:[#allocation5_spill] sm:$0xff] %v3438_v61  ;;  %v3440_v62 = vld [vmem:[#allocation2 + $0x1e] sm:$0xff]  ;;  %v3029_v61 = vld [vmem:[%s5002_s1 + $0xc8] sm:$0xff] }
  0x7a   :  { %5013 = vst [vmem:[#allocation6_spill] sm:$0xff] %v3440_v62 }
  0x7b   :  { %vm137_vm5 = vcmp.ge.f32.partialorder %v129_v33, 0.0  ;;  %v145_v35 = vmul.f32 0.2, %v129_v33  ;;  %vm135_vm6 = vcmp.ge.f32.partialorder %v127_v34, 0.0  ;;  %v143_v36 = vmul.f32 0.2, %v127_v34 }
  0x7c   :  { %v87_v37 = vpop.permute.xlu1 %86  ;;  %v72_v38 = vpop.permute.xlu0 %71 }
  0x7d   :  { %v153_v39 = vsel %vm137_vm5, %v129_v33, %v145_v35  ;;  %v151_v40 = vsel %vm135_vm6, %v127_v34, %v143_v36  ;;  %v111_v41 = vmul.f32 %v3239_v10, %v87_v37  ;;  %v108_v42 = vmul.f32 %v3239_v10, %v72_v38 }
  0x7e   :  { %162 = vst.msk [vmem:[#allocation2 + $0x13] sm:$0xff] %vm159_vm1, %v153_v39 }
  0x7f   :  { %160 = vst.msk [vmem:[#allocation2 + $0x3] sm:$0xff] %vm159_vm1, %v151_v40  ;;  %v123_v43 = vadd.f32 %v3415_v11, %v111_v41  ;;  %v120_v44 = vadd.f32 %v3415_v11, %v108_v42 }
  0x81   :  { %v131_v45 = vadd.f32 %v123_v43, %v87_v37  ;;  %v128_v46 = vadd.f32 %v120_v44, %v72_v38 }
  0x83   :  { %vm139_vm7 = vcmp.ge.f32.partialorder %v131_v45, 0.0  ;;  %v147_v47 = vmul.f32 0.2, %v131_v45  ;;  %vm136_vm8 = vcmp.ge.f32.partialorder %v128_v46, 0.0  ;;  %v144_v48 = vmul.f32 0.2, %v128_v46 }
  0x84   :  { %v102_v49 = vpop.permute.xlu1 %101  ;;  %v97_v50 = vpop.permute.xlu0 %96 }
  0x85   :  { %v155_v51 = vsel %vm139_vm7, %v131_v45, %v147_v47  ;;  %v152_v52 = vsel %vm136_vm8, %v128_v46, %v144_v48  ;;  %v114_v53 = vmul.f32 %v3239_v10, %v102_v49  ;;  %v113_v54 = vmul.f32 %v3239_v10, %v97_v50  ;;  %v3443_v0 = vld [vmem:[#allocation2 + $0x18] sm:$0xff] }
  0x86   :  { %177 = vst.msk [vmem:[#allocation2 + $0x2b] sm:$0xff] %vm159_vm1, %v155_v51  ;;  %v164_v55 = vld [vmem:[#allocation2 + $0x6] sm:$0x1]  ;;  %v167_v56 = vld [vmem:[#allocation2 + $0x5] sm:$0x1]  ;;  %v3445_v10 = vld [vmem:[#allocation2 + $0x19] sm:$0xff] }
  0x87   :  { %161 = vst.msk [vmem:[#allocation2 + $0xb] sm:$0xff] %vm159_vm1, %v152_v52  ;;  %v126_v57 = vadd.f32 %v3415_v11, %v114_v53  ;;  %v125_v58 = vadd.f32 %v3415_v11, %v113_v54  ;;  %v169_v63 = vld [vmem:[#allocation2 + $0x4] sm:$0x1]  ;;  %v3447_v12 = vld [vmem:[#allocation2 + $0x1a] sm:$0xff] }
  0x88   :  { %166 = vst.msk [vmem:[#allocation2] sm:$0x1] %vm165_vm3, %v164_v55  ;;  %v3450_v14 = vld [vmem:[#allocation2 + $0x14] sm:$0xff]  ;;  %v3478_v30 = vld [vmem:[#allocation2 + $0x3] sm:$0xff] }
  0x89   :  { %5014 = vst [vmem:[#allocation7_spill] sm:$0xff] %v3443_v0  ;;  %v134_v11 = vadd.f32 %v126_v57, %v102_v49  ;;  %v133_v13 = vadd.f32 %v125_v58, %v97_v50  ;;  %v3452_v15 = vld [vmem:[#allocation2 + $0x15] sm:$0xff] }
  0x8a   :  { %5015 = vst [vmem:[#allocation8_spill] sm:$0xff] %v3445_v10  ;;  %v3454_v16 = vld [vmem:[#allocation2 + $0x16] sm:$0xff] }
  0x8b   :  { %5016 = vst [vmem:[#allocation9_spill] sm:$0xff] %v3447_v12  ;;  %vm142_vm10 = vcmp.ge.f32.partialorder %v134_v11, 0.0  ;;  %v150_v17 = vmul.f32 0.2, %v134_v11  ;;  %vm141_vm11 = vcmp.ge.f32.partialorder %v133_v13, 0.0  ;;  %v3522_v50 = vld [vmem:[#allocation2 + $0x13] sm:$0xff] }
  0x8c   :  { %168 = vst.msk [vmem:[#allocation2 + $0x1] sm:$0x1] %vm165_vm3, %v167_v56  ;;  %v149_v18 = vmul.f32 0.2, %v133_v13  ;;  %v3529_v53 = vld [vmem:[#allocation2 + $0x33] sm:$0xff] }
  0x8d   :  { %170 = vst.msk [vmem:[#allocation2 + $0x2] sm:$0x1] %vm165_vm3, %v169_v63  ;;  %v181_v19 = vld [vmem:[#allocation2 + $0x2e] sm:$0x1]  ;;  %v183_v20 = vld [vmem:[#allocation2 + $0x2d] sm:$0x1]  ;;  %v158_v22 = vsel %vm142_vm10, %v134_v11, %v150_v17 }
  0x8e   :  { %589 = vst.msk [vmem:[#allocation2 + $0x1b] sm:$0xff] %vm585_vm9, %v3360_v4  ;;  %v185_v21 = vld [vmem:[#allocation2 + $0x2c] sm:$0x1]  ;;  %v157_v23 = vsel %vm141_vm11, %v133_v13, %v149_v18  ;;  %v3465_v4 = vld [vmem:[#allocation2 + $0x10] sm:$0xff]  ;;  %v3484_v33 = vld [vmem:[#allocation2 + $0x4] sm:$0xff] }
  0x8f   :  { %182 = vst.msk [vmem:[#allocation2 + $0x28] sm:$0x1] %vm165_vm3, %v181_v19  ;;  %v3463_v24 = vld [vmem:[#allocation2 + $0x8] sm:$0xff]  ;;  %v3469_v26 = vld [vmem:[#allocation2 + $0x11] sm:$0xff] }
  0x90   :  { %184 = vst.msk [vmem:[#allocation2 + $0x29] sm:$0x1] %vm165_vm3, %v183_v20  ;;  %v3467_v25 = vld [vmem:[#allocation2 + $0x9] sm:$0xff]  ;;  %v3480_v31 = vld [vmem:[#allocation2 + $0x12] sm:$0xff] }
  0x91   :  { %186 = vst.msk [vmem:[#allocation2 + $0x2a] sm:$0x1] %vm165_vm3, %v185_v21  ;;  %v3471_v27 = vld [vmem:[#allocation2 + $0xa] sm:$0xff]  ;;  %v3498_v40 = vld [vmem:[#allocation2 + $0x32] sm:$0xff] }
  0x92   :  { %180 = vst.msk [vmem:[#allocation2 + $0x43] sm:$0xff] %vm159_vm1, %v158_v22  ;;  %v3482_v32 = vld [vmem:[#allocation2 + $0xb] sm:$0xff] }
  0x93   :  { %5017 = vst [vmem:[#allocation10_spill] sm:$0xff] %v3463_v24  ;;  %v3486_v34 = vld [vmem:[#allocation2 + $0xc] sm:$0xff] }
  0x94   :  { %5018 = vst [vmem:[#allocation11_spill] sm:$0xff] %v3465_v4  ;;  %v3474_v28 = vld [vmem:[#allocation2] sm:$0xff]  ;;  %v3490_v36 = vld [vmem:[#allocation2 + $0xd] sm:$0xff] }
  0x95   :  { %179 = vst.msk [vmem:[#allocation2 + $0x3b] sm:$0xff] %vm159_vm1, %v157_v23  ;;  %v3476_v29 = vld [vmem:[#allocation2 + $0x1] sm:$0xff]  ;;  %v3494_v38 = vld [vmem:[#allocation2 + $0x30] sm:$0xff] }
  0x96   :  { %5019 = vst [vmem:[#allocation12_spill] sm:$0xff] %v3474_v28  ;;  %v3488_v35 = vld [vmem:[#allocation2 + $0x5] sm:$0xff]  ;;  %v3496_v39 = vld [vmem:[#allocation2 + $0x31] sm:$0xff] }
  0x97   :  { %v3492_v37 = vld [vmem:[#allocation2 + $0x2] sm:$0xff]  ;;  %v3500_v41 = vld [vmem:[#allocation2 + $0x2b] sm:$0xff]  ;;  %v3031_v28 = vld [vmem:[%s5002_s1 + $0xd8] sm:$0xff] }
  0x98   :  { %v3502_v42 = vld [vmem:[#allocation2 + $0x6] sm:$0xff]  ;;  %v3504_v43 = vld [vmem:[#allocation2 + $0xe] sm:$0xff]  ;;  %957 = vmatpush.msra.mxu1 %v3031_v28  ;;  %3162 = vmatpush.msra.mxu3 %v3031_v28 }
  0x99   :  { %v3506_v44 = vld [vmem:[#allocation2 + $0x2c] sm:$0xff]  ;;  %586 = vst.msk [vmem:[#allocation2 + $0x3] sm:$0xff] %vm585_vm9, %v3349_v2  ;;  %v187_v51 = vld [vmem:[#allocation2 + $0x49] sm:$0x1]  ;;  %v189_v52 = vld [vmem:[#allocation2 + $0x48] sm:$0x1] }
  0x9a   :  { %v3508_v45 = vld [vmem:[#allocation2 + $0x2d] sm:$0xff]  ;;  %587 = vst.msk [vmem:[#allocation2 + $0xb] sm:$0xff] %vm585_vm9, %v3377_v6  ;;  %v191_v2 = vld [vmem:[#allocation2 + $0x47] sm:$0x1] }
  0x9b   :  { %v3510_v46 = vld [vmem:[#allocation2 + $0x2e] sm:$0xff]  ;;  %588 = vst.msk [vmem:[#allocation2 + $0x13] sm:$0xff] %vm585_vm9, %v3344_v1  ;;  %v3552_v19 = vld [vmem:[#allocation2 + $0x43] sm:$0xff] }
  0x9c   :  { %v3514_v47 = vld [vmem:[#allocation2 + $0x28] sm:$0xff]  ;;  %188 = vst.msk [vmem:[#allocation2 + $0x4b] sm:$0x1] %vm165_vm3, %v187_v51  ;;  %v3533_v6 = vld [vmem:[#allocation2 + $0x38] sm:$0xff]  ;;  %v3549_v13 = vld [vmem:[#allocation2 + $0x40] sm:$0xff] }
  0x9d   :  { %v3516_v48 = vld [vmem:[#allocation2 + $0x29] sm:$0xff]  ;;  %190 = vst.msk [vmem:[#allocation2 + $0x4c] sm:$0x1] %vm165_vm3, %v189_v52  ;;  %v3535_v54 = vld [vmem:[#allocation2 + $0x39] sm:$0xff]  ;;  %v3554_v20 = vld [vmem:[#allocation2 + $0x41] sm:$0xff] }
  0x9e   :  { %v3518_v49 = vld [vmem:[#allocation2 + $0x2a] sm:$0xff]  ;;  %192 = vst.msk [vmem:[#allocation2 + $0x4d] sm:$0x1] %vm165_vm3, %v191_v2  ;;  %v3537_v55 = vld [vmem:[#allocation2 + $0x3a] sm:$0xff] }
  0x9f   :  { %602 = vst.msk [vmem:[#allocation2 + $0x2b] sm:$0xff] %vm585_vm9, %v3372_v5  ;;  %v3539_v5 = vld [vmem:[#allocation2 + $0x34] sm:$0xff]  ;;  %v3563_v22 = vld [vmem:[#allocation2 + $0x3c] sm:$0xff] }
  0xa0   :  { %v3541_v56 = vld [vmem:[#allocation2 + $0x35] sm:$0xff]  ;;  %v3565_v23 = vld [vmem:[#allocation2 + $0x3d] sm:$0xff]  ;;  %v592_v0 = vld [vmem:[#allocation2 + $0x5] sm:$0x1] }
  0xa1   :  { %v3543_v1 = vld [vmem:[#allocation2 + $0x36] sm:$0xff]  ;;  %v631_v57 = vld [vmem:[#allocation2 + $0xb] sm:$0xff]  ;;  %v3567_v51 = vld [vmem:[#allocation2 + $0x3e] sm:$0xff]  ;;  %593 = vst.msk [vmem:[#allocation2 + $0x1] sm:$0x1] %vm165_vm3, %v592_v0 }
  0xa2   :  { %603 = vst.msk [vmem:[#allocation2 + $0x33] sm:$0xff] %vm585_vm9, %v3386_v7  ;;  %684 = vrot.lane.b32.xlu1 %v631_v57, %s3283_s0  ;;  %v639_v17 = vld [vmem:[#allocation2 + $0xd] sm:$0xff]  ;;  %v3556_v7 = vld [vmem:[#allocation2 + $0x42] sm:$0xff]  ;;  %v625_v0 = vld [vmem:[#allocation2 + $0x19] sm:$0xff] }
  0xa3   :  { %v635_v18 = vld [vmem:[#allocation2 + $0xc] sm:$0xff]  ;;  %v3558_v21 = vld [vmem:[#allocation2 + $0x3b] sm:$0xff]  ;;  %716 = vrot.lane.b32.xlu0 %v639_v17, %s3284_s5  ;;  %v3569_v52 = vld [vmem:[#allocation2 + $0x44] sm:$0xff] }
  0xa4   :  { %700 = vrot.lane.b32.xlu2 %v635_v18, %s3285_s6  ;;  %v3571_v2 = vld [vmem:[#allocation2 + $0x45] sm:$0xff]  ;;  %604 = vst.msk [vmem:[#allocation2 + $0x3b] sm:$0xff] %vm585_vm9, %v3405_v9  ;;  %v632_v17 = vld [vmem:[#allocation2 + $0x13] sm:$0xff]  ;;  %v594_v9 = vld [vmem:[#allocation2 + $0x4] sm:$0x1] }
  0xa5   :  { %v3573_v57 = vld [vmem:[#allocation2 + $0x46] sm:$0xff]  ;;  %595 = vst.msk [vmem:[#allocation2 + $0x2] sm:$0x1] %vm165_vm3, %v594_v9  ;;  %v636_v4 = vld [vmem:[#allocation2 + $0x14] sm:$0xff]  ;;  %v596_v9 = vld [vmem:[#allocation2 + $0x21] sm:$0x1] }
  0xa6   :  { %v606_v58 = vld [vmem:[#allocation2 + $0x2e] sm:$0x1]  ;;  %v608_v63 = vld [vmem:[#allocation2 + $0x2d] sm:$0x1]  ;;  %v610_v11 = vld [vmem:[#allocation2 + $0x2c] sm:$0x1] }
  0xa7   :  { %607 = vst.msk [vmem:[#allocation2 + $0x28] sm:$0x1] %vm165_vm3, %v606_v58  ;;  %v643_v58 = vld [vmem:[#allocation2 + $0xe] sm:$0xff]  ;;  %v638_v18 = vld [vmem:[#allocation2 + $0x5] sm:$0xff] }
  0xa8   :  { %609 = vst.msk [vmem:[#allocation2 + $0x29] sm:$0x1] %vm165_vm3, %v608_v63  ;;  %v628_v63 = vld [vmem:[#allocation2 + $0x12] sm:$0xff]  ;;  %v634_v3 = vld [vmem:[#allocation2 + $0x4] sm:$0xff] }
  0xa9   :  { %611 = vst.msk [vmem:[#allocation2 + $0x2a] sm:$0x1] %vm165_vm3, %v610_v11  ;;  %v624_v11 = vld [vmem:[#allocation2 + $0x11] sm:$0xff]  ;;  %v590_v24 = vld [vmem:[#allocation2 + $0x6] sm:$0x1] }
  0xaa   :  { %605 = vst.msk [vmem:[#allocation2 + $0x43] sm:$0xff] %vm585_vm9, %v3400_v8  ;;  %732 = vrot.lane.b32.xlu1 %v643_v58, %s3286_s29  ;;  %v630_v8 = vld [vmem:[#allocation2 + $0x3] sm:$0xff] }
  0xab   :  { %670 = vrot.lane.b32.xlu0 %v628_v63, %s3287_s30  ;;  %v627_v58 = vld [vmem:[#allocation2 + $0xa] sm:$0xff]  ;;  %597 = vst.msk [vmem:[#allocation2 + $0x23] sm:$0x1] %vm165_vm3, %v596_v9 }
  0xac   :  { %654 = vrot.lane.b32.xlu2 %v624_v11, %s3288_s10  ;;  %v623_v63 = vld [vmem:[#allocation2 + $0x9] sm:$0xff]  ;;  %591 = vst.msk [vmem:[#allocation2] sm:$0x1] %vm165_vm3, %v590_v24 }
  0xad   :  { %v642_v11 = vld [vmem:[#allocation2 + $0x6] sm:$0xff]  ;;  %v790_v9 = vld [vmem:[#allocation2 + $0x2e] sm:$0xff] }
  0xb2   :  { %686 = vrot.lane.b32.xlu1 %v632_v17, %s3283_s0  ;;  %v640_v17 = vld [vmem:[#allocation2 + $0x15] sm:$0xff] }
  0xb3   :  { %714 = vrot.lane.b32.xlu0 %v638_v18, %s3284_s5  ;;  %v629_v18 = vld [vmem:[#allocation2 + $0x1a] sm:$0xff] }
  0xb4   :  { %698 = vrot.lane.b32.xlu2 %v634_v3, %s3285_s6  ;;  %v644_v3 = vld [vmem:[#allocation2 + $0x16] sm:$0xff] }
  0xba   :  { %682 = vrot.lane.b32.xlu1 %v630_v8, %s3283_s0  ;;  %v633_v8 = vld [vmem:[#allocation2 + $0x1b] sm:$0xff] }
  0xbb   :  { %668 = vrot.lane.b32.xlu0 %v627_v58, %s3287_s30  ;;  %v778_v58 = vld [vmem:[#allocation2 + $0x2b] sm:$0xff] }
  0xbc   :  { %652 = vrot.lane.b32.xlu2 %v623_v63, %s3288_s10  ;;  %v782_v63 = vld [vmem:[#allocation2 + $0x2c] sm:$0xff] }
  0xc2   :  { %730 = vrot.lane.b32.xlu1 %v642_v11, %s3286_s29  ;;  %v598_v11 = vld [vmem:[#allocation2 + $0x20] sm:$0x1] }
  0xc3   :  { %718 = vrot.lane.b32.xlu0 %v640_v17, %s3284_s5  ;;  %599 = vst.msk [vmem:[#allocation2 + $0x24] sm:$0x1] %vm165_vm3, %v598_v11  ;;  %v786_v17 = vld [vmem:[#allocation2 + $0x2d] sm:$0xff] }
  0xc4   :  { %702 = vrot.lane.b32.xlu2 %v636_v4, %s3285_s6  ;;  %v600_v4 = vld [vmem:[#allocation2 + $0x1f] sm:$0x1]  ;;  %v783_v11 = vld [vmem:[#allocation2 + $0x34] sm:$0xff] }
  0xc5   :  { %601 = vst.msk [vmem:[#allocation2 + $0x25] sm:$0x1] %vm165_vm3, %v600_v4  ;;  %v791_v4 = vld [vmem:[#allocation2 + $0x36] sm:$0xff] }
  0xca   :  { %734 = vrot.lane.b32.xlu1 %v644_v3, %s3286_s29  ;;  %v626_v3 = vld [vmem:[#allocation2 + $0x2] sm:$0xff] }
  0xcb   :  { %656 = vrot.lane.b32.xlu0 %v625_v0, %s3288_s10  ;;  %v622_v0 = vld [vmem:[#allocation2 + $0x1] sm:$0xff] }
  0xcc   :  { %672 = vrot.lane.b32.xlu2 %v629_v18, %s3287_s30  ;;  %v779_v18 = vld [vmem:[#allocation2 + $0x33] sm:$0xff] }
  0xd2   :  { %688 = vrot.lane.b32.xlu1 %v633_v8, %s3283_s0  ;;  %v771_v8 = vld [vmem:[#allocation2 + $0x31] sm:$0xff] }
  0xd3   :  { %830 = vrot.lane.b32.xlu0 %v778_v58, %s3283_s0  ;;  %v774_v58 = vld [vmem:[#allocation2 + $0x2a] sm:$0xff] }
  0xd4   :  { %846 = vrot.lane.b32.xlu2 %v782_v63, %s3285_s6  ;;  %v775_v63 = vld [vmem:[#allocation2 + $0x32] sm:$0xff] }
  0xda   :  { %862 = vrot.lane.b32.xlu1 %v786_v17, %s3284_s5  ;;  %v637_v17 = vld [vmem:[#allocation2 + $0x1c] sm:$0xff] }
  0xdb   :  { %666 = vrot.lane.b32.xlu0 %v626_v3, %s3287_s30  ;;  %v770_v3 = vld [vmem:[#allocation2 + $0x29] sm:$0xff] }
  0xdc   :  { %650 = vrot.lane.b32.xlu2 %v622_v0, %s3288_s10  ;;  %v612_v0 = vld [vmem:[#allocation2 + $0x49] sm:$0x1] }
  0xdd   :  { %613 = vst.msk [vmem:[#allocation2 + $0x4b] sm:$0x1] %vm165_vm3, %v612_v0  ;;  %v772_v0 = vld [vmem:[#allocation2 + $0x39] sm:$0xff] }
  0xe2   :  { %832 = vrot.lane.b32.xlu1 %v779_v18, %s3283_s0  ;;  %v614_v18 = vld [vmem:[#allocation2 + $0x48] sm:$0x1] }
  0xe3   :  { %878 = vrot.lane.b32.xlu0 %v790_v9, %s3286_s29  ;;  %v616_v9 = vld [vmem:[#allocation2 + $0x47] sm:$0x1]  ;;  %615 = vst.msk [vmem:[#allocation2 + $0x4c] sm:$0x1] %vm165_vm3, %v614_v18 }
  0xe4   :  { %800 = vrot.lane.b32.xlu2 %v771_v8, %s3288_s10  ;;  %617 = vst.msk [vmem:[#allocation2 + $0x4d] sm:$0x1] %vm165_vm3, %v616_v9  ;;  %v645_v8 = vld [vmem:[#allocation2 + $0x1e] sm:$0xff] }
  0xe5   :  { %v792_v9 = vld [vmem:[#allocation2 + $0x3e] sm:$0xff] }
  0xea   :  { %814 = vrot.lane.b32.xlu1 %v774_v58, %s3287_s30  ;;  %v787_v58 = vld [vmem:[#allocation2 + $0x35] sm:$0xff] }
  0xeb   :  { %816 = vrot.lane.b32.xlu0 %v775_v63, %s3287_s30  ;;  %v641_v63 = vld [vmem:[#allocation2 + $0x1d] sm:$0xff] }
  0xec   :  { %848 = vrot.lane.b32.xlu2 %v783_v11, %s3285_s6 }
  0xf2   :  { %880 = vrot.lane.b32.xlu1 %v791_v4, %s3286_s29  ;;  %v780_v4 = vld [vmem:[#allocation2 + $0x3b] sm:$0xff] }
  0xf3   :  { %704 = vrot.lane.b32.xlu0 %v637_v17, %s3285_s6  ;;  %v5020_v17 = vmov 0.0  }
  0xf4   :  { %798 = vrot.lane.b32.xlu2 %v770_v3, %s3288_s10  ;;  %45 = vst.msk [vmem:[#allocation3] sm:$0xff] %vm44_vm12, %v5020_v17  ;;  %v776_v3 = vld [vmem:[#allocation2 + $0x3a] sm:$0xff] }
  0xf5   :  { %46 = vst.msk [vmem:[#allocation3 + $0x8] sm:$0xff] %vm44_vm12, %v5020_v17 }
  0xf6   :  { %47 = vst.msk [vmem:[#allocation3 + $0x10] sm:$0xff] %vm44_vm12, %v5020_v17 }
  0xf7   :  { %48 = vst.msk [vmem:[#allocation3 + $0x18] sm:$0xff] %vm44_vm12, %v5020_v17 }
  0xf8   :  { %49 = vst.msk [vmem:[#allocation3 + $0x20] sm:$0xff] %vm44_vm12, %v5020_v17 }
  0xf9   :  { %50 = vst.msk [vmem:[#allocation3 + $0x28] sm:$0xff] %vm44_vm12, %v5020_v17 }
  0xfa   :  { %736 = vrot.lane.b32.xlu1 %v645_v8, %s3286_s29  ;;  %51 = vst.msk [vmem:[#allocation3 + $0x30] sm:$0xff] %vm44_vm12, %v5020_v17  ;;  %v788_v8 = vld [vmem:[#allocation2 + $0x3d] sm:$0xff] }
  0xfb   :  { %864 = vrot.lane.b32.xlu0 %v787_v58, %s3284_s5  ;;  %52 = vst.msk [vmem:[#allocation3 + $0x38] sm:$0xff] %vm44_vm12, %v5020_v17  ;;  %v784_v58 = vld [vmem:[#allocation2 + $0x3c] sm:$0xff] }
  0xfc   :  { %720 = vrot.lane.b32.xlu2 %v641_v63, %s3284_s5  ;;  %53 = vst.msk [vmem:[#allocation3 + $0x40] sm:$0xff] %vm44_vm12, %v5020_v17 }
  0xfd   :  { %54 = vst.msk [vmem:[#allocation3 + $0x48] sm:$0xff] %vm44_vm12, %v5020_v17 }
  0xfe   :  { %v3620_v11 = vpop.permute.xlu2 %700 }
 0x102   :  { %834 = vrot.lane.b32.xlu1 %v780_v4, %s3283_s0  ;;  %v781_v4 = vld [vmem:[#allocation2 + $0x43] sm:$0xff] }
 0x103   :  { %818 = vrot.lane.b32.xlu0 %v776_v3, %s3287_s30  ;;  %v777_v3 = vld [vmem:[#allocation2 + $0x42] sm:$0xff] }
 0x104   :  { %802 = vrot.lane.b32.xlu2 %v772_v0, %s3288_s10  ;;  %v773_v0 = vld [vmem:[#allocation2 + $0x41] sm:$0xff] }
 0x106   :  { %v3639_v18 = vpop.permute.xlu2 %654 }
 0x10a   :  { %882 = vrot.lane.b32.xlu1 %v792_v9, %s3286_s29 }
 0x10b   :  { %866 = vrot.lane.b32.xlu0 %v788_v8, %s3284_s5 }
 0x10c   :  { %850 = vrot.lane.b32.xlu2 %v784_v58, %s3285_s6  ;;  %v793_v58 = vld [vmem:[#allocation2 + $0x46] sm:$0xff] }
 0x10e   :  { %v3650_v63 = vpop.permute.xlu2 %698 }
 0x112   :  { %836 = vrot.lane.b32.xlu1 %v781_v4, %s3283_s0  ;;  %v3030_v4 = vld [vmem:[%s5002_s1 + $0xd0] sm:$0xff] }
 0x113   :  { %820 = vrot.lane.b32.xlu0 %v777_v3, %s3287_s30  ;;  %v789_v3 = vld [vmem:[#allocation2 + $0x45] sm:$0xff]  ;;  %958 = vmatpush.msra.mxu1 %v3030_v4 }
 0x114   :  { %804 = vrot.lane.b32.xlu2 %v773_v0, %s3288_s10  ;;  %v3655_v17 = vpop.permute.xlu1 %684  ;;  %v785_v0 = vld [vmem:[#allocation2 + $0x44] sm:$0xff]  ;;  %3163 = vmatpush.msra.mxu3 %v3030_v4  ;;  %v3027_v4 = vld [vmem:[%s5002_s1 + $0xb8] sm:$0xff] }
 0x115   :  { %v3660_v8 = vpop.permute.xlu0 %716  ;;  %959 = vmatpush.msra.mxu1 %v3029_v61 }
 0x116   :  { %v3658_v9 = vpop.permute.xlu2 %652  ;;  %3164 = vmatpush.msra.mxu3 %v3029_v61 }
 0x11a   :  { %884 = vrot.lane.b32.xlu1 %v793_v58, %s3286_s29  ;;  %v3028_v58 = vld [vmem:[%s5002_s1 + $0xc0] sm:$0xff] }
 0x11b   :  { %868 = vrot.lane.b32.xlu0 %v789_v3, %s3284_s5  ;;  %960 = vmatpush.msra.mxu1 %v3028_v58  ;;  %v3026_v3 = vld [vmem:[%s5002_s1 + $0xb0] sm:$0xff] }
 0x11c   :  { %852 = vrot.lane.b32.xlu2 %v785_v0, %s3285_s6  ;;  %v3671_v24 = vpop.permute.xlu1 %732  ;;  %3165 = vmatpush.msra.mxu3 %v3028_v58  ;;  %v3025_v0 = vld [vmem:[%s5002_s1 + $0xa8] sm:$0xff] }
 0x11d   :  { %v3678_v28 = vpop.permute.xlu0 %670  ;;  %961 = vmatpush.msra.mxu1 %v3027_v4 }
 0x11e   :  { %v3676_v60 = vpop.permute.xlu2 %702  ;;  %3166 = vmatpush.msra.mxu3 %v3027_v4 }
 0x11f   :  { %962 = vmatpush.msra.mxu1 %v3026_v3 }
 0x120   :  { %3167 = vmatpush.msra.mxu3 %v3026_v3 }
 0x121   :  { %963 = vmatpush.msra.mxu1 %v3025_v0 }
 0x122   :  { %411 = vrot.lane.b32.xlu1 %v3500_v41, %s3283_s0  ;;  %3168 = vmatpush.msra.mxu3 %v3025_v0  ;;  %v3024_v41 = vld [vmem:[%s5002_s1 + $0xa0] sm:$0xff]  ;;  %v3021_v0 = vld [vmem:[%s5002_s1 + $0x88] sm:$0xff] }
 0x123   :  { %395 = vrot.lane.b32.xlu0 %v3518_v49, %s3287_s30  ;;  %964 = vmatpush.msra.mxu1 %v3024_v41  ;;  %v3022_v49 = vld [vmem:[%s5002_s1 + $0x90] sm:$0xff] }
 0x124   :  { %379 = vrot.lane.b32.xlu2 %v3516_v48, %s3288_s10  ;;  %v3695_v61 = vpop.permute.xlu1 %686  ;;  %v3023_v48 = vld [vmem:[%s5002_s1 + $0x98] sm:$0xff]  ;;  %3169 = vmatpush.msra.mxu3 %v3024_v41 }
 0x125   :  { %v3702_v4 = vpop.permute.xlu0 %714  ;;  %965 = vmatpush.msra.mxu1 %v3023_v48 }
 0x126   :  { %v3700_v58 = vpop.permute.xlu2 %672  ;;  %3170 = vmatpush.msra.mxu3 %v3023_v48 }
 0x127   :  { %966 = vmatpush.msra.mxu1 %v3022_v49 }
 0x128   :  { %3171 = vmatpush.msra.mxu3 %v3022_v49 }
 0x129   :  { %967 = vmatpush.msra.mxu1 %v3021_v0 }
 0x12a   :  { %459 = vrot.lane.b32.xlu1 %v3510_v46, %s3286_s29  ;;  %3172 = vmatpush.msra.mxu3 %v3021_v0  ;;  %v3020_v46 = vld [vmem:[%s5002_s1 + $0x80] sm:$0xff] }
 0x12b   :  { %443 = vrot.lane.b32.xlu0 %v3508_v45, %s3284_s5  ;;  %968 = vmatpush.msra.mxu1 %v3020_v46  ;;  %v3018_v45 = vld [vmem:[%s5002_s1 + $0x70] sm:$0xff] }
 0x12c   :  { %427 = vrot.lane.b32.xlu2 %v3506_v44, %s3285_s6  ;;  %v683_v3 = vpop.permute.xlu1 %682  ;;  %3173 = vmatpush.msra.mxu3 %v3020_v46  ;;  %v3019_v44 = vld [vmem:[%s5002_s1 + $0x78] sm:$0xff] }
 0x12d   :  { %v669_v48 = vpop.permute.xlu0 %668  ;;  %969 = vmatpush.msra.mxu1 %v3019_v44 }
 0x12e   :  { %v3722_v41 = vpop.permute.xlu2 %846  ;;  %3174 = vmatpush.msra.mxu3 %v3019_v44 }
 0x12f   :  { %970 = vmatpush.msra.mxu1 %v3018_v45 }
 0x130   :  { %3175 = vmatpush.msra.mxu3 %v3018_v45  ;;  %v619_v45 = vld [vmem:[#allocation2 + $0x8] sm:$0xff] }
 0x131   :  { %v743_v12 = vsel %vm33_vm0, %v619_v45, %v3658_v9 }
 0x132   :  { %413 = vrot.lane.b32.xlu1 %v3529_v53, %s3283_s0 }
 0x133   :  { %397 = vrot.lane.b32.xlu0 %v3498_v40, %s3287_s30 }
 0x134   :  { %381 = vrot.lane.b32.xlu2 %v3496_v39, %s3288_s10  ;;  %v731_v49 = vpop.permute.xlu1 %730 }
 0x135   :  { %v3739_v46 = vpop.permute.xlu0 %718 }
 0x136   :  { %v651_v0 = vpop.permute.xlu2 %650 }
 0x13a   :  { %461 = vrot.lane.b32.xlu1 %v3543_v1, %s3286_s29  ;;  %v618_v1 = vld [vmem:[#allocation2] sm:$0xff] }
 0x13b   :  { %445 = vrot.lane.b32.xlu0 %v3541_v56, %s3284_s5 }
 0x13c   :  { %429 = vrot.lane.b32.xlu2 %v3539_v5, %s3285_s6  ;;  %v3747_v53 = vpop.permute.xlu1 %734 }
 0x13d   :  { %v3751_v40 = vpop.permute.xlu0 %656 }
 0x13e   :  { %v3749_v44 = vpop.permute.xlu2 %800 }
 0x142   :  { %415 = vrot.lane.b32.xlu1 %v3558_v21, %s3283_s0  ;;  %v742_v21 = vsel %vm33_vm0, %v618_v1, %v651_v0 }
 0x143   :  { %399 = vrot.lane.b32.xlu0 %v3537_v55, %s3287_s30 }
 0x144   :  { %383 = vrot.lane.b32.xlu2 %v3535_v54, %s3288_s10  ;;  %v3759_v39 = vpop.permute.xlu1 %688 }
 0x145   :  { %v831_v5 = vpop.permute.xlu0 %830 }
 0x146   :  { %v3761_v56 = vpop.permute.xlu2 %848 }
 0x14a   :  { %463 = vrot.lane.b32.xlu1 %v3567_v51, %s3286_s29  ;;  %v747_v51 = vsel %vm44_vm12, %v743_v12, %v669_v48  ;;  %v620_v48 = vld [vmem:[#allocation2 + $0x10] sm:$0xff] }
 0x14b   :  { %447 = vrot.lane.b32.xlu0 %v3565_v23, %s3284_s5 }
 0x14c   :  { %431 = vrot.lane.b32.xlu2 %v3563_v22, %s3285_s6  ;;  %v863_v55 = vpop.permute.xlu1 %862 }
 0x14d   :  { %v667_v62 = vpop.permute.xlu0 %666 }
 0x14e   :  { %v799_v54 = vpop.permute.xlu2 %798  ;;  %v746_v10 = vsel %vm44_vm12, %v742_v21, %v667_v62  ;;  %v751_v62 = vsel %vm327_vm13, %v747_v51, %v3655_v17 }
 0x14f   :  { %v750_v23 = vsel %vm327_vm13, %v746_v10, %v683_v3  ;;  %v755_v3 = vsel %vm332_vm14, %v751_v62, %v3620_v11  ;;  %v744_v11 = vsel %vm33_vm0, %v620_v48, %v3639_v18  ;;  %v621_v18 = vld [vmem:[#allocation2 + $0x18] sm:$0xff] }
 0x150   :  { %v754_v22 = vsel %vm332_vm14, %v750_v23, %v3650_v63  ;;  %v759_v17 = vsel %vm337_vm15, %v755_v3, %v3660_v8  ;;  %v504_v3 = vld [vmem:[%s5002_s1 + $0x48] sm:$0xff] }
 0x151   :  { %v758_v9 = vsel %vm337_vm15, %v754_v22, %v3702_v4  ;;  %v766_v4 = vld [vmem:[#allocation2 + $0x28] sm:$0xff] }
 0x152   :  { %417 = vrot.lane.b32.xlu1 %v3552_v19, %s3283_s0  ;;  %v762_v12 = vsel %vm342_vm2, %v758_v9, %v731_v49  ;;  %v890_v49 = vsel %vm33_vm0, %v766_v4, %v799_v54  ;;  %v508_v54 = vld [vmem:[%s5002_s1 + $0x68] sm:$0xff] }
 0x153   :  { %401 = vrot.lane.b32.xlu0 %v3556_v7, %s3287_s30  ;;  %3032 = vmatmul.msk.f32.vlgmr.msra.gmra.mxu1 %vm511_vm4, %v762_v12 }
 0x154   :  { %385 = vrot.lane.b32.xlu2 %v3554_v20, %s3288_s10  ;;  %v833_v10 = vpop.permute.xlu1 %832  ;;  %v763_v20 = vsel %vm342_vm2, %v759_v17, %v3671_v24  ;;  %3148 = vmatpush.msra.mxu2 %v508_v54 }
 0x155   :  { %v879_v63 = vpop.permute.xlu0 %878  ;;  %538 = vmatpush.msra.mxu0 %v508_v54 }
 0x156   :  { %v721_v19 = vpop.permute.xlu2 %720 }
 0x15a   :  { %465 = vrot.lane.b32.xlu1 %v3573_v57, %s3286_s29  ;;  %v748_v57 = vsel %vm44_vm12, %v744_v11, %v3678_v28 }
 0x15b   :  { %449 = vrot.lane.b32.xlu0 %v3571_v2, %s3284_s5  ;;  %3033 = vmatmul.msk.f32.gmra.mxu1 %vm511_vm4, %v763_v20  ;;  %v502_v20 = vld [vmem:[%s5002_s1 + $0x38] sm:$0xff] }
 0x15c   :  { %433 = vrot.lane.b32.xlu2 %v3569_v52, %s3285_s6  ;;  %v815_v7 = vpop.permute.xlu1 %814  ;;  %v752_v52 = vsel %vm327_vm13, %v748_v57, %v3695_v61 }
 0x15d   :  { %v894_v8 = vsel %vm44_vm12, %v890_v49, %v815_v7  ;;  %v817_v2 = vpop.permute.xlu0 %816  ;;  %v756_v28 = vsel %vm332_vm14, %v752_v52, %v3676_v60  ;;  %v768_v7 = vld [vmem:[#allocation2 + $0x38] sm:$0xff] }
 0x15e   :  { %v898_v0 = vsel %vm327_vm13, %v894_v8, %v831_v5  ;;  %v803_v1 = vpop.permute.xlu2 %802  ;;  %v760_v61 = vsel %vm337_vm15, %v756_v28, %v3739_v46  ;;  %v745_v5 = vsel %vm33_vm0, %v621_v18, %v3751_v40  ;;  %v507_v40 = vld [vmem:[%s5002_s1 + $0x60] sm:$0xff]  ;;  %v497_v18 = vld [vmem:[%s5002_s1 + $0x10] sm:$0xff]  ;;  %v496_v28 = vld [vmem:[%s5002_s1 + $0x8] sm:$0xff] }
 0x15f   :  { %v902_v24 = vsel %vm332_vm14, %v898_v0, %v3722_v41  ;;  %v767_v41 = vld [vmem:[#allocation2 + $0x30] sm:$0xff]  ;;  %v749_v22 = vsel %vm44_vm12, %v745_v5, %v3700_v58  ;;  %3149 = vmatpush.msra.mxu2 %v507_v40  ;;  %539 = vmatpush.msra.mxu0 %v507_v40  ;;  %v892_v8 = vsel %vm33_vm0, %v768_v7, %v803_v1  ;;  %v500_v0 = vld [vmem:[%s5002_s1 + $0x28] sm:$0xff]  ;;  %v498_v1 = vld [vmem:[%s5002_s1 + $0x18] sm:$0xff] }
 0x160   :  { %v906_v45 = vsel %vm337_vm15, %v902_v24, %v863_v55  ;;  %v764_v55 = vsel %vm342_vm2, %v760_v61, %v3747_v53  ;;  %v891_v60 = vsel %vm33_vm0, %v767_v41, %v3749_v44  ;;  %v753_v46 = vsel %vm327_vm13, %v749_v22, %v3759_v39  ;;  %v506_v53 = vld [vmem:[%s5002_s1 + $0x58] sm:$0xff]  ;;  %v505_v58 = vld [vmem:[%s5002_s1 + $0x50] sm:$0xff]  ;;  %v499_v24 = vld [vmem:[%s5002_s1 + $0x20] sm:$0xff] }
 0x161   :  { %v910_v21 = vsel %vm342_vm2, %v906_v45, %v879_v63  ;;  %v895_v9 = vsel %vm44_vm12, %v891_v60, %v817_v2  ;;  %3150 = vmatpush.msra.mxu2 %v506_v53  ;;  %540 = vmatpush.msra.mxu0 %v506_v53 }
 0x162   :  { %3036 = vmatmul.msk.f32.vlgmr.msra.gmra.mxu3 %vm511_vm4, %v910_v21  ;;  %v899_v44 = vsel %vm327_vm13, %v895_v9, %v833_v10 }
 0x163   :  { %3034 = vmatmul.msk.f32.gmra.mxu1 %vm511_vm4, %v764_v55  ;;  %3151 = vmatpush.msra.mxu2 %v505_v58  ;;  %v903_v17 = vsel %vm332_vm14, %v899_v44, %v3761_v56  ;;  %v501_v56 = vld [vmem:[%s5002_s1 + $0x30] sm:$0xff]  ;;  %v495_v55 = vld [vmem:[%s5002_s1] sm:$0xff] }
 0x164   :  { %v881_v51 = vpop.permute.xlu1 %880  ;;  %541 = vmatpush.msra.mxu0 %v505_v58 }
 0x165   :  { %v705_v23 = vpop.permute.xlu0 %704  ;;  %3152 = vmatpush.msra.mxu2 %v504_v3 }
 0x166   :  { %v851_v62 = vpop.permute.xlu2 %850  ;;  %v757_v12 = vsel %vm332_vm14, %v753_v46, %v705_v23  ;;  %542 = vmatpush.msra.mxu0 %v504_v3  ;;  %v769_v46 = vld [vmem:[#allocation2 + $0x40] sm:$0xff] }
 0x167   :  { %v761_v63 = vsel %vm337_vm15, %v757_v12, %v721_v19  ;;  %v503_v19 = vld [vmem:[%s5002_s1 + $0x40] sm:$0xff] }
 0x168   :  { %3153 = vmatpush.msra.mxu2 %v503_v19  ;;  %543 = vmatpush.msra.mxu0 %v503_v19 }
 0x16a   :  { %3154 = vmatpush.msra.mxu2 %v502_v20  ;;  %544 = vmatpush.msra.mxu0 %v502_v20 }
 0x16c   :  { %v737_v39 = vpop.permute.xlu1 %736  ;;  %3155 = vmatpush.msra.mxu2 %v501_v56  ;;  %545 = vmatpush.msra.mxu0 %v501_v56 }
 0x16d   :  { %v765_v4 = vsel %vm342_vm2, %v761_v63, %v737_v39  ;;  %v865_v48 = vpop.permute.xlu0 %864 }
 0x16e   :  { %3035 = vmatmul.msk.f32.gmra.mxu1 %vm511_vm4, %v765_v4  ;;  %v907_v10 = vsel %vm337_vm15, %v903_v17, %v865_v48  ;;  %v805_v11 = vpop.permute.xlu2 %804  ;;  %3156 = vmatpush.msra.mxu2 %v500_v0 }
 0x16f   :  { %v911_v49 = vsel %vm342_vm2, %v907_v10, %v881_v51  ;;  %546 = vmatpush.msra.mxu0 %v500_v0  ;;  %v893_v40 = vsel %vm33_vm0, %v769_v46, %v805_v11 }
 0x170   :  { %3037 = vmatmul.msk.f32.gmra.mxu3 %vm511_vm4, %v911_v49  ;;  %3157 = vmatpush.msra.mxu2 %v499_v24 }
 0x171   :  { %547 = vmatpush.msra.mxu0 %v499_v24 }
 0x172   :  { %3158 = vmatpush.msra.mxu2 %v498_v1 }
 0x173   :  { %548 = vmatpush.msra.mxu0 %v498_v1 }
 0x174   :  { %v835_v57 = vpop.permute.xlu1 %834  ;;  %3159 = vmatpush.msra.mxu2 %v497_v18 }
 0x175   :  { %v819_v2 = vpop.permute.xlu0 %818  ;;  %549 = vmatpush.msra.mxu0 %v497_v18 }
 0x176   :  { %v896_v52 = vsel %vm44_vm12, %v892_v8, %v819_v2  ;;  %v853_v61 = vpop.permute.xlu2 %852  ;;  %3160 = vmatpush.msra.mxu2 %v496_v28 }
 0x177   :  { %v900_v45 = vsel %vm327_vm13, %v896_v52, %v835_v57  ;;  %550 = vmatpush.msra.mxu0 %v496_v28 }
 0x178   :  { %v904_v54 = vsel %vm332_vm14, %v900_v45, %v851_v62  ;;  %3161 = vmatpush.msra.mxu2 %v495_v55 }
 0x179   :  { %551 = vmatpush.msra.mxu0 %v495_v55 }
 0x17c   :  { %v883_v21 = vpop.permute.xlu1 %882 }
 0x17d   :  { %v867_v41 = vpop.permute.xlu0 %866 }
 0x17e   :  { %v908_v5 = vsel %vm337_vm15, %v904_v54, %v867_v41  ;;  %v380_v22 = vpop.permute.xlu2 %379 }
 0x17f   :  { %v912_v51 = vsel %vm342_vm2, %v908_v5, %v883_v21  ;;  %v471_v3 = vsel %vm33_vm0, %v3514_v47, %v380_v22 }
 0x180   :  { %3038 = vmatmul.msk.f32.gmra.mxu3 %vm511_vm4, %v912_v51 }
 0x184   :  { %v837_v23 = vpop.permute.xlu1 %836 }
 0x185   :  { %v821_v60 = vpop.permute.xlu0 %820 }
 0x186   :  { %v897_v62 = vsel %vm44_vm12, %v893_v40, %v821_v60  ;;  %v428_v12 = vpop.permute.xlu2 %427 }
 0x187   :  { %v901_v58 = vsel %vm327_vm13, %v897_v62, %v837_v23 }
 0x188   :  { %v905_v39 = vsel %vm332_vm14, %v901_v58, %v853_v61 }
 0x18c   :  { %v885_v9 = vpop.permute.xlu1 %884 }
 0x18d   :  { %v869_v53 = vpop.permute.xlu0 %868 }
 0x18e   :  { %v909_v17 = vsel %vm337_vm15, %v905_v39, %v869_v53  ;;  %v382_v48 = vpop.permute.xlu2 %381 }
 0x18f   :  { %v913_v49 = vsel %vm342_vm2, %v909_v17, %v885_v9  ;;  %v472_v0 = vsel %vm33_vm0, %v3494_v38, %v382_v48 }
 0x190   :  { %3039 = vmatmul.msk.f32.gmra.mxu3 %vm511_vm4, %v913_v49 }
 0x194   :  { %v412_v44 = vpop.permute.xlu1 %411 }
 0x195   :  { %v396_v63 = vpop.permute.xlu0 %395 }
 0x196   :  { %v475_v4 = vsel %vm44_vm12, %v471_v3, %v396_v63  ;;  %v430_v8 = vpop.permute.xlu2 %429 }
 0x197   :  { %v479_v10 = vsel %vm327_vm13, %v475_v4, %v412_v44  ;;  %v3931_v4 = vld [vmem:[%s5003_s2 + $0x1] ss:$0 sm:$0xff] }
 0x198   :  { %v483_v20 = vsel %vm332_vm14, %v479_v10, %v428_v12 }
 0x19c   :  { %v460_v19 = vpop.permute.xlu1 %459 }
 0x19d   :  { %v444_v7 = vpop.permute.xlu0 %443 }
 0x19e   :  { %v487_v56 = vsel %vm337_vm15, %v483_v20, %v444_v7  ;;  %v384_v18 = vpop.permute.xlu2 %383 }
 0x19f   :  { %v491_v11 = vsel %vm342_vm2, %v487_v56, %v460_v19  ;;  %v473_v38 = vsel %vm33_vm0, %v3533_v6, %v384_v18 }
 0x1a0   :  { %3014 = vmatmul.msk.f32.vlgmr.msra.gmra.mxu2 %vm511_vm4, %v491_v11 }
 0x1a4   :  { %v414_v47 = vpop.permute.xlu1 %413 }
 0x1a5   :  { %v398_v57 = vpop.permute.xlu0 %397 }
 0x1a6   :  { %v476_v2 = vsel %vm44_vm12, %v472_v0, %v398_v57  ;;  %v432_v5 = vpop.permute.xlu2 %431 }
 0x1a7   :  { %v480_v52 = vsel %vm327_vm13, %v476_v2, %v414_v47 }
 0x1a8   :  { %v484_v1 = vsel %vm332_vm14, %v480_v52, %v430_v8 }
 0x1ac   :  { %v462_v24 = vpop.permute.xlu1 %461 }
 0x1ad   :  { %v446_v45 = vpop.permute.xlu0 %445 }
 0x1ae   :  { %v488_v21 = vsel %vm337_vm15, %v484_v1, %v446_v45  ;;  %v386_v9 = vpop.permute.xlu2 %385 }
 0x1af   :  { %v492_v54 = vsel %vm342_vm2, %v488_v21, %v462_v24  ;;  %v474_v6 = vsel %vm33_vm0, %v3549_v13, %v386_v9 }
 0x1b0   :  { %3015 = vmatmul.msk.f32.gmra.mxu2 %vm511_vm4, %v492_v54 }
 0x1b4   :  { %v416_v28 = vpop.permute.xlu1 %415 }
 0x1b5   :  { %v400_v61 = vpop.permute.xlu0 %399 }
 0x1b6   :  { %v477_v41 = vsel %vm44_vm12, %v473_v38, %v400_v61  ;;  %v434_v58 = vpop.permute.xlu2 %433 }
 0x1b7   :  { %v481_v55 = vsel %vm327_vm13, %v477_v41, %v416_v28 }
 0x1b8   :  { %v485_v23 = vsel %vm332_vm14, %v481_v55, %v432_v5 }
 0x1bc   :  { %v464_v51 = vpop.permute.xlu1 %463 }
 0x1bd   :  { %v448_v60 = vpop.permute.xlu0 %447 }
 0x1be   :  { %v489_v22 = vsel %vm337_vm15, %v485_v23, %v448_v60 }
 0x1bf   :  { %v493_v46 = vsel %vm342_vm2, %v489_v22, %v464_v51 }
 0x1c0   :  { %3016 = vmatmul.msk.f32.gmra.mxu2 %vm511_vm4, %v493_v46 }
 0x1c4   :  { %v418_v40 = vpop.permute.xlu1 %417 }
 0x1c5   :  { %v402_v53 = vpop.permute.xlu0 %401 }
 0x1c6   :  { %v478_v62 = vsel %vm44_vm12, %v474_v6, %v402_v53 }
 0x1c7   :  { %v482_v12 = vsel %vm327_vm13, %v478_v62, %v418_v40 }
 0x1c8   :  { %v486_v39 = vsel %vm332_vm14, %v482_v12, %v434_v58 }
 0x1cc   :  { %v466_v44 = vpop.permute.xlu1 %465 }
 0x1cd   :  { %v450_v63 = vpop.permute.xlu0 %449 }
 0x1ce   :  { %v490_v3 = vsel %vm337_vm15, %v486_v39, %v450_v63 }
 0x1cf   :  { %v494_v17 = vsel %vm342_vm2, %v490_v3, %v466_v44 }
 0x1d0   :  { %3017 = vmatmul.msk.f32.gmra.mxu2 %vm511_vm4, %v494_v17  ;;  %v972_v13 = vpop.f32.mrf.mxu1 }
 0x1d1   :  { %v973_v48 = vadd.f32 %v3931_v4, %v972_v13 }
 0x1d3   :  { %3248 = vtanh.f32 %v973_v48 }
 0x1d8   :  { %v975_v10 = vpop.f32.mrf.mxu1 }
 0x1d9   :  { %v3249_v19 = vpop.eup %3248  ;;  %v976_v49 = vadd.f32 %v3931_v4, %v975_v10 }
 0x1da   :  { %vm1004_vm5 = vcmp.ge.f32.partialorder %v3249_v19, 0.0  ;;  %v1012_v20 = vmul.f32 0.2, %v3249_v19 }
 0x1db   :  { %3250 = vtanh.f32 %v976_v49 }
 0x1dc   :  { %v1020_v7 = vsel %vm1004_vm5, %v3249_v19, %v1012_v20 }
 0x1dd   :  { %1028 = vst.msk [vmem:[#allocation2 + $0x3] sm:$0xff] %vm33_vm0, %v1020_v7 }
 0x1e0   :  { %v978_v56 = vpop.f32.mrf.mxu1 }
 0x1e1   :  { %v3251_v11 = vpop.eup %3250  ;;  %v979_v47 = vadd.f32 %v3931_v4, %v978_v56 }
 0x1e2   :  { %vm1005_vm6 = vcmp.ge.f32.partialorder %v3251_v11, 0.0  ;;  %v1013_v8 = vmul.f32 0.2, %v3251_v11 }
 0x1e3   :  { %3252 = vtanh.f32 %v979_v47 }
 0x1e4   :  { %v1021_v0 = vsel %vm1005_vm6, %v3251_v11, %v1013_v8  ;;  %v1072_v2 = vld [vmem:[#allocation2 + $0x3] sm:$0xff] }
 0x1e5   :  { %v984_v57 = vpop.f32.mrf.mxu3  ;;  %v1036_v24 = vld [vmem:[#allocation2 + $0x4] sm:$0x1]  ;;  %v1034_v1 = vld [vmem:[#allocation2 + $0x5] sm:$0x1]  ;;  %1029 = vst.msk [vmem:[#allocation2 + $0xb] sm:$0xff] %vm33_vm0, %v1021_v0  ;;  %1124 = vrot.lane.b32.xlu1 %v1072_v2, %s3283_s0 }
 0x1e6   :  { %v985_v52 = vadd.f32 %v3931_v4, %v984_v57  ;;  %v1032_v45 = vld [vmem:[#allocation2 + $0x6] sm:$0x1]  ;;  %1037 = vst.msk [vmem:[#allocation2 + $0x2] sm:$0x1] %vm165_vm3, %v1036_v24 }
 0x1e7   :  { %1035 = vst.msk [vmem:[#allocation2 + $0x1] sm:$0x1] %vm165_vm3, %v1034_v1 }
 0x1e8   :  { %3254 = vtanh.f32 %v985_v52  ;;  %1033 = vst.msk [vmem:[#allocation2] sm:$0x1] %vm165_vm3, %v1032_v45 }
 0x1e9   :  { %v3253_v18 = vpop.eup %3252 }
 0x1ea   :  { %vm1006_vm7 = vcmp.ge.f32.partialorder %v3253_v18, 0.0  ;;  %v1014_v54 = vmul.f32 0.2, %v3253_v18 }
 0x1eb   :  { %v981_v21 = vpop.f32.mrf.mxu1 }
 0x1ec   :  { %v982_v28 = vadd.f32 %v3931_v4, %v981_v21  ;;  %v1022_v38 = vsel %vm1006_vm7, %v3253_v18, %v1014_v54  ;;  %v1080_v40 = vld [vmem:[#allocation2 + $0x5] sm:$0xff] }
 0x1ed   :  { %1030 = vst.msk [vmem:[#allocation2 + $0x13] sm:$0xff] %vm33_vm0, %v1022_v38  ;;  %v1068_v5 = vld [vmem:[#allocation2 + $0x2] sm:$0xff]  ;;  %v1069_v63 = vld [vmem:[#allocation2 + $0xa] sm:$0xff] }
 0x1ee   :  { %v3255_v61 = vpop.eup %3254  ;;  %3256 = vtanh.f32 %v982_v28  ;;  %1108 = vrot.lane.b32.xlu0 %v1068_v5, %s3287_s30  ;;  %v1064_v55 = vld [vmem:[#allocation2 + $0x1] sm:$0xff]  ;;  %v1065_v17 = vld [vmem:[#allocation2 + $0x9] sm:$0xff]  ;;  %v3981_v28 = vld [vmem:[%s5003_s2] ss:$0 sm:$0xff] }
 0x1ef   :  { %vm1008_vm8 = vcmp.ge.f32.partialorder %v3255_v61, 0.0  ;;  %v1016_v41 = vmul.f32 0.2, %v3255_v61  ;;  %1092 = vrot.lane.b32.xlu2 %v1064_v55, %s3288_s10  ;;  %v1076_v53 = vld [vmem:[#allocation2 + $0x4] sm:$0xff] }
 0x1f0   :  { %v1084_v13 = vld [vmem:[#allocation2 + $0x6] sm:$0xff] }
 0x1f1   :  { %v1024_v51 = vsel %vm1008_vm8, %v3255_v61, %v1016_v41  ;;  %v1073_v11 = vld [vmem:[#allocation2 + $0xb] sm:$0xff] }
 0x1f2   :  { %1044 = vst.msk [vmem:[#allocation2 + $0x2b] sm:$0xff] %vm33_vm0, %v1024_v51 }
 0x1f3   :  { %v987_v60 = vpop.f32.mrf.mxu3 }
 0x1f4   :  { %v3257_v23 = vpop.eup %3256  ;;  %v988_v46 = vadd.f32 %v3931_v4, %v987_v60  ;;  %v1081_v24 = vld [vmem:[#allocation2 + $0xd] sm:$0xff] }
 0x1f5   :  { %vm1007_vm9 = vcmp.ge.f32.partialorder %v3257_v23, 0.0  ;;  %v1015_v22 = vmul.f32 0.2, %v3257_v23  ;;  %v1077_v1 = vld [vmem:[#allocation2 + $0xc] sm:$0xff] }
 0x1f6   :  { %3258 = vtanh.f32 %v988_v46  ;;  %1156 = vrot.lane.b32.xlu0 %v1080_v40, %s3284_s5  ;;  %v1085_v45 = vld [vmem:[#allocation2 + $0xe] sm:$0xff] }
 0x1f7   :  { %v1023_v9 = vsel %vm1007_vm9, %v3257_v23, %v1015_v22  ;;  %1140 = vrot.lane.b32.xlu2 %v1076_v53, %s3285_s6  ;;  %v1070_v18 = vld [vmem:[#allocation2 + $0x12] sm:$0xff] }
 0x1f8   :  { %1031 = vst.msk [vmem:[#allocation2 + $0x1b] sm:$0xff] %vm33_vm0, %v1023_v9  ;;  %v1066_v21 = vld [vmem:[#allocation2 + $0x11] sm:$0xff] }
 0x1f9   :  { %v1220_v6 = vld [vmem:[#allocation2 + $0x2b] sm:$0xff]  ;;  %v1074_v54 = vld [vmem:[#allocation2 + $0x13] sm:$0xff] }
 0x1fa   :  { %v1052_v62 = vld [vmem:[#allocation2 + $0x2c] sm:$0x1]  ;;  %v1050_v12 = vld [vmem:[#allocation2 + $0x2d] sm:$0x1]  ;;  %1272 = vrot.lane.b32.xlu1 %v1220_v6, %s3283_s0  ;;  %v1048_v58 = vld [vmem:[#allocation2 + $0x2e] sm:$0x1] }
 0x1fb   :  { %1053 = vst.msk [vmem:[#allocation2 + $0x2a] sm:$0x1] %vm165_vm3, %v1052_v62 }
 0x1fc   :  { %1051 = vst.msk [vmem:[#allocation2 + $0x29] sm:$0x1] %vm165_vm3, %v1050_v12  ;;  %v3259_v44 = vpop.eup %3258 }
 0x1fd   :  { %1049 = vst.msk [vmem:[#allocation2 + $0x28] sm:$0x1] %vm165_vm3, %v1048_v58  ;;  %vm1009_vm10 = vcmp.ge.f32.partialorder %v3259_v44, 0.0  ;;  %v1017_v39 = vmul.f32 0.2, %v3259_v44 }
 0x1fe   :  { %1110 = vrot.lane.b32.xlu0 %v1069_v63, %s3287_s30 }
 0x1ff   :  { %v1025_v3 = vsel %vm1009_vm10, %v3259_v44, %v1017_v39  ;;  %1094 = vrot.lane.b32.xlu2 %v1065_v17, %s3288_s10  ;;  %v1038_v48 = vld [vmem:[#allocation2 + $0x21] sm:$0x1]  ;;  %v1040_v10 = vld [vmem:[#allocation2 + $0x20] sm:$0x1]  ;;  %v1042_v19 = vld [vmem:[#allocation2 + $0x1f] sm:$0x1] }
 0x200   :  { %1045 = vst.msk [vmem:[#allocation2 + $0x33] sm:$0xff] %vm33_vm0, %v1025_v3  ;;  %v1082_v55 = vld [vmem:[#allocation2 + $0x15] sm:$0xff]  ;;  %v3053_v44 = vld [vmem:[%s5002_s1 + $0x148] sm:$0xff]  ;;  %v3052_v17 = vld [vmem:[%s5002_s1 + $0x140] sm:$0xff] }
 0x201   :  { %1039 = vst.msk [vmem:[#allocation2 + $0x23] sm:$0x1] %vm165_vm3, %v1038_v48  ;;  %v1078_v51 = vld [vmem:[#allocation2 + $0x14] sm:$0xff]  ;;  %1399 = vmatpush.msrb.mxu2 %v3053_v44 }
 0x202   :  { %1172 = vrot.lane.b32.xlu1 %v1084_v13, %s3286_s29  ;;  %1041 = vst.msk [vmem:[#allocation2 + $0x24] sm:$0x1] %vm165_vm3, %v1040_v10  ;;  %v1216_v7 = vld [vmem:[#allocation2 + $0x2a] sm:$0xff]  ;;  %v1086_v23 = vld [vmem:[#allocation2 + $0x16] sm:$0xff] }
 0x203   :  { %v990_v49 = vpop.f32.mrf.mxu3  ;;  %1043 = vst.msk [vmem:[#allocation2 + $0x25] sm:$0x1] %vm165_vm3, %v1042_v19  ;;  %v1212_v56 = vld [vmem:[#allocation2 + $0x29] sm:$0xff]  ;;  %v1071_v46 = vld [vmem:[#allocation2 + $0x1a] sm:$0xff]  ;;  %1400 = vmatpush.msrb.mxu2 %v3052_v17 }
 0x204   :  { %v991_v20 = vadd.f32 %v3931_v4, %v990_v49  ;;  %v1067_v9 = vld [vmem:[#allocation2 + $0x19] sm:$0xff]  ;;  %v3050_v49 = vld [vmem:[%s5002_s1 + $0x130] sm:$0xff] }
 0x205   :  { %v1075_v40 = vld [vmem:[#allocation2 + $0x1b] sm:$0xff] }
 0x206   :  { %3260 = vtanh.f32 %v991_v20  ;;  %1256 = vrot.lane.b32.xlu0 %v1216_v7, %s3287_s30  ;;  %v3051_v19 = vld [vmem:[%s5002_s1 + $0x138] sm:$0xff]  ;;  %v3049_v7 = vld [vmem:[%s5002_s1 + $0x128] sm:$0xff]  ;;  %v1060_v17 = vld [vmem:[#allocation2] sm:$0xff] }
 0x207   :  { %1240 = vrot.lane.b32.xlu2 %v1212_v56, %s3288_s10  ;;  %v1228_v57 = vld [vmem:[#allocation2 + $0x2d] sm:$0xff]  ;;  %1401 = vmatpush.msrb.mxu2 %v3051_v19 }
 0x208   :  { %v1224_v2 = vld [vmem:[#allocation2 + $0x2c] sm:$0xff]  ;;  %v1079_v12 = vld [vmem:[#allocation2 + $0x1c] sm:$0xff] }
 0x209   :  { %v1232_v52 = vld [vmem:[#allocation2 + $0x2e] sm:$0xff]  ;;  %v1083_v62 = vld [vmem:[#allocation2 + $0x1d] sm:$0xff]  ;;  %1402 = vmatpush.msrb.mxu2 %v3050_v49 }
 0x20a   :  { %1126 = vrot.lane.b32.xlu1 %v1073_v11, %s3283_s0  ;;  %v1087_v58 = vld [vmem:[#allocation2 + $0x1e] sm:$0xff]  ;;  %v1217_v39 = vld [vmem:[#allocation2 + $0x32] sm:$0xff] }
 0x20b   :  { %v1213_v63 = vld [vmem:[#allocation2 + $0x31] sm:$0xff]  ;;  %1403 = vmatpush.msrb.mxu2 %v3049_v7 }
 0x20c   :  { %v3261_v47 = vpop.eup %3260  ;;  %v1221_v3 = vld [vmem:[#allocation2 + $0x33] sm:$0xff] }
 0x20d   :  { %vm1010_vm11 = vcmp.ge.f32.partialorder %v3261_v47, 0.0  ;;  %v1018_v8 = vmul.f32 0.2, %v3261_v47 }
 0x20e   :  { %1304 = vrot.lane.b32.xlu0 %v1228_v57, %s3284_s5  ;;  %v3048_v57 = vld [vmem:[%s5002_s1 + $0x120] sm:$0xff] }
 0x20f   :  { %v1026_v0 = vsel %vm1010_vm11, %v3261_v47, %v1018_v8  ;;  %1288 = vrot.lane.b32.xlu2 %v1224_v2, %s3285_s6  ;;  %1404 = vmatpush.msrb.mxu2 %v3048_v57  ;;  %v3047_v2 = vld [vmem:[%s5002_s1 + $0x118] sm:$0xff] }
 0x210   :  { %1046 = vst.msk [vmem:[#allocation2 + $0x3b] sm:$0xff] %vm33_vm0, %v1026_v0 }
 0x211   :  { %1405 = vmatpush.msrb.mxu2 %v3047_v2  ;;  %v1061_v2 = vld [vmem:[#allocation2 + $0x8] sm:$0xff] }
 0x212   :  { %1320 = vrot.lane.b32.xlu1 %v1232_v52, %s3286_s29  ;;  %v3046_v52 = vld [vmem:[%s5002_s1 + $0x110] sm:$0xff] }
 0x213   :  { %v993_v61 = vpop.f32.mrf.mxu3  ;;  %1406 = vmatpush.msrb.mxu2 %v3046_v52 }
 0x214   :  { %v994_v38 = vadd.f32 %v3931_v4, %v993_v61  ;;  %v3043_v61 = vld [vmem:[%s5002_s1 + $0xf8] sm:$0xff] }
 0x216   :  { %1158 = vrot.lane.b32.xlu0 %v1081_v24, %s3284_s5  ;;  %3262 = vtanh.f32 %v994_v38  ;;  %v3045_v24 = vld [vmem:[%s5002_s1 + $0x108] sm:$0xff] }
 0x217   :  { %1142 = vrot.lane.b32.xlu2 %v1077_v1, %s3285_s6  ;;  %v1229_v56 = vld [vmem:[#allocation2 + $0x35] sm:$0xff]  ;;  %1407 = vmatpush.msrb.mxu2 %v3045_v24 }
 0x218   :  { %v1225_v47 = vld [vmem:[#allocation2 + $0x34] sm:$0xff] }
 0x219   :  { %v1233_v8 = vld [vmem:[#allocation2 + $0x36] sm:$0xff] }
 0x21a   :  { %1174 = vrot.lane.b32.xlu1 %v1085_v45, %s3286_s29  ;;  %v1218_v1 = vld [vmem:[#allocation2 + $0x3a] sm:$0xff] }
 0x21b   :  { %v1222_v45 = vld [vmem:[#allocation2 + $0x3b] sm:$0xff] }
 0x21c   :  { %v3263_v60 = vpop.eup %3262 }
 0x21d   :  { %vm1011_vm5 = vcmp.ge.f32.partialorder %v3263_v60, 0.0  ;;  %v1019_v4 = vmul.f32 0.2, %v3263_v60 }
 0x21e   :  { %1112 = vrot.lane.b32.xlu0 %v1070_v18, %s3287_s30  ;;  %v1214_v18 = vld [vmem:[#allocation2 + $0x39] sm:$0xff] }
 0x21f   :  { %1096 = vrot.lane.b32.xlu2 %v1066_v21, %s3288_s10  ;;  %v1027_v22 = vsel %vm1011_vm5, %v3263_v60, %v1019_v4  ;;  %v3044_v21 = vld [vmem:[%s5002_s1 + $0x100] sm:$0xff]  ;;  %v3041_v60 = vld [vmem:[%s5002_s1 + $0xe8] sm:$0xff] }
 0x220   :  { %1047 = vst.msk [vmem:[#allocation2 + $0x43] sm:$0xff] %vm33_vm0, %v1027_v22  ;;  %1408 = vmatpush.msrb.mxu2 %v3044_v21  ;;  %v3040_v22 = vld [vmem:[%s5002_s1 + $0xe0] sm:$0xff] }
 0x222   :  { %1128 = vrot.lane.b32.xlu1 %v1074_v54, %s3283_s0  ;;  %1409 = vmatpush.msrb.mxu2 %v3043_v61 }
 0x223   :  { %v565_v41 = vpop.f32.mrf.mxu2 }
 0x224   :  { %v3986_v5 = vadd.f32 %v3981_v28, %v565_v41  ;;  %v3042_v41 = vld [vmem:[%s5002_s1 + $0xf0] sm:$0xff] }
 0x225   :  { %1410 = vmatpush.msrb.mxu2 %v3042_v41 }
 0x226   :  { %581 = vst.msk [vmem:[%s5004_s7 + $0x20] sm:$0xff] %vm159_vm1, %v3986_v5  ;;  %1160 = vrot.lane.b32.xlu0 %v1082_v55, %s3284_s5 }
 0x227   :  { %1144 = vrot.lane.b32.xlu2 %v1078_v51, %s3285_s6  ;;  %v1054_v13 = vld [vmem:[#allocation2 + $0x49] sm:$0x1]  ;;  %v1056_v48 = vld [vmem:[#allocation2 + $0x48] sm:$0x1]  ;;  %v1058_v11 = vld [vmem:[#allocation2 + $0x47] sm:$0x1]  ;;  %1411 = vmatpush.msrb.mxu2 %v3041_v60 }
 0x228   :  { %1055 = vst.msk [vmem:[#allocation2 + $0x4b] sm:$0x1] %vm165_vm3, %v1054_v13  ;;  %v1230_v51 = vld [vmem:[#allocation2 + $0x3d] sm:$0xff]  ;;  %v5022_v60 = vld [vmem:[#allocation9_spill] sm:$0xff] }
 0x229   :  { %1057 = vst.msk [vmem:[#allocation2 + $0x4c] sm:$0x1] %vm165_vm3, %v1056_v48  ;;  %v1234_v4 = vld [vmem:[#allocation2 + $0x3e] sm:$0xff]  ;;  %1412 = vmatpush.msrb.mxu2 %v3040_v22 }
 0x22a   :  { %1176 = vrot.lane.b32.xlu1 %v1086_v23, %s3286_s29  ;;  %1059 = vst.msk [vmem:[#allocation2 + $0x4d] sm:$0x1] %vm165_vm3, %v1058_v11  ;;  %v1226_v23 = vld [vmem:[#allocation2 + $0x3c] sm:$0xff] }
 0x22e   :  { %1114 = vrot.lane.b32.xlu0 %v1071_v46, %s3287_s30 }
 0x22f   :  { %1098 = vrot.lane.b32.xlu2 %v1067_v9, %s3288_s10  ;;  %v1219_v9 = vld [vmem:[#allocation2 + $0x42] sm:$0xff] }
 0x230   :  { %v1231_v44 = vld [vmem:[#allocation2 + $0x45] sm:$0xff] }
 0x232   :  { %1130 = vrot.lane.b32.xlu1 %v1075_v40, %s3283_s0  ;;  %v1215_v40 = vld [vmem:[#allocation2 + $0x41] sm:$0xff] }
 0x233   :  { %v568_v53 = vpop.f32.mrf.mxu2 }
 0x234   :  { %v4001_v6 = vadd.f32 %v3981_v28, %v568_v53  ;;  %v1223_v53 = vld [vmem:[#allocation2 + $0x43] sm:$0xff] }
 0x236   :  { %582 = vst.msk [vmem:[%s5004_s7 + $0x28] sm:$0xff] %vm159_vm1, %v4001_v6  ;;  %1162 = vrot.lane.b32.xlu0 %v1083_v62, %s3284_s5 }
 0x237   :  { %1146 = vrot.lane.b32.xlu2 %v1079_v12, %s3285_s6 }
 0x23a   :  { %1178 = vrot.lane.b32.xlu1 %v1087_v58, %s3286_s29 }
 0x23e   :  { %1258 = vrot.lane.b32.xlu0 %v1217_v39, %s3287_s30  ;;  %v1227_v39 = vld [vmem:[#allocation2 + $0x44] sm:$0xff] }
 0x23f   :  { %1242 = vrot.lane.b32.xlu2 %v1213_v63, %s3288_s10  ;;  %v1235_v63 = vld [vmem:[#allocation2 + $0x46] sm:$0xff] }
 0x242   :  { %1274 = vrot.lane.b32.xlu1 %v1221_v3, %s3283_s0 }
 0x243   :  { %v571_v10 = vpop.f32.mrf.mxu2 }
 0x244   :  { %v4029_v20 = vadd.f32 %v3981_v28, %v571_v10 }
 0x246   :  { %583 = vst.msk [vmem:[%s5004_s7 + $0x30] sm:$0xff] %vm159_vm1, %v4029_v20  ;;  %1306 = vrot.lane.b32.xlu0 %v1229_v56, %s3284_s5 }
 0x247   :  { %1290 = vrot.lane.b32.xlu2 %v1225_v47, %s3285_s6 }
 0x249   :  { %v1093_v0 = vpop.permute.xlu2 %1092 }
 0x24a   :  { %1322 = vrot.lane.b32.xlu1 %v1233_v8, %s3286_s29  ;;  %v1184_v48 = vsel %vm33_vm0, %v1060_v17, %v1093_v0 }
 0x24e   :  { %1260 = vrot.lane.b32.xlu0 %v1218_v1, %s3287_s30 }
 0x24f   :  { %1244 = vrot.lane.b32.xlu2 %v1214_v18, %s3288_s10 }
 0x251   :  { %v1141_v54 = vpop.permute.xlu2 %1140 }
 0x252   :  { %1276 = vrot.lane.b32.xlu1 %v1222_v45, %s3283_s0 }
 0x253   :  { %v574_v38 = vpop.f32.mrf.mxu2 }
 0x254   :  { %v4068_v55 = vadd.f32 %v3981_v28, %v574_v38 }
 0x256   :  { %584 = vst.msk [vmem:[%s5004_s7 + $0x38] sm:$0xff] %vm159_vm1, %v4068_v55  ;;  %1308 = vrot.lane.b32.xlu0 %v1230_v51, %s3284_s5 }
 0x257   :  { %1292 = vrot.lane.b32.xlu2 %v1226_v23, %s3285_s6  ;;  %v1125_v58 = vpop.permute.xlu1 %1124 }
 0x259   :  { %v1095_v46 = vpop.permute.xlu2 %1094 }
 0x25a   :  { %1324 = vrot.lane.b32.xlu1 %v1234_v4, %s3286_s29  ;;  %v1185_v52 = vsel %vm33_vm0, %v1061_v2, %v1095_v46  ;;  %v1063_v4 = vld [vmem:[#allocation2 + $0x18] sm:$0xff] }
 0x25e   :  { %1262 = vrot.lane.b32.xlu0 %v1219_v9, %s3287_s30 }
 0x25f   :  { %1246 = vrot.lane.b32.xlu2 %v1215_v40, %s3288_s10 }
 0x260   :  { %v1109_v62 = vpop.permute.xlu0 %1108 }
 0x261   :  { %v4087_v12 = vpop.permute.xlu2 %1240  ;;  %v1188_v19 = vsel %vm44_vm12, %v1184_v48, %v1109_v62 }
 0x262   :  { %1278 = vrot.lane.b32.xlu1 %v1223_v53, %s3283_s0  ;;  %v1192_v49 = vsel %vm327_vm13, %v1188_v19, %v1125_v58  ;;  %v5023_v53 = vld [vmem:[#allocation6_spill] sm:$0xff] }
 0x263   :  { %v1196_v56 = vsel %vm332_vm14, %v1192_v49, %v1141_v54 }
 0x266   :  { %1310 = vrot.lane.b32.xlu0 %v1231_v44, %s3284_s5  ;;  %v5025_v44 = vld [vmem:[#allocation5_spill] sm:$0xff] }
 0x267   :  { %1294 = vrot.lane.b32.xlu2 %v1227_v39, %s3285_s6  ;;  %v1208_v39 = vld [vmem:[#allocation2 + $0x28] sm:$0xff] }
 0x268   :  { %v1157_v3 = vpop.permute.xlu0 %1156 }
 0x269   :  { %v4092_v13 = vpop.permute.xlu2 %1288  ;;  %v1200_v47 = vsel %vm337_vm15, %v1196_v56, %v1157_v3 }
 0x26a   :  { %1326 = vrot.lane.b32.xlu1 %v1235_v63, %s3286_s29  ;;  %v1332_v63 = vsel %vm33_vm0, %v1208_v39, %v4087_v12 }
 0x26c   :  { %v4095_v10 = vpop.permute.xlu1 %1272 }
 0x26e   :  { %241 = vrot.lane.b32.xlu0 %v3492_v37, %s3287_s30 }
 0x26f   :  { %225 = vrot.lane.b32.xlu2 %v3476_v29, %s3288_s10 }
 0x270   :  { %v1111_v7 = vpop.permute.xlu0 %1110 }
 0x271   :  { %v1143_v11 = vpop.permute.xlu2 %1142 }
 0x272   :  { %257 = vrot.lane.b32.xlu1 %v3478_v30, %s3283_s0 }
 0x274   :  { %v1173_v8 = vpop.permute.xlu1 %1172 }
 0x275   :  { %v1204_v57 = vsel %vm342_vm2, %v1200_v47, %v1173_v8  ;;  %v1209_v47 = vld [vmem:[#allocation2 + $0x30] sm:$0xff] }
 0x276   :  { %3054 = vmatmul.msk.f32.vlgmr.msrb.gmra.mxu2 %vm511_vm4, %v1204_v57  ;;  %273 = vrot.lane.b32.xlu0 %v3484_v33, %s3285_s6 }
 0x277   :  { %289 = vrot.lane.b32.xlu2 %v3488_v35, %s3284_s5 }
 0x278   :  { %v4113_v29 = vpop.permute.xlu0 %1256 }
 0x279   :  { %v1097_v30 = vpop.permute.xlu2 %1096  ;;  %v1336_v48 = vsel %vm44_vm12, %v1332_v63, %v4113_v29 }
 0x27a   :  { %305 = vrot.lane.b32.xlu1 %v3502_v42, %s3286_s29  ;;  %v1189_v42 = vsel %vm44_vm12, %v1185_v52, %v1111_v7  ;;  %v1340_v7 = vsel %vm327_vm13, %v1336_v48, %v4095_v10 }
 0x27c   :  { %v1127_v37 = vpop.permute.xlu1 %1126 }
 0x27d   :  { %v1193_v24 = vsel %vm327_vm13, %v1189_v42, %v1127_v37 }
 0x27e   :  { %259 = vrot.lane.b32.xlu0 %v3482_v32, %s3283_s0  ;;  %v1197_v32 = vsel %vm332_vm14, %v1193_v24, %v1143_v11  ;;  %v1344_v11 = vsel %vm332_vm14, %v1340_v7, %v4092_v13 }
 0x27f   :  { %227 = vrot.lane.b32.xlu2 %v3467_v25, %s3288_s10 }
 0x280   :  { %v4121_v0 = vpop.permute.xlu0 %1304 }
 0x281   :  { %v1145_v33 = vpop.permute.xlu2 %1144  ;;  %v1348_v12 = vsel %vm337_vm15, %v1344_v11, %v4121_v0 }
 0x282   :  { %243 = vrot.lane.b32.xlu1 %v3471_v27, %s3287_s30 }
 0x284   :  { %v4125_v35 = vpop.permute.xlu1 %1320 }
 0x286   :  { %307 = vrot.lane.b32.xlu0 %v3504_v43, %s3286_s29 }
 0x287   :  { %275 = vrot.lane.b32.xlu2 %v3486_v34, %s3285_s6 }
 0x288   :  { %v1159_v25 = vpop.permute.xlu0 %1158 }
 0x289   :  { %v1099_v27 = vpop.permute.xlu2 %1098  ;;  %v1201_v1 = vsel %vm337_vm15, %v1197_v32, %v1159_v25  ;;  %v1210_v25 = vld [vmem:[#allocation2 + $0x38] sm:$0xff] }
 0x28a   :  { %291 = vrot.lane.b32.xlu1 %v3490_v36, %s3284_s5  ;;  %v1062_v36 = vld [vmem:[#allocation2 + $0x10] sm:$0xff]  ;;  %v1187_v22 = vsel %vm33_vm0, %v1063_v4, %v1099_v27 }
 0x28b   :  { %v1186_v21 = vsel %vm33_vm0, %v1062_v36, %v1097_v30  ;;  %v1352_v30 = vsel %vm342_vm2, %v1348_v12, %v4125_v35 }
 0x28c   :  { %v1175_v45 = vpop.permute.xlu1 %1174 }
 0x28d   :  { %v1205_v18 = vsel %vm342_vm2, %v1201_v1, %v1175_v45 }
 0x28e   :  { %3055 = vmatmul.msk.f32.gmra.mxu2 %vm511_vm4, %v1205_v18  ;;  %261 = vrot.lane.b32.xlu0 %v3522_v50, %s3283_s0 }
 0x28f   :  { %229 = vrot.lane.b32.xlu2 %v3469_v26, %s3288_s10 }
 0x290   :  { %v1113_v34 = vpop.permute.xlu0 %1112 }
 0x291   :  { %v1147_v43 = vpop.permute.xlu2 %1146  ;;  %v1190_v61 = vsel %vm44_vm12, %v1186_v21, %v1113_v34 }
 0x292   :  { %245 = vrot.lane.b32.xlu1 %v3480_v31, %s3287_s30 }
 0x294   :  { %v1129_v54 = vpop.permute.xlu1 %1128 }
 0x295   :  { %v1194_v38 = vsel %vm327_vm13, %v1190_v61, %v1129_v54  ;;  %v1211_v61 = vld [vmem:[#allocation2 + $0x40] sm:$0xff] }
 0x296   :  { %309 = vrot.lane.b32.xlu0 %v3454_v16, %s3286_s29  ;;  %v1198_v26 = vsel %vm332_vm14, %v1194_v38, %v1145_v33  ;;  %v5021_v16 = vld [vmem:[#allocation8_spill] sm:$0xff] }
 0x297   :  { %277 = vrot.lane.b32.xlu2 %v3450_v14, %s3285_s6 }
 0x298   :  { %v1161_v50 = vpop.permute.xlu0 %1160 }
 0x299   :  { %v1243_v31 = vpop.permute.xlu2 %1242  ;;  %v1202_v41 = vsel %vm337_vm15, %v1198_v26, %v1161_v50 }
 0x29a   :  { %293 = vrot.lane.b32.xlu1 %v3452_v15, %s3284_s5  ;;  %v1333_v8 = vsel %vm33_vm0, %v1209_v47, %v1243_v31 }
 0x29c   :  { %v1177_v51 = vpop.permute.xlu1 %1176 }
 0x29d   :  { %v1206_v23 = vsel %vm342_vm2, %v1202_v41, %v1177_v51 }
 0x29e   :  { %3056 = vmatmul.msk.f32.gmra.mxu2 %vm511_vm4, %v1206_v23  ;;  %263 = vrot.lane.b32.xlu0 %v3434_v59, %s3283_s0  ;;  %v5024_v59 = vld [vmem:[#allocation4_spill] sm:$0xff] }
 0x29f   :  { %231 = vrot.lane.b32.xlu2 %v5021_v16, %s3288_s10 }
 0x2a0   :  { %v1115_v14 = vpop.permute.xlu0 %1114 }
 0x2a1   :  { %v1291_v15 = vpop.permute.xlu2 %1290  ;;  %v1191_v9 = vsel %vm44_vm12, %v1187_v22, %v1115_v14 }
 0x2a2   :  { %247 = vrot.lane.b32.xlu1 %v5022_v60, %s3287_s30 }
 0x2a4   :  { %v1131_v46 = vpop.permute.xlu1 %1130 }
 0x2a5   :  { %v1195_v40 = vsel %vm327_vm13, %v1191_v9, %v1131_v46  ;;  %v5026_v46 = vld [vmem:[#allocation12_spill] sm:$0xff] }
 0x2a6   :  { %311 = vrot.lane.b32.xlu0 %v5023_v53, %s3286_s29  ;;  %v1199_v62 = vsel %vm332_vm14, %v1195_v40, %v1147_v43 }
 0x2a7   :  { %279 = vrot.lane.b32.xlu2 %v5024_v59, %s3285_s6 }
 0x2a8   :  { %v1163_v58 = vpop.permute.xlu0 %1162 }
 0x2a9   :  { %v1203_v3 = vsel %vm337_vm15, %v1199_v62, %v1163_v58  ;;  %v1245_v19 = vpop.permute.xlu2 %1244 }
 0x2aa   :  { %295 = vrot.lane.b32.xlu1 %v5025_v44, %s3284_s5  ;;  %v1334_v35 = vsel %vm33_vm0, %v1210_v25, %v1245_v19  ;;  %v5027_v19 = vld [vmem:[#allocation10_spill] sm:$0xff] }
 0x2ac   :  { %v1179_v17 = vpop.permute.xlu1 %1178 }
 0x2ad   :  { %v1207_v49 = vsel %vm342_vm2, %v1203_v3, %v1179_v17 }
 0x2ae   :  { %3057 = vmatmul.msk.f32.gmra.mxu2 %vm511_vm4, %v1207_v49 }
 0x2b0   :  { %v1259_v56 = vpop.permute.xlu0 %1258 }
 0x2b1   :  { %v1337_v29 = vsel %vm44_vm12, %v1333_v8, %v1259_v56  ;;  %v1293_v10 = vpop.permute.xlu2 %1292  ;;  %v4226_v56 = vld [vmem:[%s5003_s2 + $0x2] ss:$0 sm:$0xff] }
 0x2b4   :  { %v1275_v57 = vpop.permute.xlu1 %1274 }
 0x2b5   :  { %v1341_v37 = vsel %vm327_vm13, %v1337_v29, %v1275_v57 }
 0x2b6   :  { %3058 = vmatmul.msk.f32.gmra.mxu2 %vm511_vm4, %v1352_v30  ;;  %v1345_v33 = vsel %vm332_vm14, %v1341_v37, %v1291_v15 }
 0x2b8   :  { %v1307_v13 = vpop.permute.xlu0 %1306 }
 0x2b9   :  { %v1349_v2 = vsel %vm337_vm15, %v1345_v33, %v1307_v13  ;;  %v1247_v42 = vpop.permute.xlu2 %1246 }
 0x2ba   :  { %v1335_v38 = vsel %vm33_vm0, %v1211_v61, %v1247_v42 }
 0x2bc   :  { %v1323_v52 = vpop.permute.xlu1 %1322 }
 0x2bd   :  { %v1353_v0 = vsel %vm342_vm2, %v1349_v2, %v1323_v52 }
 0x2be   :  { %3059 = vmatmul.msk.f32.gmra.mxu2 %vm511_vm4, %v1353_v0  ;;  %v5028_v0 = vld [vmem:[#allocation11_spill] sm:$0xff] }
 0x2c0   :  { %v1261_v24 = vpop.permute.xlu0 %1260 }
 0x2c1   :  { %v1338_v32 = vsel %vm44_vm12, %v1334_v35, %v1261_v24  ;;  %v1295_v34 = vpop.permute.xlu2 %1294 }
 0x2c4   :  { %v1277_v27 = vpop.permute.xlu1 %1276 }
 0x2c5   :  { %v1342_v1 = vsel %vm327_vm13, %v1338_v32, %v1277_v27 }
 0x2c6   :  { %v1346_v45 = vsel %vm332_vm14, %v1342_v1, %v1293_v10 }
 0x2c8   :  { %v1309_v18 = vpop.permute.xlu0 %1308 }
 0x2c9   :  { %v1350_v36 = vsel %vm337_vm15, %v1346_v45, %v1309_v18  ;;  %v226_v50 = vpop.permute.xlu2 %225 }
 0x2ca   :  { %v318_v9 = vsel %vm33_vm0, %v5026_v46, %v226_v50 }
 0x2cc   :  { %v1325_v43 = vpop.permute.xlu1 %1324 }
 0x2cd   :  { %v1354_v21 = vsel %vm342_vm2, %v1350_v36, %v1325_v43 }
 0x2ce   :  { %3060 = vmatmul.msk.f32.gmra.mxu2 %vm511_vm4, %v1354_v21 }
 0x2d0   :  { %v1263_v54 = vpop.permute.xlu0 %1262 }
 0x2d1   :  { %v1339_v31 = vsel %vm44_vm12, %v1335_v38, %v1263_v54  ;;  %v290_v4 = vpop.permute.xlu2 %289 }
 0x2d4   :  { %v1279_v26 = vpop.permute.xlu1 %1278 }
 0x2d5   :  { %v1343_v41 = vsel %vm327_vm13, %v1339_v31, %v1279_v26 }
 0x2d6   :  { %v1347_v51 = vsel %vm332_vm14, %v1343_v41, %v1295_v34 }
 0x2d8   :  { %v1311_v23 = vpop.permute.xlu0 %1310 }
 0x2d9   :  { %v1351_v16 = vsel %vm337_vm15, %v1347_v51, %v1311_v23  ;;  %v228_v59 = vpop.permute.xlu2 %227  ;;  %v5029_v23 = vld [vmem:[#allocation7_spill] sm:$0xff] }
 0x2da   :  { %v319_v49 = vsel %vm33_vm0, %v5027_v19, %v228_v59 }
 0x2dc   :  { %v1327_v14 = vpop.permute.xlu1 %1326 }
 0x2dd   :  { %v1355_v60 = vsel %vm342_vm2, %v1351_v16, %v1327_v14 }
 0x2de   :  { %3061 = vmatmul.msk.f32.gmra.mxu2 %vm511_vm4, %v1355_v60 }
 0x2e0   :  { %v242_v15 = vpop.permute.xlu0 %241 }
 0x2e1   :  { %v323_v40 = vsel %vm44_vm12, %v318_v9, %v242_v15  ;;  %v276_v17 = vpop.permute.xlu2 %275 }
 0x2e4   :  { %v258_v22 = vpop.permute.xlu1 %257 }
 0x2e5   :  { %v328_v53 = vsel %vm327_vm13, %v323_v40, %v258_v22 }
 0x2e8   :  { %v274_v62 = vpop.permute.xlu0 %273 }
 0x2e9   :  { %v333_v58 = vsel %vm332_vm14, %v328_v53, %v274_v62  ;;  %v230_v37 = vpop.permute.xlu2 %229 }
 0x2ea   :  { %v338_v39 = vsel %vm337_vm15, %v333_v58, %v290_v4  ;;  %v320_v42 = vsel %vm33_vm0, %v5028_v0, %v230_v37 }
 0x2ec   :  { %v306_v44 = vpop.permute.xlu1 %305 }
 0x2ed   :  { %v343_v63 = vsel %vm342_vm2, %v338_v39, %v306_v44 }
 0x2ee   :  { %3010 = vmatmul.msk.f32.vlgmr.msra.gmra.mxu0 %vm511_vm4, %v343_v63 }
 0x2f0   :  { %v260_v3 = vpop.permute.xlu0 %259 }
 0x2f1   :  { %v278_v32 = vpop.permute.xlu2 %277 }
 0x2f4   :  { %v244_v48 = vpop.permute.xlu1 %243 }
 0x2f5   :  { %v324_v7 = vsel %vm44_vm12, %v319_v49, %v244_v48 }
 0x2f6   :  { %v329_v11 = vsel %vm327_vm13, %v324_v7, %v260_v3 }
 0x2f7   :  { %v334_v30 = vsel %vm332_vm14, %v329_v11, %v276_v17 }
 0x2f8   :  { %v308_v12 = vpop.permute.xlu0 %307 }
 0x2f9   :  { %v1414_v47 = vpop.f32.mrf.mxu2  ;;  %v232_v38 = vpop.permute.xlu2 %231 }
 0x2fa   :  { %v1415_v8 = vadd.f32 %v4226_v56, %v1414_v47  ;;  %v321_v16 = vsel %vm33_vm0, %v5029_v23, %v232_v38 }
 0x2fc   :  { %vm1438_vm6 = vcmp.ge.f32.partialorder %v1415_v8, 0.0  ;;  %v1446_v57 = vmul.f32 0.2, %v1415_v8  ;;  %v292_v29 = vpop.permute.xlu1 %291 }
 0x2fd   :  { %v339_v10 = vsel %vm337_vm15, %v334_v30, %v292_v29 }
 0x2fe   :  { %v1454_v33 = vsel %vm1438_vm6, %v1415_v8, %v1446_v57  ;;  %v344_v13 = vsel %vm342_vm2, %v339_v10, %v308_v12 }
 0x2ff   :  { %1462 = vst.msk [vmem:[#allocation2 + $0x3] sm:$0xff] %vm33_vm0, %v1454_v33  ;;  %3011 = vmatmul.msk.f32.gmra.mxu0 %vm511_vm4, %v344_v13 }
 0x300   :  { %v262_v2 = vpop.permute.xlu0 %261 }
 0x301   :  { %v280_v15 = vpop.permute.xlu2 %279 }
 0x304   :  { %v246_v52 = vpop.permute.xlu1 %245 }
 0x305   :  { %v325_v24 = vsel %vm44_vm12, %v320_v42, %v246_v52 }
 0x306   :  { %v1506_v25 = vld [vmem:[#allocation2 + $0x3] sm:$0xff]  ;;  %v330_v45 = vsel %vm327_vm13, %v325_v24, %v262_v2 }
 0x307   :  { %v1470_v35 = vld [vmem:[#allocation2 + $0x4] sm:$0x1]  ;;  %v1468_v27 = vld [vmem:[#allocation2 + $0x5] sm:$0x1]  ;;  %1558 = vrot.lane.b32.xlu1 %v1506_v25, %s3283_s0  ;;  %v1466_v1 = vld [vmem:[#allocation2 + $0x6] sm:$0x1]  ;;  %v335_v36 = vsel %vm332_vm14, %v330_v45, %v278_v32 }
 0x308   :  { %1471 = vst.msk [vmem:[#allocation2 + $0x2] sm:$0x1] %vm165_vm3, %v1470_v35  ;;  %v310_v18 = vpop.permute.xlu0 %309 }
 0x309   :  { %1469 = vst.msk [vmem:[#allocation2 + $0x1] sm:$0x1] %vm165_vm3, %v1468_v27 }
 0x30a   :  { %1467 = vst.msk [vmem:[#allocation2] sm:$0x1] %vm165_vm3, %v1466_v1 }
 0x30c   :  { %v294_v34 = vpop.permute.xlu1 %293 }
 0x30d   :  { %v340_v43 = vsel %vm337_vm15, %v335_v36, %v294_v34 }
 0x30e   :  { %v345_v54 = vsel %vm342_vm2, %v340_v43, %v310_v18 }
 0x30f   :  { %v1502_v21 = vld [vmem:[#allocation2 + $0x2] sm:$0xff]  ;;  %3012 = vmatmul.msk.f32.gmra.mxu0 %vm511_vm4, %v345_v54 }
 0x310   :  { %1542 = vrot.lane.b32.xlu0 %v1502_v21, %s3287_s30  ;;  %v1498_v61 = vld [vmem:[#allocation2 + $0x1] sm:$0xff]  ;;  %v264_v31 = vpop.permute.xlu0 %263 }
 0x311   :  { %1526 = vrot.lane.b32.xlu2 %v1498_v61, %s3288_s10  ;;  %v1417_v26 = vpop.f32.mrf.mxu2 }
 0x312   :  { %v1418_v50 = vadd.f32 %v4226_v56, %v1417_v26 }
 0x314   :  { %vm1439_vm7 = vcmp.ge.f32.partialorder %v1418_v50, 0.0  ;;  %v1447_v41 = vmul.f32 0.2, %v1418_v50  ;;  %v248_v51 = vpop.permute.xlu1 %247 }
 0x315   :  { %v326_v60 = vsel %vm44_vm12, %v321_v16, %v248_v51 }
 0x316   :  { %v1455_v14 = vsel %vm1439_vm7, %v1418_v50, %v1447_v41  ;;  %v331_v4 = vsel %vm327_vm13, %v326_v60, %v264_v31  ;;  %v3075_v60 = vld [vmem:[%s5002_s1 + $0x1b8] sm:$0xff] }
 0x317   :  { %1463 = vst.msk [vmem:[#allocation2 + $0xb] sm:$0xff] %vm33_vm0, %v1455_v14  ;;  %v336_v46 = vsel %vm332_vm14, %v331_v4, %v280_v15  ;;  %1833 = vmatpush.msrb.mxu3 %v3075_v60  ;;  %v3074_v4 = vld [vmem:[%s5002_s1 + $0x1b0] sm:$0xff] }
 0x318   :  { %v312_v9 = vpop.permute.xlu0 %311 }
 0x319   :  { %1834 = vmatpush.msrb.mxu3 %v3074_v4 }
 0x31c   :  { %v296_v22 = vpop.permute.xlu1 %295 }
 0x31d   :  { %v341_v40 = vsel %vm337_vm15, %v336_v46, %v296_v22 }
 0x31e   :  { %v1518_v53 = vld [vmem:[#allocation2 + $0x6] sm:$0xff]  ;;  %v346_v58 = vsel %vm342_vm2, %v341_v40, %v312_v9 }
 0x31f   :  { %v1514_v59 = vld [vmem:[#allocation2 + $0x5] sm:$0xff]  ;;  %1606 = vrot.lane.b32.xlu1 %v1518_v53, %s3286_s29  ;;  %3013 = vmatmul.msk.f32.gmra.mxu0 %vm511_vm4, %v346_v58 }
 0x320   :  { %v1510_v62 = vld [vmem:[#allocation2 + $0x4] sm:$0xff]  ;;  %1590 = vrot.lane.b32.xlu0 %v1514_v59, %s3284_s5 }
 0x321   :  { %1574 = vrot.lane.b32.xlu2 %v1510_v62, %s3285_s6  ;;  %v1420_v44 = vpop.f32.mrf.mxu2  ;;  %v1507_v17 = vld [vmem:[#allocation2 + $0xb] sm:$0xff]  ;;  %v3072_v40 = vld [vmem:[%s5002_s1 + $0x1a0] sm:$0xff]  ;;  %v3071_v62 = vld [vmem:[%s5002_s1 + $0x198] sm:$0xff] }
 0x322   :  { %v1421_v39 = vadd.f32 %v4226_v56, %v1420_v44  ;;  %v1503_v48 = vld [vmem:[#allocation2 + $0xa] sm:$0xff] }
 0x323   :  { %v1499_v19 = vld [vmem:[#allocation2 + $0x9] sm:$0xff] }
 0x324   :  { %vm1440_vm8 = vcmp.ge.f32.partialorder %v1421_v39, 0.0  ;;  %v1448_v63 = vmul.f32 0.2, %v1421_v39  ;;  %v3073_v9 = vld [vmem:[%s5002_s1 + $0x1a8] sm:$0xff]  ;;  %v3070_v44 = vld [vmem:[%s5002_s1 + $0x190] sm:$0xff] }
 0x325   :  { %1835 = vmatpush.msrb.mxu3 %v3073_v9 }
 0x326   :  { %v1456_v3 = vsel %vm1440_vm8, %v1421_v39, %v1448_v63 }
 0x327   :  { %1464 = vst.msk [vmem:[#allocation2 + $0x13] sm:$0xff] %vm33_vm0, %v1456_v3  ;;  %1544 = vrot.lane.b32.xlu1 %v1503_v48, %s3287_s30  ;;  %1836 = vmatpush.msrb.mxu3 %v3072_v40  ;;  %v3068_v48 = vld [vmem:[%s5002_s1 + $0x180] sm:$0xff] }
 0x328   :  { %1560 = vrot.lane.b32.xlu0 %v1507_v17, %s3283_s0  ;;  %v3069_v17 = vld [vmem:[%s5002_s1 + $0x188] sm:$0xff] }
 0x329   :  { %1528 = vrot.lane.b32.xlu2 %v1499_v19, %s3288_s10  ;;  %1837 = vmatpush.msrb.mxu3 %v3071_v62 }
 0x32b   :  { %1838 = vmatpush.msrb.mxu3 %v3070_v44 }
 0x32d   :  { %1839 = vmatpush.msrb.mxu3 %v3069_v17 }
 0x32e   :  { %v1519_v49 = vld [vmem:[#allocation2 + $0xe] sm:$0xff] }
 0x32f   :  { %v1515_v7 = vld [vmem:[#allocation2 + $0xd] sm:$0xff]  ;;  %1608 = vrot.lane.b32.xlu1 %v1519_v49, %s3286_s29  ;;  %v3067_v49 = vld [vmem:[%s5002_s1 + $0x178] sm:$0xff]  ;;  %1840 = vmatpush.msrb.mxu3 %v3068_v48 }
 0x330   :  { %v1511_v11 = vld [vmem:[#allocation2 + $0xc] sm:$0xff]  ;;  %1592 = vrot.lane.b32.xlu0 %v1515_v7, %s3284_s5 }
 0x331   :  { %1576 = vrot.lane.b32.xlu2 %v1511_v11, %s3285_s6  ;;  %v1423_v47 = vpop.f32.mrf.mxu2  ;;  %v1508_v29 = vld [vmem:[#allocation2 + $0x13] sm:$0xff]  ;;  %1841 = vmatpush.msrb.mxu3 %v3067_v49 }
 0x332   :  { %v1424_v12 = vadd.f32 %v4226_v56, %v1423_v47  ;;  %v1500_v30 = vld [vmem:[#allocation2 + $0x11] sm:$0xff] }
 0x333   :  { %v1504_v37 = vld [vmem:[#allocation2 + $0x12] sm:$0xff] }
 0x334   :  { %vm1441_vm9 = vcmp.ge.f32.partialorder %v1424_v12, 0.0  ;;  %v1449_v8 = vmul.f32 0.2, %v1424_v12  ;;  %v3066_v11 = vld [vmem:[%s5002_s1 + $0x170] sm:$0xff] }
 0x335   :  { %1842 = vmatpush.msrb.mxu3 %v3066_v11 }
 0x336   :  { %v1457_v57 = vsel %vm1441_vm9, %v1424_v12, %v1449_v8 }
 0x337   :  { %1465 = vst.msk [vmem:[#allocation2 + $0x1b] sm:$0xff] %vm33_vm0, %v1457_v57  ;;  %1562 = vrot.lane.b32.xlu1 %v1508_v29, %s3283_s0  ;;  %v3065_v57 = vld [vmem:[%s5002_s1 + $0x168] sm:$0xff]  ;;  %v3064_v29 = vld [vmem:[%s5002_s1 + $0x160] sm:$0xff] }
 0x338   :  { %1530 = vrot.lane.b32.xlu0 %v1500_v30, %s3288_s10  ;;  %1843 = vmatpush.msrb.mxu3 %v3065_v57 }
 0x339   :  { %1546 = vrot.lane.b32.xlu2 %v1504_v37, %s3287_s30  ;;  %v1426_v10 = vpop.f32.mrf.mxu2 }
 0x33a   :  { %v1427_v33 = vadd.f32 %v4226_v56, %v1426_v10  ;;  %1844 = vmatpush.msrb.mxu3 %v3064_v29 }
 0x33c   :  { %vm1442_vm10 = vcmp.ge.f32.partialorder %v1427_v33, 0.0  ;;  %v1450_v13 = vmul.f32 0.2, %v1427_v33 }
 0x33e   :  { %v1458_v2 = vsel %vm1442_vm10, %v1427_v33, %v1450_v13  ;;  %v1520_v52 = vld [vmem:[#allocation2 + $0x16] sm:$0xff]  ;;  %v1472_v24 = vld [vmem:[#allocation2 + $0x21] sm:$0x1]  ;;  %v1474_v25 = vld [vmem:[#allocation2 + $0x20] sm:$0x1] }
 0x33f   :  { %v1516_v0 = vld [vmem:[#allocation2 + $0x15] sm:$0xff]  ;;  %1478 = vst.msk [vmem:[#allocation2 + $0x2b] sm:$0xff] %vm33_vm0, %v1458_v2  ;;  %1610 = vrot.lane.b32.xlu1 %v1520_v52, %s3286_s29  ;;  %v1476_v35 = vld [vmem:[#allocation2 + $0x1f] sm:$0x1] }
 0x340   :  { %v1512_v42 = vld [vmem:[#allocation2 + $0x14] sm:$0xff]  ;;  %1473 = vst.msk [vmem:[#allocation2 + $0x23] sm:$0x1] %vm165_vm3, %v1472_v24 }
 0x341   :  { %1578 = vrot.lane.b32.xlu0 %v1512_v42, %s3285_s6  ;;  %1594 = vrot.lane.b32.xlu2 %v1516_v0, %s3284_s5  ;;  %v1429_v27 = vpop.f32.mrf.mxu2  ;;  %1475 = vst.msk [vmem:[#allocation2 + $0x24] sm:$0x1] %vm165_vm3, %v1474_v25  ;;  %v1509_v45 = vld [vmem:[#allocation2 + $0x1b] sm:$0xff]  ;;  %v3062_v2 = vld [vmem:[%s5002_s1 + $0x150] sm:$0xff] }
 0x342   :  { %v1430_v32 = vadd.f32 %v4226_v56, %v1429_v27  ;;  %1477 = vst.msk [vmem:[#allocation2 + $0x25] sm:$0x1] %vm165_vm3, %v1476_v35  ;;  %v1501_v34 = vld [vmem:[#allocation2 + $0x19] sm:$0xff] }
 0x343   :  { %v1505_v21 = vld [vmem:[#allocation2 + $0x1a] sm:$0xff] }
 0x344   :  { %vm1443_vm11 = vcmp.ge.f32.partialorder %v1430_v32, 0.0  ;;  %v1451_v1 = vmul.f32 0.2, %v1430_v32  ;;  %v3063_v13 = vld [vmem:[%s5002_s1 + $0x158] sm:$0xff] }
 0x345   :  { %1845 = vmatpush.msrb.mxu3 %v3063_v13 }
 0x346   :  { %v1459_v18 = vsel %vm1443_vm11, %v1430_v32, %v1451_v1  ;;  %v1486_v36 = vld [vmem:[#allocation2 + $0x2c] sm:$0x1]  ;;  %v1484_v43 = vld [vmem:[#allocation2 + $0x2d] sm:$0x1]  ;;  %v1482_v54 = vld [vmem:[#allocation2 + $0x2e] sm:$0x1] }
 0x347   :  { %1479 = vst.msk [vmem:[#allocation2 + $0x33] sm:$0xff] %vm33_vm0, %v1459_v18  ;;  %1564 = vrot.lane.b32.xlu1 %v1509_v45, %s3283_s0  ;;  %v1513_v38 = vld [vmem:[#allocation2 + $0x1c] sm:$0xff]  ;;  %v1654_v23 = vld [vmem:[#allocation2 + $0x2b] sm:$0xff]  ;;  %1846 = vmatpush.msrb.mxu3 %v3062_v2 }
 0x348   :  { %1487 = vst.msk [vmem:[#allocation2 + $0x2a] sm:$0x1] %vm165_vm3, %v1486_v36  ;;  %v1517_v26 = vld [vmem:[#allocation2 + $0x1d] sm:$0xff] }
 0x349   :  { %1532 = vrot.lane.b32.xlu0 %v1501_v34, %s3288_s10  ;;  %1548 = vrot.lane.b32.xlu2 %v1505_v21, %s3287_s30  ;;  %1485 = vst.msk [vmem:[#allocation2 + $0x29] sm:$0x1] %vm165_vm3, %v1484_v43  ;;  %v1521_v61 = vld [vmem:[#allocation2 + $0x1e] sm:$0xff] }
 0x34a   :  { %1483 = vst.msk [vmem:[#allocation2 + $0x28] sm:$0x1] %vm165_vm3, %v1482_v54  ;;  %v1494_v21 = vld [vmem:[#allocation2] sm:$0xff] }
 0x34e   :  { %v1666_v15 = vld [vmem:[#allocation2 + $0x2e] sm:$0xff] }
 0x34f   :  { %1612 = vrot.lane.b32.xlu1 %v1521_v61, %s3286_s29  ;;  %v1650_v14 = vld [vmem:[#allocation2 + $0x2a] sm:$0xff]  ;;  %v1655_v63 = vld [vmem:[#allocation2 + $0x33] sm:$0xff] }
 0x350   :  { %v1646_v16 = vld [vmem:[#allocation2 + $0x29] sm:$0xff]  ;;  %v1651_v3 = vld [vmem:[#allocation2 + $0x32] sm:$0xff] }
 0x351   :  { %1580 = vrot.lane.b32.xlu0 %v1513_v38, %s3285_s6  ;;  %1596 = vrot.lane.b32.xlu2 %v1517_v26, %s3284_s5  ;;  %v1432_v50 = vpop.f32.mrf.mxu2  ;;  %v1658_v22 = vld [vmem:[#allocation2 + $0x2c] sm:$0xff] }
 0x352   :  { %v1433_v31 = vadd.f32 %v4226_v56, %v1432_v50  ;;  %v1662_v46 = vld [vmem:[#allocation2 + $0x2d] sm:$0xff] }
 0x354   :  { %vm1444_vm5 = vcmp.ge.f32.partialorder %v1433_v31, 0.0  ;;  %v1452_v41 = vmul.f32 0.2, %v1433_v31 }
 0x356   :  { %v1460_v51 = vsel %vm1444_vm5, %v1433_v31, %v1452_v41 }
 0x357   :  { %1480 = vst.msk [vmem:[#allocation2 + $0x3b] sm:$0xff] %vm33_vm0, %v1460_v51  ;;  %1706 = vrot.lane.b32.xlu1 %v1654_v23, %s3283_s0 }
 0x359   :  { %1674 = vrot.lane.b32.xlu0 %v1646_v16, %s3288_s10  ;;  %1690 = vrot.lane.b32.xlu2 %v1650_v14, %s3287_s30 }
 0x35e   :  { %v1667_v47 = vld [vmem:[#allocation2 + $0x36] sm:$0xff] }
 0x35f   :  { %1754 = vrot.lane.b32.xlu1 %v1666_v15, %s3286_s29  ;;  %v1663_v12 = vld [vmem:[#allocation2 + $0x35] sm:$0xff] }
 0x360   :  { %v1659_v8 = vld [vmem:[#allocation2 + $0x34] sm:$0xff] }
 0x361   :  { %1722 = vrot.lane.b32.xlu0 %v1658_v22, %s3285_s6  ;;  %1738 = vrot.lane.b32.xlu2 %v1662_v46, %s3284_s5  ;;  %v1435_v53 = vpop.f32.mrf.mxu2  ;;  %v1656_v52 = vld [vmem:[#allocation2 + $0x3b] sm:$0xff]  ;;  %v1495_v46 = vld [vmem:[#allocation2 + $0x8] sm:$0xff] }
 0x362   :  { %v1436_v59 = vadd.f32 %v4226_v56, %v1435_v53  ;;  %v1647_v56 = vld [vmem:[#allocation2 + $0x31] sm:$0xff]  ;;  %v1652_v0 = vld [vmem:[#allocation2 + $0x3a] sm:$0xff] }
 0x363   :  { %v1648_v42 = vld [vmem:[#allocation2 + $0x39] sm:$0xff] }
 0x364   :  { %vm1445_vm6 = vcmp.ge.f32.partialorder %v1436_v59, 0.0  ;;  %v1453_v58 = vmul.f32 0.2, %v1436_v59 }
 0x366   :  { %v1461_v39 = vsel %vm1445_vm6, %v1436_v59, %v1453_v58 }
 0x367   :  { %1481 = vst.msk [vmem:[#allocation2 + $0x43] sm:$0xff] %vm33_vm0, %v1461_v39  ;;  %1708 = vrot.lane.b32.xlu1 %v1655_v63, %s3283_s0  ;;  %v3280_v39 = vld [vmem:[%s5003_s2] ss:$0 sm:$0xff] }
 0x369   :  { %1692 = vrot.lane.b32.xlu0 %v1651_v3, %s3287_s30  ;;  %1676 = vrot.lane.b32.xlu2 %v1647_v56, %s3288_s10 }
 0x36b   :  { %v553_v19 = vpop.f32.mrf.mxu0  ;;  %v1527_v33 = vpop.permute.xlu2 %1526 }
 0x36c   :  { %v4335_v7 = vadd.f32 %v3981_v28, %v553_v19  ;;  %v1618_v61 = vsel %vm33_vm0, %v1494_v21, %v1527_v33 }
 0x36e   :  { %577 = vst.msk [vmem:[%s5004_s7] sm:$0xff] %vm159_vm1, %v4335_v7  ;;  %v1488_v30 = vld [vmem:[#allocation2 + $0x49] sm:$0x1]  ;;  %v1490_v37 = vld [vmem:[#allocation2 + $0x48] sm:$0x1]  ;;  %v1668_v27 = vld [vmem:[#allocation2 + $0x3e] sm:$0xff] }
 0x36f   :  { %1756 = vrot.lane.b32.xlu1 %v1667_v47, %s3286_s29  ;;  %1489 = vst.msk [vmem:[#allocation2 + $0x4b] sm:$0x1] %vm165_vm3, %v1488_v30  ;;  %v1492_v10 = vld [vmem:[#allocation2 + $0x47] sm:$0x1]  ;;  %v1664_v32 = vld [vmem:[#allocation2 + $0x3d] sm:$0xff] }
 0x370   :  { %1491 = vst.msk [vmem:[#allocation2 + $0x4c] sm:$0x1] %vm165_vm3, %v1490_v37  ;;  %v1660_v1 = vld [vmem:[#allocation2 + $0x3c] sm:$0xff] }
 0x371   :  { %1740 = vrot.lane.b32.xlu0 %v1663_v12, %s3284_s5  ;;  %1724 = vrot.lane.b32.xlu2 %v1659_v8, %s3285_s6  ;;  %1493 = vst.msk [vmem:[#allocation2 + $0x4d] sm:$0x1] %vm165_vm3, %v1492_v10  ;;  %v1657_v18 = vld [vmem:[#allocation2 + $0x43] sm:$0xff]  ;;  %v1496_v12 = vld [vmem:[#allocation2 + $0x10] sm:$0xff] }
 0x372   :  { %v1653_v34 = vld [vmem:[#allocation2 + $0x42] sm:$0xff] }
 0x373   :  { %v1649_v36 = vld [vmem:[#allocation2 + $0x41] sm:$0xff] }
 0x376   :  { %v1661_v16 = vld [vmem:[#allocation2 + $0x44] sm:$0xff] }
 0x377   :  { %1710 = vrot.lane.b32.xlu1 %v1656_v52, %s3283_s0  ;;  %v1665_v23 = vld [vmem:[#allocation2 + $0x45] sm:$0xff] }
 0x378   :  { %v1669_v51 = vld [vmem:[#allocation2 + $0x46] sm:$0xff] }
 0x379   :  { %1694 = vrot.lane.b32.xlu0 %v1652_v0, %s3287_s30  ;;  %1678 = vrot.lane.b32.xlu2 %v1648_v42, %s3288_s10  ;;  %v1559_v54 = vpop.permute.xlu1 %1558 }
 0x37b   :  { %v1575_v24 = vpop.permute.xlu2 %1574 }
 0x37c   :  { %v556_v25 = vpop.f32.mrf.mxu0 }
 0x37d   :  { %v4367_v35 = vadd.f32 %v3981_v28, %v556_v25 }
 0x37f   :  { %578 = vst.msk [vmem:[%s5004_s7 + $0x8] sm:$0xff] %vm159_vm1, %v4367_v35  ;;  %1758 = vrot.lane.b32.xlu1 %v1668_v27, %s3286_s29 }
 0x381   :  { %1742 = vrot.lane.b32.xlu0 %v1664_v32, %s3284_s5  ;;  %1726 = vrot.lane.b32.xlu2 %v1660_v1, %s3285_s6 }
 0x382   :  { %v1543_v43 = vpop.permute.xlu0 %1542 }
 0x383   :  { %v1529_v45 = vpop.permute.xlu2 %1528  ;;  %v1622_v26 = vsel %vm44_vm12, %v1618_v61, %v1543_v43  ;;  %v1642_v61 = vld [vmem:[#allocation2 + $0x28] sm:$0xff] }
 0x384   :  { %v1626_v41 = vsel %vm327_vm13, %v1622_v26, %v1559_v54  ;;  %v1619_v53 = vsel %vm33_vm0, %v1495_v46, %v1529_v45 }
 0x387   :  { %1712 = vrot.lane.b32.xlu1 %v1657_v18, %s3283_s0 }
 0x389   :  { %1696 = vrot.lane.b32.xlu0 %v1653_v34, %s3287_s30  ;;  %1680 = vrot.lane.b32.xlu2 %v1649_v36, %s3288_s10 }
 0x38b   :  { %v1577_v38 = vpop.permute.xlu2 %1576 }
 0x38c   :  { %v559_v50 = vpop.f32.mrf.mxu0 }
 0x38d   :  { %v4383_v31 = vadd.f32 %v3981_v28, %v559_v50  ;;  %v1630_v28 = vsel %vm332_vm14, %v1626_v41, %v1575_v24  ;;  %v1497_v24 = vld [vmem:[#allocation2 + $0x18] sm:$0xff] }
 0x38f   :  { %579 = vst.msk [vmem:[%s5004_s7 + $0x10] sm:$0xff] %vm159_vm1, %v4383_v31  ;;  %1760 = vrot.lane.b32.xlu1 %v1669_v51, %s3286_s29 }
 0x391   :  { %1744 = vrot.lane.b32.xlu0 %v1665_v23, %s3284_s5  ;;  %1728 = vrot.lane.b32.xlu2 %v1661_v16, %s3285_s6  ;;  %v1607_v14 = vpop.permute.xlu1 %1606 }
 0x392   :  { %v1591_v60 = vpop.permute.xlu0 %1590 }
 0x393   :  { %v1547_v4 = vpop.permute.xlu2 %1546  ;;  %v1634_v15 = vsel %vm337_vm15, %v1630_v28, %v1591_v60 }
 0x394   :  { %v1638_v22 = vsel %vm342_vm2, %v1634_v15, %v1607_v14 }
 0x395   :  { %3076 = vmatmul.msk.f32.vlgmr.msrb.gmra.mxu3 %vm511_vm4, %v1638_v22 }
 0x399   :  { %v1545_v9 = vpop.permute.xlu1 %1544 }
 0x39a   :  { %v1561_v40 = vpop.permute.xlu0 %1560  ;;  %v1623_v59 = vsel %vm44_vm12, %v1619_v53, %v1545_v9 }
 0x39b   :  { %v1595_v62 = vpop.permute.xlu2 %1594  ;;  %v1627_v44 = vsel %vm327_vm13, %v1623_v59, %v1561_v40 }
 0x39c   :  { %v562_v58 = vpop.f32.mrf.mxu0  ;;  %v1631_v56 = vsel %vm332_vm14, %v1627_v44, %v1577_v38 }
 0x39d   :  { %v4404_v63 = vadd.f32 %v3280_v39, %v562_v58 }
 0x39f   :  { %580 = vst.msk [vmem:[%s5004_s7 + $0x18] sm:$0xff] %vm159_vm1, %v4404_v63 }
 0x3a1   :  { %v1609_v3 = vpop.permute.xlu1 %1608 }
 0x3a2   :  { %v1593_v17 = vpop.permute.xlu0 %1592 }
 0x3a3   :  { %v1635_v48 = vsel %vm337_vm15, %v1631_v56, %v1593_v17  ;;  %v1549_v49 = vpop.permute.xlu2 %1548 }
 0x3a4   :  { %v1639_v19 = vsel %vm342_vm2, %v1635_v48, %v1609_v3  ;;  %v1644_v3 = vld [vmem:[#allocation2 + $0x38] sm:$0xff] }
 0x3a5   :  { %3077 = vmatmul.msk.f32.gmra.mxu3 %vm511_vm4, %v1639_v19 }
 0x3a9   :  { %v1563_v11 = vpop.permute.xlu1 %1562 }
 0x3aa   :  { %v1531_v47 = vpop.permute.xlu0 %1530 }
 0x3ab   :  { %v1620_v8 = vsel %vm33_vm0, %v1496_v12, %v1531_v47  ;;  %v1597_v29 = vpop.permute.xlu2 %1596 }
 0x3ac   :  { %v1624_v57 = vsel %vm44_vm12, %v1620_v8, %v1547_v4  ;;  %v1643_v4 = vld [vmem:[#allocation2 + $0x30] sm:$0xff] }
 0x3ad   :  { %v1628_v37 = vsel %vm327_vm13, %v1624_v57, %v1563_v11 }
 0x3b1   :  { %v1611_v30 = vpop.permute.xlu1 %1610 }
 0x3b3   :  { %v1579_v10 = vpop.permute.xlu0 %1578  ;;  %v1691_v42 = vpop.permute.xlu2 %1690 }
 0x3b4   :  { %v1632_v33 = vsel %vm332_vm14, %v1628_v37, %v1579_v10  ;;  %v1645_v37 = vld [vmem:[#allocation2 + $0x40] sm:$0xff] }
 0x3b5   :  { %v1636_v13 = vsel %vm337_vm15, %v1632_v33, %v1595_v62 }
 0x3b6   :  { %v1640_v2 = vsel %vm342_vm2, %v1636_v13, %v1611_v30 }
 0x3b7   :  { %3078 = vmatmul.msk.f32.gmra.mxu3 %vm511_vm4, %v1640_v2 }
 0x3b9   :  { %v1565_v52 = vpop.permute.xlu1 %1564 }
 0x3bb   :  { %v1533_v0 = vpop.permute.xlu0 %1532  ;;  %v1739_v36 = vpop.permute.xlu2 %1738 }
 0x3bc   :  { %v1621_v25 = vsel %vm33_vm0, %v1497_v24, %v1533_v0 }
 0x3bd   :  { %v1625_v27 = vsel %vm44_vm12, %v1621_v25, %v1549_v49 }
 0x3be   :  { %v1629_v1 = vsel %vm327_vm13, %v1625_v27, %v1565_v52 }
 0x3c1   :  { %v1613_v32 = vpop.permute.xlu1 %1612 }
 0x3c3   :  { %v1581_v45 = vpop.permute.xlu0 %1580  ;;  %v1677_v26 = vpop.permute.xlu2 %1676 }
 0x3c4   :  { %v1633_v18 = vsel %vm332_vm14, %v1629_v1, %v1581_v45  ;;  %v1767_v46 = vsel %vm33_vm0, %v1643_v4, %v1677_v26  ;;  %v3244_v1 = vld [vmem:[%s5003_s2 + $0x3] ss:$0 sm:$0xff] }
 0x3c5   :  { %v1637_v34 = vsel %vm337_vm15, %v1633_v18, %v1597_v29 }
 0x3c6   :  { %v1641_v43 = vsel %vm342_vm2, %v1637_v34, %v1613_v32 }
 0x3c7   :  { %3079 = vmatmul.msk.f32.gmra.mxu3 %vm511_vm4, %v1641_v43 }
 0x3c9   :  { %v1707_v21 = vpop.permute.xlu1 %1706 }
 0x3cb   :  { %v1675_v54 = vpop.permute.xlu0 %1674  ;;  %v1725_v60 = vpop.permute.xlu2 %1724 }
 0x3cc   :  { %v1766_v38 = vsel %vm33_vm0, %v1642_v61, %v1675_v54 }
 0x3cd   :  { %v1770_v50 = vsel %vm44_vm12, %v1766_v38, %v1691_v42 }
 0x3ce   :  { %v1774_v51 = vsel %vm327_vm13, %v1770_v50, %v1707_v21 }
 0x3d1   :  { %v1755_v41 = vpop.permute.xlu1 %1754 }
 0x3d3   :  { %v1723_v23 = vpop.permute.xlu0 %1722  ;;  %v1679_v58 = vpop.permute.xlu2 %1678 }
 0x3d4   :  { %v1778_v16 = vsel %vm332_vm14, %v1774_v51, %v1723_v23  ;;  %v1768_v48 = vsel %vm33_vm0, %v1644_v3, %v1679_v58 }
 0x3d5   :  { %v1782_v14 = vsel %vm337_vm15, %v1778_v16, %v1739_v36 }
 0x3d6   :  { %v1786_v28 = vsel %vm342_vm2, %v1782_v14, %v1755_v41 }
 0x3d7   :  { %3080 = vmatmul.msk.f32.gmra.mxu3 %vm511_vm4, %v1786_v28  ;;  %v2181_v28 = vld [vmem:[%s5006_s3 + $0x90] sm:$0xff] }
 0x3d9   :  { %v1709_v15 = vpop.permute.xlu1 %1708 }
 0x3db   :  { %v1693_v22 = vpop.permute.xlu0 %1692  ;;  %v1727_v49 = vpop.permute.xlu2 %1726 }
 0x3dc   :  { %v1771_v9 = vsel %vm44_vm12, %v1767_v46, %v1693_v22 }
 0x3dd   :  { %v1775_v40 = vsel %vm327_vm13, %v1771_v9, %v1709_v15  ;;  %v2179_v15 = vld [vmem:[%s5006_s3 + $0x80] sm:$0xff] }
 0x3de   :  { %v1779_v59 = vsel %vm332_vm14, %v1775_v40, %v1725_v60  ;;  %v2180_v60 = vld [vmem:[%s5006_s3 + $0x88] sm:$0xff] }
 0x3e1   :  { %v1757_v53 = vpop.permute.xlu1 %1756 }
 0x3e3   :  { %v1741_v62 = vpop.permute.xlu0 %1740  ;;  %v1681_v30 = vpop.permute.xlu2 %1680 }
 0x3e4   :  { %v1783_v44 = vsel %vm337_vm15, %v1779_v59, %v1741_v62  ;;  %v1769_v13 = vsel %vm33_vm0, %v1645_v37, %v1681_v30 }
 0x3e5   :  { %v1787_v39 = vsel %vm342_vm2, %v1783_v44, %v1757_v53 }
 0x3e6   :  { %3081 = vmatmul.msk.f32.gmra.mxu3 %vm511_vm4, %v1787_v39 }
 0x3e9   :  { %v1711_v56 = vpop.permute.xlu1 %1710 }
 0x3eb   :  { %v1695_v17 = vpop.permute.xlu0 %1694  ;;  %v1729_v0 = vpop.permute.xlu2 %1728 }
 0x3ec   :  { %v1772_v19 = vsel %vm44_vm12, %v1768_v48, %v1695_v17 }
 0x3ed   :  { %v1776_v11 = vsel %vm327_vm13, %v1772_v19, %v1711_v56 }
 0x3ee   :  { %v1780_v12 = vsel %vm332_vm14, %v1776_v11, %v1727_v49 }
 0x3f1   :  { %v1759_v47 = vpop.permute.xlu1 %1758 }
 0x3f3   :  { %v1743_v8 = vpop.permute.xlu0 %1742 }
 0x3f4   :  { %v1784_v57 = vsel %vm337_vm15, %v1780_v12, %v1743_v8 }
 0x3f5   :  { %v1788_v29 = vsel %vm342_vm2, %v1784_v57, %v1759_v47 }
 0x3f6   :  { %3082 = vmatmul.msk.f32.gmra.mxu3 %vm511_vm4, %v1788_v29 }
 0x3f9   :  { %v1713_v10 = vpop.permute.xlu1 %1712 }
 0x3fb   :  { %v1697_v33 = vpop.permute.xlu0 %1696 }
 0x3fc   :  { %v1773_v2 = vsel %vm44_vm12, %v1769_v13, %v1697_v33 }
 0x3fd   :  { %v1777_v52 = vsel %vm327_vm13, %v1773_v2, %v1713_v10  ;;  %vm1960_vm13 = vcmask 162816  }
 0x3fe   :  { %v1781_v24 = vsel %vm332_vm14, %v1777_v52, %v1729_v0 }
 0x401   :  { %v1761_v42 = vpop.permute.xlu1 %1760 }
 0x403   :  { %v1745_v25 = vpop.permute.xlu0 %1744 }
 0x404   :  { %v1785_v27 = vsel %vm337_vm15, %v1781_v24, %v1745_v25  ;;  %vm1976_vm15 = vcmask 254080  }
 0x405   :  { %v1789_v32 = vsel %vm342_vm2, %v1785_v27, %v1761_v42 }
 0x406   :  { %3083 = vmatmul.msk.f32.gmra.mxu3 %vm511_vm4, %v1789_v32  ;;  %vm1979_vm4 = vcmask 253952  }
 0x418   :  { %v1848_v45 = vpop.f32.mrf.mxu3 }
 0x419   :  { %v1849_v18 = vadd.f32 %v3244_v1, %v1848_v45 }
 0x41b   :  { %1872 = vst.msk [vmem:[%s5005_s8] sm:$0xff] %vm159_vm1, %v1849_v18  ;;  %v1880_v34 = vadd.f32 %v1849_v18, %v4335_v7 }
 0x41d   :  { %1920 = vrot.lane.b32.xlu0 %v1880_v34, %s3289_s20  ;;  %1896 = vrot.lane.b32.xlu2 %v1880_v34, %s3290_s21 }
 0x428   :  { %v1851_v36 = vpop.f32.mrf.mxu3 }
 0x429   :  { %v1852_v43 = vadd.f32 %v3244_v1, %v1851_v36 }
 0x42b   :  { %1873 = vst.msk [vmem:[%s5005_s8 + $0x8] sm:$0xff] %vm159_vm1, %v1852_v43  ;;  %v1881_v21 = vadd.f32 %v1852_v43, %v4367_v35 }
 0x42d   :  { %1922 = vrot.lane.b32.xlu2 %v1881_v21, %s3289_s20  ;;  %1898 = vrot.lane.b32.xlu1 %v1881_v21, %s3290_s21 }
 0x43a   :  { %v1854_v7 = vpop.f32.mrf.mxu3 }
 0x43b   :  { %v1855_v54 = vadd.f32 %v3244_v1, %v1854_v7 }
 0x43d   :  { %1874 = vst.msk [vmem:[%s5005_s8 + $0x10] sm:$0xff] %vm159_vm1, %v1855_v54  ;;  %v1882_v61 = vadd.f32 %v1855_v54, %v4383_v31 }
 0x43f   :  { %1924 = vrot.lane.b32.xlu1 %v1882_v61, %s3289_s20  ;;  %1900 = vrot.lane.b32.xlu0 %v1882_v61, %s3290_s21 }
 0x44a   :  { %v1857_v38 = vpop.f32.mrf.mxu3 }
 0x44b   :  { %v1858_v26 = vadd.f32 %v3244_v1, %v1857_v38 }
 0x44d   :  { %1875 = vst.msk [vmem:[%s5005_s8 + $0x18] sm:$0xff] %vm159_vm1, %v1858_v26  ;;  %v1883_v35 = vadd.f32 %v1858_v26, %v4404_v63 }
 0x44f   :  { %1926 = vrot.lane.b32.xlu0 %v1883_v35, %s3289_s20  ;;  %1902 = vrot.lane.b32.xlu2 %v1883_v35, %s3290_s21 }
 0x45a   :  { %v1860_v50 = vpop.f32.mrf.mxu3 }
 0x45b   :  { %v1861_v41 = vadd.f32 %v3244_v1, %v1860_v50 }
 0x45d   :  { %1876 = vst.msk [vmem:[%s5005_s8 + $0x20] sm:$0xff] %vm159_vm1, %v1861_v41  ;;  %v1884_v31 = vadd.f32 %v1861_v41, %v3986_v5 }
 0x45f   :  { %1928 = vrot.lane.b32.xlu2 %v1884_v31, %s3289_s20  ;;  %1904 = vrot.lane.b32.xlu1 %v1884_v31, %s3290_s21 }
 0x469   :  { %v1863_v51 = vpop.f32.mrf.mxu3 }
 0x46a   :  { %v1864_v23 = vadd.f32 %v3244_v1, %v1863_v51 }
 0x46c   :  { %1877 = vst.msk [vmem:[%s5005_s8 + $0x28] sm:$0xff] %vm159_vm1, %v1864_v23  ;;  %v1885_v63 = vadd.f32 %v1864_v23, %v4001_v6  ;;  %v2182_v6 = vld [vmem:[%s5006_s3 + $0x98] sm:$0xff] }
 0x46d   :  { %2262 = vmatpush.msrb.mxu1 %v2182_v6  ;;  %v2178_v23 = vld [vmem:[%s5006_s3 + $0x78] sm:$0xff] }
 0x46e   :  { %1930 = vrot.lane.b32.xlu1 %v1885_v63, %s3289_s20  ;;  %1906 = vrot.lane.b32.xlu0 %v1885_v63, %s3290_s21  ;;  %v2177_v63 = vld [vmem:[%s5006_s3 + $0x70] sm:$0xff] }
 0x46f   :  { %2263 = vmatpush.msrb.mxu1 %v2181_v28  ;;  %2209 = vmatpush.msrb.mxu0 %v2178_v23 }
 0x471   :  { %2264 = vmatpush.msrb.mxu1 %v2180_v60  ;;  %2210 = vmatpush.msrb.mxu0 %v2177_v63  ;;  %v2175_v60 = vld [vmem:[%s5006_s3 + $0x60] sm:$0xff] }
 0x473   :  { %2265 = vmatpush.msrb.mxu1 %v2179_v15 }
 0x477   :  { %v1897_v22 = vpop.permute.xlu2 %1896 }
 0x478   :  { %v1944_v46 = vsel %vm159_vm1, %v1897_v22, 0.0  ;;  %v2173_v22 = vld [vmem:[%s5006_s3 + $0x50] sm:$0xff] }
 0x479   :  { %v1866_v16 = vpop.f32.mrf.mxu3 }
 0x47a   :  { %v1867_v14 = vadd.f32 %v3244_v1, %v1866_v16 }
 0x47c   :  { %1878 = vst.msk [vmem:[%s5005_s8 + $0x30] sm:$0xff] %vm159_vm1, %v1867_v14  ;;  %v1886_v5 = vadd.f32 %v1867_v14, %v4029_v20 }
 0x47e   :  { %1932 = vrot.lane.b32.xlu0 %v1886_v5, %s3289_s20  ;;  %1908 = vrot.lane.b32.xlu2 %v1886_v5, %s3290_s21  ;;  %v2176_v5 = vld [vmem:[%s5006_s3 + $0x68] sm:$0xff] }
 0x47f   :  { %2211 = vmatpush.msrb.mxu0 %v2176_v5 }
 0x481   :  { %2212 = vmatpush.msrb.mxu0 %v2175_v60 }
 0x487   :  { %v1923_v3 = vpop.permute.xlu2 %1922 }
 0x489   :  { %v1869_v4 = vpop.f32.mrf.mxu3 }
 0x48a   :  { %v1870_v20 = vadd.f32 %v3244_v1, %v1869_v4 }
 0x48c   :  { %1879 = vst.msk [vmem:[%s5005_s8 + $0x38] sm:$0xff] %vm159_vm1, %v1870_v20  ;;  %v1887_v17 = vadd.f32 %v1870_v20, %v4068_v55  ;;  %v2174_v20 = vld [vmem:[%s5006_s3 + $0x58] sm:$0xff] }
 0x48d   :  { %2213 = vmatpush.msrb.mxu0 %v2174_v20 }
 0x48f   :  { %v1921_v9 = vpop.permute.xlu0 %1920  ;;  %2214 = vmatpush.msrb.mxu0 %v2173_v22 }
 0x490   :  { %v1952_v40 = vsel %vm33_vm0, %v1944_v46, %v1921_v9  ;;  %v2172_v46 = vld [vmem:[%s5006_s3 + $0x48] sm:$0xff]  ;;  %v2171_v9 = vld [vmem:[%s5006_s3 + $0x40] sm:$0xff] }
 0x491   :  { %v1961_v53 = vsel %vm1960_vm13, %v1952_v40, 0.0  ;;  %2215 = vmatpush.msrb.mxu0 %v2172_v46 }
 0x492   :  { %1969 = vst.msk [vmem:[#allocation3 + $0x2] sm:$0xff] %vm44_vm12, %v1961_v53 }
 0x493   :  { %2216 = vmatpush.msrb.mxu0 %v2171_v9 }
 0x499   :  { %v1973_v59 = vld [vmem:[#allocation3 + $0x3] sm:$0x1]  ;;  %v1975_v62 = vld [vmem:[#allocation3 + $0x2] sm:$0x1] }
 0x49a   :  { %v1978_v58 = vld [vmem:[#allocation3 + $0x3] sm:$0x1]  ;;  %1974 = vst.msk [vmem:[#allocation3 + $0x1] sm:$0x1] %vm165_vm3, %v1973_v59 }
 0x49b   :  { %v2011_v44 = vld [vmem:[#allocation3 + $0x2] sm:$0xff]  ;;  %1977 = vst.msk [vmem:[#allocation3 + $0x1] sm:$0x1] %vm1976_vm15, %v1975_v62 }
 0x49c   :  { %2043 = vrot.lane.b32.xlu2 %v2011_v44, %s3285_s6  ;;  %1980 = vst.msk [vmem:[#allocation3] sm:$0x1] %vm1979_vm4, %v1978_v58  ;;  %v2170_v62 = vld [vmem:[%s5006_s3 + $0x38] sm:$0xff] }
 0x49d   :  { %2217 = vmatpush.msrb.mxu0 %v2170_v62 }
 0x49f   :  { %v1899_v39 = vpop.permute.xlu1 %1898 }
 0x4a0   :  { %v1945_v56 = vsel %vm159_vm1, %v1899_v39, 0.0 }
 0x4a1   :  { %v1953_v48 = vsel %vm33_vm0, %v1945_v56, %v1923_v3 }
 0x4a2   :  { %v1962_v19 = vsel %vm1960_vm13, %v1953_v48, 0.0  ;;  %v2007_v49 = vld [vmem:[#allocation3 + $0x1] sm:$0xff] }
 0x4a3   :  { %1970 = vst.msk [vmem:[#allocation3 + $0xa] sm:$0xff] %vm44_vm12, %v1962_v19  ;;  %v2169_v48 = vld [vmem:[%s5006_s3 + $0x30] sm:$0xff]  ;;  %v2168_v19 = vld [vmem:[%s5006_s3 + $0x28] sm:$0xff] }
 0x4a4   :  { %1934 = vrot.lane.b32.xlu2 %v1887_v17, %s3289_s20  ;;  %2218 = vmatpush.msrb.mxu0 %v2169_v48 }
 0x4a6   :  { %2219 = vmatpush.msrb.mxu0 %v2168_v19 }
 0x4a9   :  { %v1903_v0 = vpop.permute.xlu2 %1902 }
 0x4aa   :  { %v2019_v11 = vld [vmem:[#allocation3 + $0x4] sm:$0xff]  ;;  %v1947_v42 = vsel %vm159_vm1, %v1903_v0, 0.0 }
 0x4ab   :  { %v2015_v47 = vld [vmem:[#allocation3 + $0x3] sm:$0xff]  ;;  %3084 = vmatmul.msk.f32.vlgmr.msrb.gmra.mxu1 %vm44_vm12, %v2019_v11 }
 0x4ac   :  { %v2008_v12 = vld [vmem:[#allocation3 + $0x9] sm:$0xff]  ;;  %2059 = vrot.lane.b32.xlu0 %v2015_v47, %s3286_s29 }
 0x4ad   :  { %v3189_v8 = vpack.i.bf16 %v2008_v12, %v2007_v49  ;;  %v2012_v37 = vld [vmem:[#allocation3 + $0xa] sm:$0xff] }
 0x4af   :  { %3190 = vrot.lane.b32.xlu1 %v3189_v8, %s3287_s30  ;;  %v2167_v8 = vld [vmem:[%s5006_s3 + $0x20] sm:$0xff] }
 0x4b0   :  { %2220 = vmatpush.msrb.mxu0 %v2167_v8 }
 0x4b1   :  { %v1925_v55 = vpop.permute.xlu1 %1924  ;;  %v1901_v57 = vpop.permute.xlu0 %1900 }
 0x4b2   :  { %v1946_v29 = vsel %vm159_vm1, %v1901_v57, 0.0  ;;  %v2165_v57 = vld [vmem:[%s5006_s3 + $0x10] sm:$0xff] }
 0x4b3   :  { %v1954_v30 = vsel %vm33_vm0, %v1946_v29, %v1925_v55  ;;  %v2166_v55 = vld [vmem:[%s5006_s3 + $0x18] sm:$0xff]  ;;  %v2164_v29 = vld [vmem:[%s5006_s3 + $0x8] sm:$0xff] }
 0x4b4   :  { %v1963_v10 = vsel %vm1960_vm13, %v1954_v30, 0.0  ;;  %2045 = vrot.lane.b32.xlu0 %v2012_v37, %s3285_s6  ;;  %2221 = vmatpush.msrb.mxu0 %v2166_v55  ;;  %v2163_v30 = vld [vmem:[%s5006_s3] sm:$0xff] }
 0x4b5   :  { %1971 = vst.msk [vmem:[#allocation3 + $0x12] sm:$0xff] %vm44_vm12, %v1963_v10 }
 0x4b6   :  { %2222 = vmatpush.msrb.mxu0 %v2165_v57 }
 0x4b7   :  { %1910 = vrot.lane.b32.xlu1 %v1887_v17, %s3290_s21 }
 0x4b8   :  { %2223 = vmatpush.msrb.mxu0 %v2164_v29  ;;  %v3111_v29 = vld [vmem:[%s5006_s3 + $0x138] sm:$0xff] }
 0x4b9   :  { %v1929_v7 = vpop.permute.xlu2 %1928  ;;  %2615 = vmatpush.msra.mxu3 %v3111_v29 }
 0x4ba   :  { %2224 = vmatpush.msrb.mxu0 %v2163_v30 }
 0x4bc   :  { %v2020_v33 = vld [vmem:[#allocation3 + $0xc] sm:$0xff] }
 0x4bd   :  { %v2013_v13 = vld [vmem:[#allocation3 + $0x12] sm:$0xff]  ;;  %3085 = vmatmul.msk.f32.gmra.mxu1 %vm44_vm12, %v2020_v33 }
 0x4be   :  { %v2009_v2 = vld [vmem:[#allocation3 + $0x11] sm:$0xff]  ;;  %2047 = vrot.lane.b32.xlu0 %v2013_v13, %s3285_s6  ;;  %v2003_v13 = vld [vmem:[#allocation3] sm:$0xff] }
 0x4bf   :  { %v2016_v52 = vld [vmem:[#allocation3 + $0xb] sm:$0xff]  ;;  %2031 = vrot.lane.b32.xlu2 %v2009_v2, %s3287_s30 }
 0x4c0   :  { %2061 = vrot.lane.b32.xlu1 %v2016_v52, %s3286_s29  ;;  %v2005_v63 = vld [vmem:[#allocation3 + $0x10] sm:$0xff] }
 0x4c1   :  { %v1927_v24 = vpop.permute.xlu0 %1926 }
 0x4c2   :  { %v1955_v25 = vsel %vm33_vm0, %v1947_v42, %v1927_v24 }
 0x4c3   :  { %v1964_v27 = vsel %vm1960_vm13, %v1955_v25, 0.0 }
 0x4c4   :  { %1972 = vst.msk [vmem:[#allocation3 + $0x1a] sm:$0xff] %vm44_vm12, %v1964_v27 }
 0x4cb   :  { %v1981_v32 = vld [vmem:[#allocation3 + $0x21] sm:$0x1]  ;;  %v1983_v1 = vld [vmem:[#allocation3 + $0x20] sm:$0x1]  ;;  %v2021_v18 = vld [vmem:[#allocation3 + $0x14] sm:$0xff] }
 0x4cc   :  { %v1985_v45 = vld [vmem:[#allocation3 + $0x20] sm:$0x1]  ;;  %1982 = vst.msk [vmem:[#allocation3 + $0x22] sm:$0x1] %vm165_vm3, %v1981_v32  ;;  %v2017_v34 = vld [vmem:[#allocation3 + $0x13] sm:$0xff]  ;;  %3086 = vmatmul.msk.f32.gmra.mxu1 %vm44_vm12, %v2021_v18 }
 0x4cd   :  { %v2014_v36 = vld [vmem:[#allocation3 + $0x1a] sm:$0xff]  ;;  %1984 = vst.msk [vmem:[#allocation3 + $0x22] sm:$0x1] %vm1976_vm15, %v1983_v1  ;;  %2063 = vrot.lane.b32.xlu1 %v2017_v34, %s3286_s29  ;;  %v2004_v34 = vld [vmem:[#allocation3 + $0x8] sm:$0xff] }
 0x4ce   :  { %v2010_v43 = vld [vmem:[#allocation3 + $0x19] sm:$0xff]  ;;  %1986 = vst.msk [vmem:[#allocation3 + $0x23] sm:$0x1] %vm1979_vm4, %v1985_v45  ;;  %2049 = vrot.lane.b32.xlu0 %v2014_v36, %s3285_s6 }
 0x4cf   :  { %2033 = vrot.lane.b32.xlu2 %v2010_v43, %s3287_s30  ;;  %v2006_v20 = vld [vmem:[#allocation3 + $0x18] sm:$0xff] }
 0x4d1   :  { %v1905_v21 = vpop.permute.xlu1 %1904 }
 0x4d2   :  { %v1948_v54 = vsel %vm159_vm1, %v1905_v21, 0.0 }
 0x4d3   :  { %v1956_v61 = vsel %vm33_vm0, %v1948_v54, %v1929_v7 }
 0x4d4   :  { %v1965_v38 = vsel %vm1960_vm13, %v1956_v61, 0.0  ;;  %v2018_v26 = vld [vmem:[#allocation3 + $0x1b] sm:$0xff] }
 0x4d5   :  { %1987 = vst.msk [vmem:[#allocation3 + $0x2a] sm:$0xff] %vm44_vm12, %v1965_v38  ;;  %v2022_v35 = vld [vmem:[#allocation3 + $0x1c] sm:$0xff]  ;;  %2065 = vrot.lane.b32.xlu1 %v2018_v26, %s3286_s29 }
 0x4d6   :  { %3087 = vmatmul.msk.f32.gmra.mxu1 %vm44_vm12, %v2022_v35 }
 0x4d8   :  { %v1909_v58 = vpop.permute.xlu2 %1908 }
 0x4d9   :  { %v1950_v39 = vsel %vm159_vm1, %v1909_v58, 0.0 }
 0x4dc   :  { %v1991_v50 = vld [vmem:[#allocation3 + $0x2b] sm:$0x1]  ;;  %v1993_v41 = vld [vmem:[#allocation3 + $0x2a] sm:$0x1] }
 0x4dd   :  { %v1995_v31 = vld [vmem:[#allocation3 + $0x2b] sm:$0x1]  ;;  %1992 = vst.msk [vmem:[#allocation3 + $0x29] sm:$0x1] %vm165_vm3, %v1991_v50 }
 0x4de   :  { %v2091_v51 = vld [vmem:[#allocation3 + $0x2a] sm:$0xff]  ;;  %1994 = vst.msk [vmem:[#allocation3 + $0x29] sm:$0x1] %vm1976_vm15, %v1993_v41 }
 0x4df   :  { %2123 = vrot.lane.b32.xlu0 %v2091_v51, %s3285_s6  ;;  %1996 = vst.msk [vmem:[#allocation3 + $0x28] sm:$0x1] %vm1979_vm4, %v1995_v31 }
 0x4e0   :  { %v1931_v16 = vpop.permute.xlu1 %1930  ;;  %v1907_v14 = vpop.permute.xlu0 %1906 }
 0x4e1   :  { %v1949_v6 = vsel %vm159_vm1, %v1907_v14, 0.0 }
 0x4e2   :  { %v1957_v28 = vsel %vm33_vm0, %v1949_v6, %v1931_v16 }
 0x4e3   :  { %v1966_v4 = vsel %vm1960_vm13, %v1957_v28, 0.0 }
 0x4e4   :  { %1988 = vst.msk [vmem:[#allocation3 + $0x32] sm:$0xff] %vm44_vm12, %v1966_v4 }
 0x4e5   :  { %v2087_v15 = vld [vmem:[#allocation3 + $0x29] sm:$0xff] }
 0x4e6   :  { %2107 = vrot.lane.b32.xlu2 %v2087_v15, %s3287_s30 }
 0x4eb   :  { %v2099_v40 = vld [vmem:[#allocation3 + $0x2c] sm:$0xff] }
 0x4ec   :  { %v2095_v53 = vld [vmem:[#allocation3 + $0x2b] sm:$0xff]  ;;  %3088 = vmatmul.msk.f32.gmra.mxu1 %vm44_vm12, %v2099_v40 }
 0x4ed   :  { %v2092_v59 = vld [vmem:[#allocation3 + $0x32] sm:$0xff]  ;;  %2139 = vrot.lane.b32.xlu1 %v2095_v53, %s3286_s29 }
 0x4ee   :  { %2125 = vrot.lane.b32.xlu0 %v2092_v59, %s3285_s6  ;;  %v2088_v44 = vld [vmem:[#allocation3 + $0x31] sm:$0xff]  ;;  %v2083_v59 = vld [vmem:[#allocation3 + $0x28] sm:$0xff] }
 0x4ef   :  { %2109 = vrot.lane.b32.xlu2 %v2088_v44, %s3287_s30 }
 0x4f0   :  { %v1933_v3 = vpop.permute.xlu0 %1932 }
 0x4f1   :  { %v1958_v56 = vsel %vm33_vm0, %v1950_v39, %v1933_v3 }
 0x4f2   :  { %v1967_v17 = vsel %vm1960_vm13, %v1958_v56, 0.0 }
 0x4f3   :  { %1989 = vst.msk [vmem:[#allocation3 + $0x3a] sm:$0xff] %vm44_vm12, %v1967_v17  ;;  %v2084_v17 = vld [vmem:[#allocation3 + $0x30] sm:$0xff] }
 0x4f6   :  { %v2044_v37 = vpop.permute.xlu2 %2043 }
 0x4fa   :  { %v2100_v49 = vld [vmem:[#allocation3 + $0x34] sm:$0xff] }
 0x4fb   :  { %v2096_v11 = vld [vmem:[#allocation3 + $0x33] sm:$0xff]  ;;  %3089 = vmatmul.msk.f32.gmra.mxu1 %vm44_vm12, %v2100_v49 }
 0x4fc   :  { %v2093_v47 = vld [vmem:[#allocation3 + $0x3a] sm:$0xff]  ;;  %2141 = vrot.lane.b32.xlu1 %v2096_v11, %s3286_s29 }
 0x4fd   :  { %v2089_v12 = vld [vmem:[#allocation3 + $0x39] sm:$0xff]  ;;  %2127 = vrot.lane.b32.xlu0 %v2093_v47, %s3285_s6  ;;  %v4672_v47 = vld [vmem:[%s5007_s4] ss:$0 sm:$0xff] }
 0x4fe   :  { %2111 = vrot.lane.b32.xlu2 %v2089_v12, %s3287_s30  ;;  %v1935_v25 = vpop.permute.xlu2 %1934 }
 0x519   :  { %v2032_v31 = vpop.permute.xlu2 %2031 }
 0x51a   :  { %v2073_v14 = vsel %vm44_vm12, %v2005_v63, %v2032_v31 }
 0x51e   :  { %v2060_v2 = vpop.permute.xlu0 %2059 }
 0x521   :  { %v3191_v10 = vpop.permute.xlu1 %3190 }
 0x522   :  { %v3192_v33 = vunpack.i.l.bf16 %v3191_v10  ;;  %v3193_v1 = vunpack.i.h.bf16 %v3191_v10 }
 0x524   :  { %v2071_v52 = vsel %vm44_vm12, %v2003_v13, %v3192_v33  ;;  %v2072_v36 = vsel %vm44_vm12, %v2004_v34, %v3193_v1  ;;  %v3110_v13 = vld [vmem:[%s5006_s3 + $0x130] sm:$0xff] }
 0x525   :  { %v2075_v0 = vsel %vm332_vm14, %v2071_v52, %v2044_v37  ;;  %v2085_v37 = vld [vmem:[#allocation3 + $0x38] sm:$0xff]  ;;  %2616 = vmatpush.msra.mxu3 %v3110_v13  ;;  %v3107_v13 = vld [vmem:[%s5006_s3 + $0x118] sm:$0xff] }
 0x526   :  { %v2079_v42 = vsel %vm342_vm2, %v2075_v0, %v2060_v2  ;;  %v2046_v18 = vpop.permute.xlu0 %2045  ;;  %2562 = vmatpush.msra.mxu2 %v3107_v13 }
 0x527   :  { %2225 = vmatmul.f32.vlgmr.msrb.gmra.mxu0 %v2079_v42  ;;  %v2076_v43 = vsel %vm332_vm14, %v2072_v36, %v2046_v18  ;;  %v3109_v42 = vld [vmem:[%s5006_s3 + $0x128] sm:$0xff] }
 0x528   :  { %v2267_v30 = vpop.f32.mrf.mxu1  ;;  %2617 = vmatpush.msra.mxu3 %v3109_v42 }
 0x529   :  { %v1911_v24 = vpop.permute.xlu1 %1910  ;;  %v2034_v60 = vpop.permute.xlu2 %2033 }
 0x52a   :  { %v1951_v27 = vsel %vm159_vm1, %v1911_v24, 0.0  ;;  %v2074_v15 = vsel %vm44_vm12, %v2006_v20, %v2034_v60  ;;  %v3108_v24 = vld [vmem:[%s5006_s3 + $0x120] sm:$0xff] }
 0x52b   :  { %v1959_v32 = vsel %vm33_vm0, %v1951_v27, %v1935_v25  ;;  %2618 = vmatpush.msra.mxu3 %v3108_v24 }
 0x52c   :  { %v1968_v45 = vsel %vm1960_vm13, %v1959_v32, 0.0 }
 0x52d   :  { %1990 = vst.msk [vmem:[#allocation3 + $0x42] sm:$0xff] %vm44_vm12, %v1968_v45 }
 0x530   :  { %v2048_v51 = vpop.permute.xlu0 %2047 }
 0x531   :  { %v2077_v5 = vsel %vm332_vm14, %v2073_v14, %v2048_v51 }
 0x532   :  { %v2062_v21 = vpop.permute.xlu1 %2061 }
 0x533   :  { %v2080_v7 = vsel %vm342_vm2, %v2076_v43, %v2062_v21 }
 0x534   :  { %2228 = vmatmul.f32.gmra.mxu0 %v2080_v7  ;;  %v1997_v54 = vld [vmem:[#allocation3 + $0x49] sm:$0x1]  ;;  %v1999_v61 = vld [vmem:[#allocation3 + $0x48] sm:$0x1]  ;;  %v2101_v26 = vld [vmem:[#allocation3 + $0x3c] sm:$0xff] }
 0x535   :  { %v2001_v38 = vld [vmem:[#allocation3 + $0x48] sm:$0x1]  ;;  %1998 = vst.msk [vmem:[#allocation3 + $0x4a] sm:$0x1] %vm165_vm3, %v1997_v54  ;;  %v2097_v35 = vld [vmem:[#allocation3 + $0x3b] sm:$0xff]  ;;  %3090 = vmatmul.msk.f32.gmra.mxu1 %vm44_vm12, %v2101_v26 }
 0x536   :  { %v2094_v50 = vld [vmem:[#allocation3 + $0x42] sm:$0xff]  ;;  %2000 = vst.msk [vmem:[#allocation3 + $0x4a] sm:$0x1] %vm1976_vm15, %v1999_v61  ;;  %2143 = vrot.lane.b32.xlu1 %v2097_v35, %s3286_s29 }
 0x537   :  { %v2090_v41 = vld [vmem:[#allocation3 + $0x41] sm:$0xff]  ;;  %2002 = vst.msk [vmem:[#allocation3 + $0x4b] sm:$0x1] %vm1979_vm4, %v2001_v38  ;;  %2129 = vrot.lane.b32.xlu0 %v2094_v50, %s3285_s6 }
 0x538   :  { %2113 = vrot.lane.b32.xlu2 %v2090_v41, %s3287_s30  ;;  %v2086_v32 = vld [vmem:[#allocation3 + $0x40] sm:$0xff] }
 0x53a   :  { %v2270_v54 = vpop.f32.mrf.mxu1 }
 0x53d   :  { %v2098_v23 = vld [vmem:[#allocation3 + $0x43] sm:$0xff] }
 0x53e   :  { %v2102_v16 = vld [vmem:[#allocation3 + $0x44] sm:$0xff]  ;;  %2145 = vrot.lane.b32.xlu1 %v2098_v23, %s3286_s29 }
 0x53f   :  { %3091 = vmatmul.msk.f32.gmra.mxu1 %vm44_vm12, %v2102_v16  ;;  %v2064_v6 = vpop.permute.xlu1 %2063 }
 0x540   :  { %v2081_v28 = vsel %vm342_vm2, %v2077_v5, %v2064_v6  ;;  %v2050_v4 = vpop.permute.xlu0 %2049  ;;  %v2108_v40 = vpop.permute.xlu2 %2107 }
 0x541   :  { %2231 = vmatmul.f32.gmra.mxu0 %v2081_v28  ;;  %v2078_v22 = vsel %vm332_vm14, %v2074_v15, %v2050_v4  ;;  %v2151_v62 = vsel %vm44_vm12, %v2083_v59, %v2108_v40 }
 0x547   :  { %v2066_v46 = vpop.permute.xlu1 %2065 }
 0x548   :  { %v2082_v9 = vsel %vm342_vm2, %v2078_v22, %v2066_v46 }
 0x549   :  { %2234 = vmatmul.f32.gmra.mxu0 %v2082_v9  ;;  %v2110_v3 = vpop.permute.xlu2 %2109  ;;  %v2273_v23 = vpop.f32.mrf.mxu1 }
 0x54a   :  { %v2152_v48 = vsel %vm44_vm12, %v2084_v17, %v2110_v3 }
 0x551   :  { %v2124_v53 = vpop.permute.xlu0 %2123 }
 0x552   :  { %v2155_v58 = vsel %vm332_vm14, %v2151_v62, %v2124_v53 }
 0x553   :  { %v2276_v40 = vpop.f32.mrf.mxu1 }
 0x558   :  { %v2112_v12 = vpop.permute.xlu2 %2111 }
 0x559   :  { %v2153_v10 = vsel %vm44_vm12, %v2085_v37, %v2112_v12 }
 0x55f   :  { %v2140_v44 = vpop.permute.xlu1 %2139 }
 0x560   :  { %v2159_v39 = vsel %vm342_vm2, %v2155_v58, %v2140_v44  ;;  %v2126_v56 = vpop.permute.xlu0 %2125 }
 0x561   :  { %2237 = vmatmul.f32.gmra.mxu0 %v2159_v39  ;;  %v2156_v19 = vsel %vm332_vm14, %v2152_v48, %v2126_v56 }
 0x56e   :  { %v2142_v49 = vpop.permute.xlu1 %2141 }
 0x56f   :  { %v2160_v11 = vsel %vm342_vm2, %v2156_v19, %v2142_v49  ;;  %v2128_v55 = vpop.permute.xlu0 %2127 }
 0x570   :  { %2240 = vmatmul.f32.gmra.mxu0 %v2160_v11  ;;  %v2157_v2 = vsel %vm332_vm14, %v2153_v10, %v2128_v55  ;;  %v2279_v10 = vpop.f32.mrf.mxu1 }
 0x592   :  { %v2114_v25 = vpop.permute.xlu2 %2113 }
 0x593   :  { %v2154_v45 = vsel %vm44_vm12, %v2086_v32, %v2114_v25 }
 0x5a4   :  { %v2226_v8 = vpop.f32.mrf.mxu0 }
 0x5a5   :  { %v2227_v57 = vadd.f32 %v4672_v47, %v2226_v8 }
 0x5a7   :  { %v2268_v33 = vadd.f32 %v2267_v30, %v2227_v57 }
 0x5a8   :  { %v2144_v52 = vpop.permute.xlu1 %2143 }
 0x5a9   :  { %3264 = vtanh.f32 %v2268_v33  ;;  %v2161_v0 = vsel %vm342_vm2, %v2157_v2, %v2144_v52  ;;  %v2130_v27 = vpop.permute.xlu0 %2129  ;;  %v3106_v2 = vld [vmem:[%s5006_s3 + $0x110] sm:$0xff] }
 0x5aa   :  { %2243 = vmatmul.f32.gmra.mxu0 %v2161_v0  ;;  %v2158_v34 = vsel %vm332_vm14, %v2154_v45, %v2130_v27  ;;  %2563 = vmatpush.msra.mxu2 %v3106_v2  ;;  %v2282_v45 = vpop.f32.mrf.mxu1 }
 0x5af   :  { %v3265_v1 = vpop.eup %3264 }
 0x5b0   :  { %vm2299_vm0 = vcmp.ge.f32.partialorder %v3265_v1, 0.0  ;;  %v2307_v18 = vmul.f32 0.2, %v3265_v1  ;;  %v2146_v36 = vpop.permute.xlu1 %2145 }
 0x5b1   :  { %v2229_v43 = vpop.f32.mrf.mxu0  ;;  %v2162_v7 = vsel %vm342_vm2, %v2158_v34, %v2146_v36 }
 0x5b2   :  { %v2230_v21 = vadd.f32 %v4672_v47, %v2229_v43  ;;  %v2315_v61 = vsel %vm2299_vm0, %v3265_v1, %v2307_v18  ;;  %2246 = vmatmul.f32.gmra.mxu0 %v2162_v7 }
 0x5b3   :  { %2323 = vst.msk [vmem:[#allocation3 + $0x2] sm:$0xff] %vm44_vm12, %v2315_v61 }
 0x5b4   :  { %v2271_v38 = vadd.f32 %v2270_v54, %v2230_v21 }
 0x5b6   :  { %3266 = vtanh.f32 %v2271_v38 }
 0x5ba   :  { %v2327_v26 = vld [vmem:[#allocation3 + $0x3] sm:$0x1]  ;;  %v2329_v35 = vld [vmem:[#allocation3 + $0x2] sm:$0x1] }
 0x5bb   :  { %2328 = vst.msk [vmem:[#allocation3 + $0x1] sm:$0x1] %vm165_vm3, %v2327_v26  ;;  %v2331_v41 = vld [vmem:[#allocation3 + $0x3] sm:$0x1] }
 0x5bc   :  { %v3267_v50 = vpop.eup %3266  ;;  %2330 = vst.msk [vmem:[#allocation3 + $0x1] sm:$0x1] %vm1976_vm15, %v2329_v35  ;;  %v2363_v5 = vld [vmem:[#allocation3 + $0x2] sm:$0xff] }
 0x5bd   :  { %vm2300_vm1 = vcmp.ge.f32.partialorder %v3267_v50, 0.0  ;;  %v2308_v31 = vmul.f32 0.2, %v3267_v50  ;;  %2332 = vst.msk [vmem:[#allocation3] sm:$0x1] %vm1979_vm4, %v2331_v41 }
 0x5be   :  { %v2232_v63 = vpop.f32.mrf.mxu0 }
 0x5bf   :  { %v2316_v51 = vsel %vm2300_vm1, %v3267_v50, %v2308_v31  ;;  %v2233_v16 = vadd.f32 %v4672_v47, %v2232_v63  ;;  %v3105_v31 = vld [vmem:[%s5006_s3 + $0x108] sm:$0xff]  ;;  %v3102_v63 = vld [vmem:[%s5006_s3 + $0xf0] sm:$0xff] }
 0x5c0   :  { %2324 = vst.msk [vmem:[#allocation3 + $0xa] sm:$0xff] %vm44_vm12, %v2316_v51  ;;  %2564 = vmatpush.msra.mxu2 %v3105_v31  ;;  %v3104_v51 = vld [vmem:[%s5006_s3 + $0x100] sm:$0xff] }
 0x5c1   :  { %v2274_v14 = vadd.f32 %v2273_v23, %v2233_v16  ;;  %v3103_v23 = vld [vmem:[%s5006_s3 + $0xf8] sm:$0xff]  ;;  %v3101_v16 = vld [vmem:[%s5006_s3 + $0xe8] sm:$0xff] }
 0x5c2   :  { %2565 = vmatpush.msra.mxu2 %v3104_v51 }
 0x5c3   :  { %3268 = vtanh.f32 %v2274_v14  ;;  %v2359_v15 = vld [vmem:[#allocation3 + $0x1] sm:$0xff]  ;;  %v3100_v14 = vld [vmem:[%s5006_s3 + $0xe0] sm:$0xff] }
 0x5c4   :  { %2566 = vmatpush.msra.mxu2 %v3103_v23 }
 0x5c6   :  { %v2235_v4 = vpop.f32.mrf.mxu0  ;;  %2567 = vmatpush.msra.mxu2 %v3102_v63 }
 0x5c7   :  { %v2371_v6 = vld [vmem:[#allocation3 + $0x4] sm:$0xff]  ;;  %v2236_v46 = vadd.f32 %v4672_v47, %v2235_v4 }
 0x5c8   :  { %v2367_v28 = vld [vmem:[#allocation3 + $0x3] sm:$0xff]  ;;  %3112 = vmatmul.msk.f32.vlgmr.msra.gmra.mxu3 %vm44_vm12, %v2371_v6  ;;  %2568 = vmatpush.msra.mxu2 %v3101_v16 }
 0x5c9   :  { %v2364_v60 = vld [vmem:[#allocation3 + $0xa] sm:$0xff]  ;;  %2411 = vrot.lane.b32.xlu1 %v2367_v28, %s3286_s29  ;;  %v3269_v53 = vpop.eup %3268  ;;  %v2277_v59 = vadd.f32 %v2276_v40, %v2236_v46  ;;  %v3098_v6 = vld [vmem:[%s5006_s3 + $0xd0] sm:$0xff]  ;;  %v3097_v28 = vld [vmem:[%s5006_s3 + $0xc8] sm:$0xff]  ;;  %v2285_v46 = vpop.f32.mrf.mxu1 }
 0x5ca   :  { %v3199_v20 = vpack.i.bf16 %v2364_v60, %v2363_v5  ;;  %v2360_v22 = vld [vmem:[#allocation3 + $0x9] sm:$0xff]  ;;  %vm2301_vm7 = vcmp.ge.f32.partialorder %v3269_v53, 0.0  ;;  %v2309_v62 = vmul.f32 0.2, %v3269_v53  ;;  %2569 = vmatpush.msra.mxu2 %v3100_v14 }
 0x5cb   :  { %v3194_v9 = vpack.i.bf16 %v2360_v22, %v2359_v15  ;;  %3270 = vtanh.f32 %v2277_v59  ;;  %v3099_v5 = vld [vmem:[%s5006_s3 + $0xd8] sm:$0xff]  ;;  %v3096_v60 = vld [vmem:[%s5006_s3 + $0xc0] sm:$0xff]  ;;  %v3093_v15 = vld [vmem:[%s5006_s3 + $0xa8] sm:$0xff] }
 0x5cc   :  { %3200 = vrot.lane.b32.xlu0 %v3199_v20, %s3285_s6  ;;  %v2317_v58 = vsel %vm2301_vm7, %v3269_v53, %v2309_v62  ;;  %2570 = vmatpush.msra.mxu2 %v3099_v5  ;;  %v3095_v4 = vld [vmem:[%s5006_s3 + $0xb8] sm:$0xff]  ;;  %v3094_v20 = vld [vmem:[%s5006_s3 + $0xb0] sm:$0xff]  ;;  %v3092_v22 = vld [vmem:[%s5006_s3 + $0xa0] sm:$0xff] }
 0x5cd   :  { %3195 = vrot.lane.b32.xlu2 %v3194_v9, %s3287_s30  ;;  %2325 = vst.msk [vmem:[#allocation3 + $0x12] sm:$0xff] %vm44_vm12, %v2317_v58 }
 0x5ce   :  { %2571 = vmatpush.msra.mxu2 %v3098_v6 }
 0x5d0   :  { %2572 = vmatpush.msra.mxu2 %v3097_v28 }
 0x5d1   :  { %v3271_v44 = vpop.eup %3270  ;;  %v2288_v58 = vpop.f32.mrf.mxu1 }
 0x5d2   :  { %vm2302_vm8 = vcmp.ge.f32.partialorder %v3271_v44, 0.0  ;;  %v2310_v39 = vmul.f32 0.2, %v3271_v44  ;;  %2573 = vmatpush.msra.mxu2 %v3096_v60 }
 0x5d4   :  { %v2318_v3 = vsel %vm2302_vm8, %v3271_v44, %v2310_v39  ;;  %v2372_v56 = vld [vmem:[#allocation3 + $0xc] sm:$0xff]  ;;  %2574 = vmatpush.msra.mxu2 %v3095_v4 }
 0x5d5   :  { %v2368_v17 = vld [vmem:[#allocation3 + $0xb] sm:$0xff]  ;;  %2326 = vst.msk [vmem:[#allocation3 + $0x1a] sm:$0xff] %vm44_vm12, %v2318_v3  ;;  %3113 = vmatmul.msk.f32.gmra.mxu3 %vm44_vm12, %v2372_v56 }
 0x5d6   :  { %v2365_v48 = vld [vmem:[#allocation3 + $0x12] sm:$0xff]  ;;  %2413 = vrot.lane.b32.xlu2 %v2368_v17, %s3286_s29  ;;  %2575 = vmatpush.msra.mxu2 %v3094_v20 }
 0x5d7   :  { %2399 = vrot.lane.b32.xlu1 %v2365_v48, %s3285_s6  ;;  %v2361_v19 = vld [vmem:[#allocation3 + $0x11] sm:$0xff] }
 0x5d8   :  { %2576 = vmatpush.msra.mxu2 %v3093_v15 }
 0x5da   :  { %2577 = vmatpush.msra.mxu2 %v3092_v22 }
 0x5dc   :  { %v2373_v49 = vld [vmem:[#allocation3 + $0x14] sm:$0xff]  ;;  %v2333_v57 = vld [vmem:[#allocation3 + $0x21] sm:$0x1]  ;;  %v2335_v29 = vld [vmem:[#allocation3 + $0x20] sm:$0x1] }
 0x5dd   :  { %v2369_v11 = vld [vmem:[#allocation3 + $0x13] sm:$0xff]  ;;  %3114 = vmatmul.msk.f32.gmra.mxu3 %vm44_vm12, %v2373_v49  ;;  %v2337_v30 = vld [vmem:[#allocation3 + $0x20] sm:$0x1]  ;;  %2334 = vst.msk [vmem:[#allocation3 + $0x22] sm:$0x1] %vm165_vm3, %v2333_v57 }
 0x5de   :  { %v2362_v12 = vld [vmem:[#allocation3 + $0x19] sm:$0xff]  ;;  %2415 = vrot.lane.b32.xlu2 %v2369_v11, %s3286_s29  ;;  %v2238_v8 = vpop.f32.mrf.mxu0  ;;  %2336 = vst.msk [vmem:[#allocation3 + $0x22] sm:$0x1] %vm1976_vm15, %v2335_v29 }
 0x5df   :  { %v3204_v55 = vpack.i.bf16 %v2362_v12, %v2361_v19  ;;  %v2239_v37 = vadd.f32 %v4672_v47, %v2238_v8  ;;  %2338 = vst.msk [vmem:[#allocation3 + $0x23] sm:$0x1] %vm1979_vm4, %v2337_v30  ;;  %v2366_v0 = vld [vmem:[#allocation3 + $0x1a] sm:$0xff] }
 0x5e0   :  { %v2355_v12 = vld [vmem:[#allocation3] sm:$0xff]  ;;  %v2358_v23 = vld [vmem:[#allocation3 + $0x18] sm:$0xff] }
 0x5e1   :  { %3205 = vrot.lane.b32.xlu0 %v3204_v55, %s3287_s30  ;;  %v2280_v33 = vadd.f32 %v2279_v10, %v2239_v37 }
 0x5e3   :  { %3272 = vtanh.f32 %v2280_v33 }
 0x5e5   :  { %v2370_v52 = vld [vmem:[#allocation3 + $0x1b] sm:$0xff] }
 0x5e6   :  { %v2374_v42 = vld [vmem:[#allocation3 + $0x1c] sm:$0xff]  ;;  %2417 = vrot.lane.b32.xlu1 %v2370_v52, %s3286_s29 }
 0x5e7   :  { %3115 = vmatmul.msk.f32.gmra.mxu3 %vm44_vm12, %v2374_v42 }
 0x5e9   :  { %2401 = vrot.lane.b32.xlu0 %v2366_v0, %s3285_s6  ;;  %v3273_v24 = vpop.eup %3272  ;;  %v2356_v0 = vld [vmem:[#allocation3 + $0x8] sm:$0xff] }
 0x5ea   :  { %vm2303_vm9 = vcmp.ge.f32.partialorder %v3273_v24, 0.0  ;;  %v2311_v25 = vmul.f32 0.2, %v3273_v24 }
 0x5ec   :  { %v2319_v27 = vsel %vm2303_vm9, %v3273_v24, %v2311_v25 }
 0x5ed   :  { %2339 = vst.msk [vmem:[#allocation3 + $0x2a] sm:$0xff] %vm44_vm12, %v2319_v27  ;;  %v2241_v32 = vpop.f32.mrf.mxu0 }
 0x5ee   :  { %v2242_v1 = vadd.f32 %v4672_v47, %v2241_v32 }
 0x5f0   :  { %v2283_v18 = vadd.f32 %v2282_v45, %v2242_v1 }
 0x5f2   :  { %3274 = vtanh.f32 %v2283_v18 }
 0x5f4   :  { %v2443_v34 = vld [vmem:[#allocation3 + $0x2a] sm:$0xff] }
 0x5f5   :  { %v2343_v36 = vld [vmem:[#allocation3 + $0x2b] sm:$0x1]  ;;  %v2345_v43 = vld [vmem:[#allocation3 + $0x2a] sm:$0x1]  ;;  %2475 = vrot.lane.b32.xlu0 %v2443_v34, %s3285_s6 }
 0x5f6   :  { %2344 = vst.msk [vmem:[#allocation3 + $0x29] sm:$0x1] %vm165_vm3, %v2343_v36  ;;  %v2347_v21 = vld [vmem:[#allocation3 + $0x2b] sm:$0x1] }
 0x5f7   :  { %2346 = vst.msk [vmem:[#allocation3 + $0x29] sm:$0x1] %vm1976_vm15, %v2345_v43 }
 0x5f8   :  { %2348 = vst.msk [vmem:[#allocation3 + $0x28] sm:$0x1] %vm1979_vm4, %v2347_v21  ;;  %v3275_v7 = vpop.eup %3274 }
 0x5f9   :  { %vm2304_vm10 = vcmp.ge.f32.partialorder %v3275_v7, 0.0  ;;  %v2312_v54 = vmul.f32 0.2, %v3275_v7 }
 0x5fb   :  { %v2320_v61 = vsel %vm2304_vm10, %v3275_v7, %v2312_v54 }
 0x5fc   :  { %2340 = vst.msk [vmem:[#allocation3 + $0x32] sm:$0xff] %vm44_vm12, %v2320_v61 }
 0x5fe   :  { %v2439_v38 = vld [vmem:[#allocation3 + $0x29] sm:$0xff] }
 0x5ff   :  { %2459 = vrot.lane.b32.xlu2 %v2439_v38, %s3287_s30  ;;  %v2357_v38 = vld [vmem:[#allocation3 + $0x10] sm:$0xff]  ;;  %v2435_v4 = vld [vmem:[#allocation3 + $0x28] sm:$0xff] }
 0x603   :  { %v2451_v26 = vld [vmem:[#allocation3 + $0x2c] sm:$0xff] }
 0x604   :  { %v2447_v35 = vld [vmem:[#allocation3 + $0x2b] sm:$0xff]  ;;  %3116 = vmatmul.msk.f32.gmra.mxu3 %vm44_vm12, %v2451_v26 }
 0x605   :  { %v2444_v50 = vld [vmem:[#allocation3 + $0x32] sm:$0xff]  ;;  %2491 = vrot.lane.b32.xlu1 %v2447_v35, %s3286_s29 }
 0x606   :  { %2477 = vrot.lane.b32.xlu0 %v2444_v50, %s3285_s6  ;;  %v2440_v41 = vld [vmem:[#allocation3 + $0x31] sm:$0xff] }
 0x607   :  { %2461 = vrot.lane.b32.xlu2 %v2440_v41, %s3287_s30 }
 0x627   :  { %v2244_v9 = vpop.f32.mrf.mxu0  ;;  %v3196_v17 = vpop.permute.xlu2 %3195 }
 0x628   :  { %v2245_v40 = vadd.f32 %v4672_v47, %v2244_v9  ;;  %v3197_v48 = vunpack.i.l.bf16 %v3196_v17  ;;  %v3198_v13 = vunpack.i.h.bf16 %v3196_v17 }
 0x62a   :  { %v2286_v53 = vadd.f32 %v2285_v46, %v2245_v40  ;;  %v2423_v55 = vsel %vm44_vm12, %v2355_v12, %v3197_v48  ;;  %v2424_v42 = vsel %vm44_vm12, %v2356_v0, %v3198_v13 }
 0x62c   :  { %3276 = vtanh.f32 %v2286_v53  ;;  %v2436_v53 = vld [vmem:[#allocation3 + $0x30] sm:$0xff] }
 0x62f   :  { %v2247_v59 = vpop.f32.mrf.mxu0 }
 0x630   :  { %v2248_v62 = vadd.f32 %v4672_v47, %v2247_v59  ;;  %v2414_v1 = vpop.permute.xlu2 %2413 }
 0x632   :  { %v3277_v44 = vpop.eup %3276  ;;  %v2289_v39 = vadd.f32 %v2288_v58, %v2248_v62 }
 0x633   :  { %vm2305_vm11 = vcmp.ge.f32.partialorder %v3277_v44, 0.0  ;;  %v2313_v3 = vmul.f32 0.2, %v3277_v44 }
 0x634   :  { %3278 = vtanh.f32 %v2289_v39 }
 0x635   :  { %v2321_v56 = vsel %vm2305_vm11, %v3277_v44, %v2313_v3  ;;  %v3139_v3 = vld [vmem:[%s5006_s3 + $0x1d8] sm:$0xff] }
 0x636   :  { %2341 = vst.msk [vmem:[#allocation3 + $0x3a] sm:$0xff] %vm44_vm12, %v2321_v56  ;;  %v3138_v56 = vld [vmem:[%s5006_s3 + $0x1d0] sm:$0xff]  ;;  %2960 = vmatpush.msra.mxu1 %v3139_v3 }
 0x638   :  { %v2416_v50 = vpop.permute.xlu2 %2415  ;;  %2961 = vmatpush.msra.mxu1 %v3138_v56 }
 0x63a   :  { %v3279_v19 = vpop.eup %3278 }
 0x63b   :  { %vm2306_vm5 = vcmp.ge.f32.partialorder %v3279_v19, 0.0  ;;  %v2314_v49 = vmul.f32 0.2, %v3279_v19  ;;  %v2412_v37 = vpop.permute.xlu1 %2411 }
 0x63d   :  { %v2322_v47 = vsel %vm2306_vm5, %v3279_v19, %v2314_v49  ;;  %v2452_v57 = vld [vmem:[#allocation3 + $0x34] sm:$0xff] }
 0x63e   :  { %v3201_v11 = vpop.permute.xlu0 %3200  ;;  %v2448_v29 = vld [vmem:[#allocation3 + $0x33] sm:$0xff]  ;;  %2342 = vst.msk [vmem:[#allocation3 + $0x42] sm:$0xff] %vm44_vm12, %v2322_v47  ;;  %3117 = vmatmul.msk.f32.gmra.mxu3 %vm44_vm12, %v2452_v57 }
 0x63f   :  { %v3202_v8 = vunpack.i.l.bf16 %v3201_v11  ;;  %v2445_v30 = vld [vmem:[#allocation3 + $0x3a] sm:$0xff]  ;;  %2493 = vrot.lane.b32.xlu1 %v2448_v29, %s3286_s29  ;;  %v3203_v52 = vunpack.i.h.bf16 %v3201_v11 }
 0x640   :  { %v2441_v10 = vld [vmem:[#allocation3 + $0x39] sm:$0xff]  ;;  %2479 = vrot.lane.b32.xlu0 %v2445_v30, %s3285_s6  ;;  %v4833_v30 = vld [vmem:[%s5007_s4 + $0x1] ss:$0 sm:$0xff] }
 0x641   :  { %v2427_v33 = vsel %vm332_vm14, %v2423_v55, %v3202_v8  ;;  %2463 = vrot.lane.b32.xlu2 %v2441_v10, %s3287_s30  ;;  %v2428_v24 = vsel %vm332_vm14, %v2424_v42, %v3203_v52  ;;  %v2437_v48 = vld [vmem:[#allocation3 + $0x38] sm:$0xff]  ;;  %v3136_v8 = vld [vmem:[%s5006_s3 + $0x1c0] sm:$0xff] }
 0x642   :  { %v2431_v2 = vsel %vm342_vm2, %v2427_v33, %v2412_v37  ;;  %v2432_v36 = vsel %vm342_vm2, %v2428_v24, %v2414_v1  ;;  %v3137_v19 = vld [vmem:[%s5006_s3 + $0x1c8] sm:$0xff] }
 0x643   :  { %2578 = vmatmul.f32.vlgmr.msra.gmra.mxu2 %v2431_v2  ;;  %2962 = vmatpush.msra.mxu1 %v3137_v19 }
 0x645   :  { %v2453_v25 = vld [vmem:[#allocation3 + $0x3c] sm:$0xff]  ;;  %v2349_v18 = vld [vmem:[#allocation3 + $0x49] sm:$0x1]  ;;  %v2351_v34 = vld [vmem:[#allocation3 + $0x48] sm:$0x1]  ;;  %2963 = vmatpush.msra.mxu1 %v3136_v8 }
 0x646   :  { %v2449_v27 = vld [vmem:[#allocation3 + $0x3b] sm:$0xff]  ;;  %3118 = vmatmul.msk.f32.gmra.mxu3 %vm44_vm12, %v2453_v25  ;;  %2350 = vst.msk [vmem:[#allocation3 + $0x4a] sm:$0x1] %vm165_vm3, %v2349_v18  ;;  %v2353_v43 = vld [vmem:[#allocation3 + $0x48] sm:$0x1] }
 0x647   :  { %v2446_v32 = vld [vmem:[#allocation3 + $0x42] sm:$0xff]  ;;  %2495 = vrot.lane.b32.xlu1 %v2449_v27, %s3286_s29  ;;  %2352 = vst.msk [vmem:[#allocation3 + $0x4a] sm:$0x1] %vm1976_vm15, %v2351_v34 }
 0x648   :  { %v2442_v45 = vld [vmem:[#allocation3 + $0x41] sm:$0xff]  ;;  %2481 = vrot.lane.b32.xlu0 %v2446_v32, %s3285_s6  ;;  %2354 = vst.msk [vmem:[#allocation3 + $0x4b] sm:$0x1] %vm1979_vm4, %v2353_v43 }
 0x649   :  { %2465 = vrot.lane.b32.xlu2 %v2442_v45, %s3287_s30  ;;  %v2400_v26 = vpop.permute.xlu1 %2399  ;;  %v2438_v29 = vld [vmem:[#allocation3 + $0x40] sm:$0xff] }
 0x64b   :  { %2581 = vmatmul.f32.gmra.mxu2 %v2432_v36  ;;  %v2620_v0 = vpop.f32.mrf.mxu3 }
 0x64e   :  { %v2450_v21 = vld [vmem:[#allocation3 + $0x43] sm:$0xff] }
 0x64f   :  { %v2454_v7 = vld [vmem:[#allocation3 + $0x44] sm:$0xff]  ;;  %2497 = vrot.lane.b32.xlu1 %v2450_v21, %s3286_s29 }
 0x650   :  { %3119 = vmatmul.msk.f32.gmra.mxu3 %vm44_vm12, %v2454_v7 }
 0x653   :  { %v3206_v54 = vpop.permute.xlu0 %3205 }
 0x654   :  { %v3207_v61 = vunpack.i.l.bf16 %v3206_v54  ;;  %v3208_v31 = vunpack.i.h.bf16 %v3206_v54 }
 0x656   :  { %v2425_v35 = vsel %vm44_vm12, %v2357_v38, %v3207_v61  ;;  %v2426_v16 = vsel %vm44_vm12, %v2358_v23, %v3208_v31 }
 0x657   :  { %v2429_v41 = vsel %vm332_vm14, %v2425_v35, %v2400_v26 }
 0x658   :  { %v2433_v51 = vsel %vm342_vm2, %v2429_v41, %v2416_v50  ;;  %v2418_v5 = vpop.permute.xlu1 %2417  ;;  %v2623_v1 = vpop.f32.mrf.mxu3 }
 0x659   :  { %2584 = vmatmul.f32.gmra.mxu2 %v2433_v51  ;;  %v2460_v28 = vpop.permute.xlu2 %2459 }
 0x65a   :  { %v2503_v20 = vsel %vm44_vm12, %v2435_v4, %v2460_v28 }
 0x65b   :  { %v2402_v63 = vpop.permute.xlu0 %2401 }
 0x65c   :  { %v2430_v14 = vsel %vm332_vm14, %v2426_v16, %v2402_v63 }
 0x65d   :  { %v2434_v6 = vsel %vm342_vm2, %v2430_v14, %v2418_v5 }
 0x660   :  { %v2626_v26 = vpop.f32.mrf.mxu3 }
 0x661   :  { %2587 = vmatmul.f32.gmra.mxu2 %v2434_v6  ;;  %v2462_v9 = vpop.permute.xlu2 %2461 }
 0x662   :  { %v2504_v59 = vsel %vm44_vm12, %v2436_v53, %v2462_v9 }
 0x667   :  { %v2476_v60 = vpop.permute.xlu0 %2475 }
 0x668   :  { %v2507_v15 = vsel %vm332_vm14, %v2503_v20, %v2476_v60 }
 0x66a   :  { %v2629_v6 = vpop.f32.mrf.mxu3 }
 0x677   :  { %v2492_v22 = vpop.permute.xlu1 %2491 }
 0x678   :  { %v2511_v46 = vsel %vm342_vm2, %v2507_v15, %v2492_v22  ;;  %v2478_v40 = vpop.permute.xlu0 %2477 }
 0x679   :  { %2590 = vmatmul.f32.gmra.mxu2 %v2511_v46  ;;  %v2508_v62 = vsel %vm332_vm14, %v2504_v59, %v2478_v40 }
 0x69b   :  { %v2464_v39 = vpop.permute.xlu2 %2463 }
 0x69c   :  { %v2505_v49 = vsel %vm44_vm12, %v2437_v48, %v2464_v39 }
 0x6a3   :  { %v2466_v47 = vpop.permute.xlu2 %2465 }
 0x6a4   :  { %v2506_v37 = vsel %vm44_vm12, %v2438_v29, %v2466_v47 }
 0x6b1   :  { %v2494_v58 = vpop.permute.xlu1 %2493 }
 0x6b2   :  { %v2512_v44 = vsel %vm342_vm2, %v2508_v62, %v2494_v58  ;;  %v2480_v17 = vpop.permute.xlu0 %2479 }
 0x6b3   :  { %2593 = vmatmul.f32.gmra.mxu2 %v2512_v44  ;;  %v2509_v11 = vsel %vm332_vm14, %v2505_v49, %v2480_v17 }
 0x6b9   :  { %v2496_v12 = vpop.permute.xlu1 %2495 }
 0x6ba   :  { %v2513_v55 = vsel %vm342_vm2, %v2509_v11, %v2496_v12  ;;  %v2482_v57 = vpop.permute.xlu0 %2481  ;;  %v2632_v11 = vpop.f32.mrf.mxu3 }
 0x6bb   :  { %2596 = vmatmul.f32.gmra.mxu2 %v2513_v55  ;;  %v2510_v10 = vsel %vm332_vm14, %v2506_v37, %v2482_v57 }
 0x6c1   :  { %v2498_v33 = vpop.permute.xlu1 %2497 }
 0x6c2   :  { %v2514_v2 = vsel %vm342_vm2, %v2510_v10, %v2498_v33  ;;  %v3135_v33 = vld [vmem:[%s5006_s3 + $0x1b8] sm:$0xff] }
 0x6c3   :  { %2599 = vmatmul.f32.gmra.mxu2 %v2514_v2  ;;  %2907 = vmatpush.msra.mxu0 %v3135_v33  ;;  %v3133_v2 = vld [vmem:[%s5006_s3 + $0x1a8] sm:$0xff] }
 0x6c6   :  { %v2579_v13 = vpop.f32.mrf.mxu2 }
 0x6c7   :  { %v2580_v52 = vadd.f32 %v4833_v30, %v2579_v13  ;;  %v3134_v13 = vld [vmem:[%s5006_s3 + $0x1b0] sm:$0xff] }
 0x6c8   :  { %2908 = vmatpush.msra.mxu0 %v3134_v13 }
 0x6c9   :  { %v2621_v42 = vadd.f32 %v2620_v0, %v2580_v52  ;;  %v3132_v52 = vld [vmem:[%s5006_s3 + $0x1a0] sm:$0xff]  ;;  %v3131_v0 = vld [vmem:[%s5006_s3 + $0x198] sm:$0xff] }
 0x6ca   :  { %2909 = vmatpush.msra.mxu0 %v3133_v2 }
 0x6cb   :  { %vm2644_vm6 = vcmp.ge.f32.partialorder %v2621_v42, 0.0  ;;  %v2652_v24 = vmul.f32 0.2, %v2621_v42 }
 0x6cc   :  { %2910 = vmatpush.msra.mxu0 %v3132_v52 }
 0x6cd   :  { %v2660_v25 = vsel %vm2644_vm6, %v2621_v42, %v2652_v24  ;;  %v3130_v42 = vld [vmem:[%s5006_s3 + $0x190] sm:$0xff]  ;;  %v3129_v24 = vld [vmem:[%s5006_s3 + $0x188] sm:$0xff] }
 0x6ce   :  { %2668 = vst.msk [vmem:[#allocation3 + $0x2] sm:$0xff] %vm44_vm12, %v2660_v25  ;;  %v2582_v27 = vpop.f32.mrf.mxu2  ;;  %2911 = vmatpush.msra.mxu0 %v3131_v0  ;;  %v2635_v25 = vpop.f32.mrf.mxu3 }
 0x6cf   :  { %v2583_v32 = vadd.f32 %v4833_v30, %v2582_v27 }
 0x6d0   :  { %2912 = vmatpush.msra.mxu0 %v3130_v42 }
 0x6d1   :  { %v2624_v45 = vadd.f32 %v2623_v1, %v2583_v32  ;;  %v3128_v32 = vld [vmem:[%s5006_s3 + $0x180] sm:$0xff] }
 0x6d2   :  { %2913 = vmatpush.msra.mxu0 %v3129_v24 }
 0x6d3   :  { %vm2645_vm13 = vcmp.ge.f32.partialorder %v2624_v45, 0.0  ;;  %v2653_v18 = vmul.f32 0.2, %v2624_v45 }
 0x6d4   :  { %2914 = vmatpush.msra.mxu0 %v3128_v32 }
 0x6d5   :  { %v2661_v34 = vsel %vm2645_vm13, %v2624_v45, %v2653_v18  ;;  %v2672_v36 = vld [vmem:[#allocation3 + $0x3] sm:$0x1]  ;;  %v2674_v43 = vld [vmem:[#allocation3 + $0x2] sm:$0x1]  ;;  %v3127_v45 = vld [vmem:[%s5006_s3 + $0x178] sm:$0xff] }
 0x6d6   :  { %2669 = vst.msk [vmem:[#allocation3 + $0xa] sm:$0xff] %vm44_vm12, %v2661_v34  ;;  %v2676_v21 = vld [vmem:[#allocation3 + $0x3] sm:$0x1]  ;;  %2915 = vmatpush.msra.mxu0 %v3127_v45 }
 0x6d7   :  { %2673 = vst.msk [vmem:[#allocation3 + $0x1] sm:$0x1] %vm165_vm3, %v2672_v36  ;;  %v2708_v7 = vld [vmem:[#allocation3 + $0x2] sm:$0xff] }
 0x6d8   :  { %2675 = vst.msk [vmem:[#allocation3 + $0x1] sm:$0x1] %vm1976_vm15, %v2674_v43  ;;  %v3126_v34 = vld [vmem:[%s5006_s3 + $0x170] sm:$0xff]  ;;  %v3125_v43 = vld [vmem:[%s5006_s3 + $0x168] sm:$0xff] }
 0x6d9   :  { %2677 = vst.msk [vmem:[#allocation3] sm:$0x1] %vm1979_vm4, %v2676_v21  ;;  %2916 = vmatpush.msra.mxu0 %v3126_v34 }
 0x6db   :  { %2917 = vmatpush.msra.mxu0 %v3125_v43 }
 0x6dc   :  { %v2585_v35 = vpop.f32.mrf.mxu2 }
 0x6dd   :  { %v2716_v54 = vld [vmem:[#allocation3 + $0x4] sm:$0xff]  ;;  %v2586_v41 = vadd.f32 %v4833_v30, %v2585_v35 }
 0x6de   :  { %v2709_v61 = vld [vmem:[#allocation3 + $0xa] sm:$0xff]  ;;  %3140 = vmatmul.msk.f32.vlgmr.msra.gmra.mxu1 %vm44_vm12, %v2716_v54 }
 0x6df   :  { %v2705_v38 = vld [vmem:[#allocation3 + $0x9] sm:$0xff]  ;;  %v3214_v50 = vpack.i.bf16 %v2709_v61, %v2708_v7  ;;  %v2704_v31 = vld [vmem:[#allocation3 + $0x1] sm:$0xff]  ;;  %v2627_v23 = vadd.f32 %v2626_v26, %v2586_v41 }
 0x6e0   :  { %v3209_v51 = vpack.i.bf16 %v2705_v38, %v2704_v31  ;;  %v2712_v15 = vld [vmem:[#allocation3 + $0x3] sm:$0xff]  ;;  %v3124_v54 = vld [vmem:[%s5006_s3 + $0x160] sm:$0xff]  ;;  %v2638_v38 = vpop.f32.mrf.mxu3 }
 0x6e1   :  { %3215 = vrot.lane.b32.xlu0 %v3214_v50, %s3285_s6  ;;  %vm2646_vm0 = vcmp.ge.f32.partialorder %v2627_v23, 0.0  ;;  %v2654_v63 = vmul.f32 0.2, %v2627_v23  ;;  %v3123_v26 = vld [vmem:[%s5006_s3 + $0x158] sm:$0xff]  ;;  %2918 = vmatpush.msra.mxu0 %v3124_v54  ;;  %v3122_v50 = vld [vmem:[%s5006_s3 + $0x150] sm:$0xff] }
 0x6e2   :  { %3210 = vrot.lane.b32.xlu2 %v3209_v51, %s3287_s30  ;;  %v3121_v51 = vld [vmem:[%s5006_s3 + $0x148] sm:$0xff]  ;;  %v2701_v52 = vld [vmem:[#allocation3 + $0x8] sm:$0xff] }
 0x6e3   :  { %v2662_v16 = vsel %vm2646_vm0, %v2627_v23, %v2654_v63  ;;  %2919 = vmatpush.msra.mxu0 %v3123_v26 }
 0x6e4   :  { %2670 = vst.msk [vmem:[#allocation3 + $0x12] sm:$0xff] %vm44_vm12, %v2662_v16  ;;  %v2588_v14 = vpop.f32.mrf.mxu2 }
 0x6e5   :  { %v2589_v5 = vadd.f32 %v4833_v30, %v2588_v14  ;;  %2920 = vmatpush.msra.mxu0 %v3122_v50 }
 0x6e7   :  { %v2630_v28 = vadd.f32 %v2629_v6, %v2589_v5  ;;  %v3120_v6 = vld [vmem:[%s5006_s3 + $0x140] sm:$0xff]  ;;  %2921 = vmatpush.msra.mxu0 %v3121_v51 }
 0x6e9   :  { %vm2647_vm1 = vcmp.ge.f32.partialorder %v2630_v28, 0.0  ;;  %v2655_v60 = vmul.f32 0.2, %v2630_v28  ;;  %2922 = vmatpush.msra.mxu0 %v3120_v6 }
 0x6eb   :  { %v2663_v4 = vsel %vm2647_vm1, %v2630_v28, %v2655_v60  ;;  %v2717_v20 = vld [vmem:[#allocation3 + $0xc] sm:$0xff] }
 0x6ec   :  { %v2713_v22 = vld [vmem:[#allocation3 + $0xb] sm:$0xff]  ;;  %2671 = vst.msk [vmem:[#allocation3 + $0x1a] sm:$0xff] %vm44_vm12, %v2663_v4  ;;  %3141 = vmatmul.msk.f32.gmra.mxu1 %vm44_vm12, %v2717_v20  ;;  %v2641_v4 = vpop.f32.mrf.mxu3 }
 0x6ed   :  { %v3219_v46 = vpack.i.bf16 %v2713_v22, %v2712_v15  ;;  %v2710_v9 = vld [vmem:[#allocation3 + $0x12] sm:$0xff] }
 0x6ee   :  { %v2706_v59 = vld [vmem:[#allocation3 + $0x11] sm:$0xff] }
 0x6ef   :  { %3220 = vrot.lane.b32.xlu1 %v3219_v46, %s3286_s29 }
 0x6f3   :  { %v2718_v40 = vld [vmem:[#allocation3 + $0x14] sm:$0xff]  ;;  %v2678_v44 = vld [vmem:[#allocation3 + $0x21] sm:$0x1]  ;;  %v2680_v39 = vld [vmem:[#allocation3 + $0x20] sm:$0x1] }
 0x6f4   :  { %v2711_v53 = vld [vmem:[#allocation3 + $0x1a] sm:$0xff]  ;;  %3142 = vmatmul.msk.f32.gmra.mxu1 %vm44_vm12, %v2718_v40  ;;  %2679 = vst.msk [vmem:[#allocation3 + $0x22] sm:$0x1] %vm165_vm3, %v2678_v44 }
 0x6f5   :  { %v3229_v62 = vpack.i.bf16 %v2711_v53, %v2710_v9  ;;  %v2707_v58 = vld [vmem:[#allocation3 + $0x19] sm:$0xff]  ;;  %2681 = vst.msk [vmem:[#allocation3 + $0x22] sm:$0x1] %vm1976_vm15, %v2680_v39 }
 0x6f6   :  { %v2714_v3 = vld [vmem:[#allocation3 + $0x13] sm:$0xff]  ;;  %v3224_v56 = vpack.i.bf16 %v2707_v58, %v2706_v59  ;;  %v2682_v17 = vld [vmem:[#allocation3 + $0x20] sm:$0x1] }
 0x6f7   :  { %2760 = vrot.lane.b32.xlu1 %v2714_v3, %s3286_s29  ;;  %3230 = vrot.lane.b32.xlu0 %v3229_v62, %s3285_s6  ;;  %2683 = vst.msk [vmem:[#allocation3 + $0x23] sm:$0x1] %vm1979_vm4, %v2682_v17 }
 0x6f8   :  { %3225 = vrot.lane.b32.xlu2 %v3224_v56, %s3287_s30 }
 0x6fc   :  { %v2591_v48 = vpop.f32.mrf.mxu2  ;;  %v2715_v49 = vld [vmem:[#allocation3 + $0x1b] sm:$0xff] }
 0x6fd   :  { %v2592_v19 = vadd.f32 %v4833_v30, %v2591_v48 }
 0x6fe   :  { %v2719_v12 = vld [vmem:[#allocation3 + $0x1c] sm:$0xff] }
 0x6ff   :  { %v2633_v8 = vadd.f32 %v2632_v11, %v2592_v19  ;;  %3143 = vmatmul.msk.f32.gmra.mxu1 %vm44_vm12, %v2719_v12 }
 0x700   :  { %2762 = vrot.lane.b32.xlu2 %v2715_v49, %s3286_s29  ;;  %v2700_v49 = vld [vmem:[#allocation3] sm:$0xff] }
 0x701   :  { %vm2648_vm7 = vcmp.ge.f32.partialorder %v2633_v8, 0.0  ;;  %v2656_v55 = vmul.f32 0.2, %v2633_v8 }
 0x703   :  { %v2664_v47 = vsel %vm2648_vm7, %v2633_v8, %v2656_v55 }
 0x704   :  { %2684 = vst.msk [vmem:[#allocation3 + $0x2a] sm:$0xff] %vm44_vm12, %v2664_v47 }
 0x70b   :  { %v2788_v57 = vld [vmem:[#allocation3 + $0x2a] sm:$0xff] }
 0x70c   :  { %v2688_v29 = vld [vmem:[#allocation3 + $0x2b] sm:$0x1]  ;;  %v2690_v37 = vld [vmem:[#allocation3 + $0x2a] sm:$0x1]  ;;  %2820 = vrot.lane.b32.xlu1 %v2788_v57, %s3285_s6 }
 0x70d   :  { %2689 = vst.msk [vmem:[#allocation3 + $0x29] sm:$0x1] %vm165_vm3, %v2688_v29  ;;  %v2692_v10 = vld [vmem:[#allocation3 + $0x2b] sm:$0x1] }
 0x70e   :  { %2691 = vst.msk [vmem:[#allocation3 + $0x29] sm:$0x1] %vm1976_vm15, %v2690_v37 }
 0x70f   :  { %2693 = vst.msk [vmem:[#allocation3 + $0x28] sm:$0x1] %vm1979_vm4, %v2692_v10 }
 0x715   :  { %v2784_v31 = vld [vmem:[#allocation3 + $0x29] sm:$0xff] }
 0x716   :  { %v2780_v51 = vld [vmem:[#allocation3 + $0x28] sm:$0xff] }
 0x736   :  { %v2594_v27 = vpop.f32.mrf.mxu2 }
 0x737   :  { %v2595_v1 = vadd.f32 %v4833_v30, %v2594_v27 }
 0x739   :  { %v2636_v18 = vadd.f32 %v2635_v25, %v2595_v1  ;;  %v2702_v1 = vld [vmem:[#allocation3 + $0x10] sm:$0xff] }
 0x73b   :  { %vm2649_vm8 = vcmp.ge.f32.partialorder %v2636_v18, 0.0  ;;  %v2657_v36 = vmul.f32 0.2, %v2636_v18 }
 0x73c   :  { %v3211_v56 = vpop.permute.xlu2 %3210 }
 0x73d   :  { %v2665_v21 = vsel %vm2649_vm8, %v2636_v18, %v2657_v36  ;;  %v3212_v48 = vunpack.i.l.bf16 %v3211_v56  ;;  %v3213_v10 = vunpack.i.h.bf16 %v3211_v56 }
 0x73e   :  { %2685 = vst.msk [vmem:[#allocation3 + $0x32] sm:$0xff] %vm44_vm12, %v2665_v21  ;;  %v2597_v7 = vpop.f32.mrf.mxu2 }
 0x73f   :  { %v2598_v61 = vadd.f32 %v4833_v30, %v2597_v7  ;;  %v2768_v8 = vsel %vm44_vm12, %v2700_v49, %v3212_v48  ;;  %v2769_v42 = vsel %vm44_vm12, %v2701_v52, %v3213_v10  ;;  %v2703_v7 = vld [vmem:[#allocation3 + $0x18] sm:$0xff] }
 0x741   :  { %v2639_v35 = vadd.f32 %v2638_v38, %v2598_v61 }
 0x743   :  { %vm2650_vm9 = vcmp.ge.f32.partialorder %v2639_v35, 0.0  ;;  %v2658_v41 = vmul.f32 0.2, %v2639_v35 }
 0x745   :  { %v2666_v23 = vsel %vm2650_vm9, %v2639_v35, %v2658_v41  ;;  %v2796_v63 = vld [vmem:[#allocation3 + $0x2c] sm:$0xff] }
 0x746   :  { %v2792_v16 = vld [vmem:[#allocation3 + $0x2b] sm:$0xff]  ;;  %2686 = vst.msk [vmem:[#allocation3 + $0x3a] sm:$0xff] %vm44_vm12, %v2666_v23  ;;  %3144 = vmatmul.msk.f32.gmra.mxu1 %vm44_vm12, %v2796_v63  ;;  %v2600_v28 = vpop.f32.mrf.mxu2 }
 0x747   :  { %v2785_v14 = vld [vmem:[#allocation3 + $0x31] sm:$0xff]  ;;  %2836 = vrot.lane.b32.xlu2 %v2792_v16, %s3286_s29  ;;  %v2601_v60 = vadd.f32 %v4833_v30, %v2600_v28 }
 0x748   :  { %v3234_v5 = vpack.i.bf16 %v2785_v14, %v2784_v31  ;;  %v2789_v53 = vld [vmem:[#allocation3 + $0x32] sm:$0xff] }
 0x749   :  { %v2642_v20 = vadd.f32 %v2641_v4, %v2601_v60  ;;  %v2781_v6 = vld [vmem:[#allocation3 + $0x30] sm:$0xff] }
 0x74a   :  { %3235 = vrot.lane.b32.xlu0 %v3234_v5, %s3287_s30 }
 0x74b   :  { %vm2651_vm10 = vcmp.ge.f32.partialorder %v2642_v20, 0.0  ;;  %v2659_v15 = vmul.f32 0.2, %v2642_v20 }
 0x74d   :  { %v2797_v22 = vld [vmem:[#allocation3 + $0x34] sm:$0xff]  ;;  %v2667_v40 = vsel %vm2651_vm10, %v2642_v20, %v2659_v15 }
 0x74e   :  { %v2793_v46 = vld [vmem:[#allocation3 + $0x33] sm:$0xff]  ;;  %3145 = vmatmul.msk.f32.gmra.mxu1 %vm44_vm12, %v2797_v22  ;;  %2687 = vst.msk [vmem:[#allocation3 + $0x42] sm:$0xff] %vm44_vm12, %v2667_v40 }
 0x74f   :  { %v2786_v9 = vld [vmem:[#allocation3 + $0x39] sm:$0xff]  ;;  %2838 = vrot.lane.b32.xlu1 %v2793_v46, %s3286_s29 }
 0x750   :  { %2808 = vrot.lane.b32.xlu2 %v2786_v9, %s3287_s30  ;;  %v2790_v58 = vld [vmem:[#allocation3 + $0x3a] sm:$0xff] }
 0x751   :  { %v2782_v22 = vld [vmem:[#allocation3 + $0x38] sm:$0xff] }
 0x752   :  { %2822 = vrot.lane.b32.xlu0 %v2789_v53, %s3285_s6  ;;  %v3226_v2 = vpop.permute.xlu2 %3225 }
 0x753   :  { %v3216_v17 = vpop.permute.xlu0 %3215  ;;  %v3227_v25 = vunpack.i.l.bf16 %v3226_v2  ;;  %v3228_v36 = vunpack.i.h.bf16 %v3226_v2 }
 0x754   :  { %v3217_v19 = vunpack.i.l.bf16 %v3216_v17  ;;  %v3218_v33 = vunpack.i.h.bf16 %v3216_v17  ;;  %v3247_v17 = vld [vmem:[%s5007_s4 + $0x2] ss:$0 sm:$0xff] }
 0x755   :  { %v2798_v30 = vld [vmem:[#allocation3 + $0x3c] sm:$0xff]  ;;  %v2694_v44 = vld [vmem:[#allocation3 + $0x49] sm:$0x1]  ;;  %v2696_v39 = vld [vmem:[#allocation3 + $0x48] sm:$0x1]  ;;  %v2770_v45 = vsel %vm44_vm12, %v2702_v1, %v3227_v25  ;;  %v2771_v54 = vsel %vm44_vm12, %v2703_v7, %v3228_v36 }
 0x756   :  { %v2794_v59 = vld [vmem:[#allocation3 + $0x3b] sm:$0xff]  ;;  %3146 = vmatmul.msk.f32.gmra.mxu1 %vm44_vm12, %v2798_v30  ;;  %2695 = vst.msk [vmem:[#allocation3 + $0x4a] sm:$0x1] %vm165_vm3, %v2694_v44  ;;  %v2698_v3 = vld [vmem:[#allocation3 + $0x48] sm:$0x1]  ;;  %v2772_v29 = vsel %vm332_vm14, %v2768_v8, %v3217_v19  ;;  %v2773_v24 = vsel %vm332_vm14, %v2769_v42, %v3218_v33  ;;  %vm2989_vm3 = vcmask 64512  }
 0x757   :  { %v2787_v62 = vld [vmem:[#allocation3 + $0x41] sm:$0xff]  ;;  %2840 = vrot.lane.b32.xlu1 %v2794_v59, %s3286_s29  ;;  %2697 = vst.msk [vmem:[#allocation3 + $0x4a] sm:$0x1] %vm1976_vm15, %v2696_v39 }
 0x758   :  { %2810 = vrot.lane.b32.xlu2 %v2787_v62, %s3287_s30  ;;  %2699 = vst.msk [vmem:[#allocation3 + $0x4b] sm:$0x1] %vm1979_vm4, %v2698_v3  ;;  %v2791_v11 = vld [vmem:[#allocation3 + $0x42] sm:$0xff] }
 0x759   :  { %v2783_v62 = vld [vmem:[#allocation3 + $0x40] sm:$0xff] }
 0x75a   :  { %2824 = vrot.lane.b32.xlu0 %v2790_v58, %s3285_s6  ;;  %v2763_v38 = vpop.permute.xlu2 %2762 }
 0x75b   :  { %v2965_v48 = vpop.f32.mrf.mxu1 }
 0x75e   :  { %v2795_v55 = vld [vmem:[#allocation3 + $0x43] sm:$0xff] }
 0x75f   :  { %v2799_v57 = vld [vmem:[#allocation3 + $0x44] sm:$0xff]  ;;  %2842 = vrot.lane.b32.xlu1 %v2795_v55, %s3286_s29 }
 0x760   :  { %3147 = vmatmul.msk.f32.gmra.mxu1 %vm44_vm12, %v2799_v57 }
 0x761   :  { %v3221_v12 = vpop.permute.xlu1 %3220 }
 0x762   :  { %2826 = vrot.lane.b32.xlu0 %v2791_v11, %s3285_s6  ;;  %v3222_v47 = vunpack.i.l.bf16 %v3221_v12  ;;  %v3223_v13 = vunpack.i.h.bf16 %v3221_v12 }
 0x764   :  { %v2776_v37 = vsel %vm342_vm2, %v2772_v29, %v3222_v47  ;;  %v2777_v27 = vsel %vm342_vm2, %v2773_v24, %v3223_v13 }
 0x765   :  { %2923 = vmatmul.f32.vlgmr.msra.gmra.mxu0 %v2776_v37 }
 0x769   :  { %v3231_v0 = vpop.permute.xlu0 %3230  ;;  %v2761_v34 = vpop.permute.xlu1 %2760 }
 0x76a   :  { %v3232_v32 = vunpack.i.l.bf16 %v3231_v0  ;;  %v3233_v21 = vunpack.i.h.bf16 %v3231_v0  ;;  %v2968_v12 = vpop.f32.mrf.mxu1 }
 0x76c   :  { %v2774_v18 = vsel %vm332_vm14, %v2770_v45, %v3232_v32  ;;  %v2775_v61 = vsel %vm332_vm14, %v2771_v54, %v3233_v21 }
 0x76d   :  { %2926 = vmatmul.f32.gmra.mxu0 %v2777_v27  ;;  %v2778_v43 = vsel %vm342_vm2, %v2774_v18, %v2761_v34  ;;  %v2779_v26 = vsel %vm342_vm2, %v2775_v61, %v2763_v38 }
 0x772   :  { %v2971_v57 = vpop.f32.mrf.mxu1 }
 0x775   :  { %2929 = vmatmul.f32.gmra.mxu0 %v2778_v43 }
 0x77c   :  { %v2974_v2 = vpop.f32.mrf.mxu1 }
 0x77d   :  { %2932 = vmatmul.f32.gmra.mxu0 %v2779_v26 }
 0x77e   :  { %v2821_v35 = vpop.permute.xlu1 %2820 }
 0x7a1   :  { %v2837_v31 = vpop.permute.xlu2 %2836 }
 0x7aa   :  { %v2809_v20 = vpop.permute.xlu2 %2808 }
 0x7ab   :  { %v2850_v9 = vsel %vm44_vm12, %v2782_v22, %v2809_v20 }
 0x7b2   :  { %v2811_v59 = vpop.permute.xlu2 %2810 }
 0x7b3   :  { %v2851_v58 = vsel %vm44_vm12, %v2783_v62, %v2811_v59 }
 0x7bc   :  { %v3236_v50 = vpop.permute.xlu0 %3235 }
 0x7bd   :  { %v3237_v41 = vunpack.i.l.bf16 %v3236_v50  ;;  %v3238_v16 = vunpack.i.h.bf16 %v3236_v50 }
 0x7bf   :  { %v2848_v23 = vsel %vm44_vm12, %v2780_v51, %v3237_v41  ;;  %v2849_v60 = vsel %vm44_vm12, %v2781_v6, %v3238_v16 }
 0x7c0   :  { %v2852_v63 = vsel %vm332_vm14, %v2848_v23, %v2821_v35 }
 0x7c1   :  { %v2856_v14 = vsel %vm342_vm2, %v2852_v63, %v2837_v31  ;;  %v2839_v5 = vpop.permute.xlu1 %2838 }
 0x7c2   :  { %2935 = vmatmul.f32.gmra.mxu0 %v2856_v14 }
 0x7c3   :  { %v2977_v0 = vpop.f32.mrf.mxu1 }
 0x7c4   :  { %v2823_v28 = vpop.permute.xlu0 %2822 }
 0x7c5   :  { %v2853_v4 = vsel %vm332_vm14, %v2849_v60, %v2823_v28 }
 0x7c6   :  { %v2857_v15 = vsel %vm342_vm2, %v2853_v4, %v2839_v5 }
 0x7c9   :  { %v2841_v46 = vpop.permute.xlu1 %2840 }
 0x7ca   :  { %2938 = vmatmul.f32.gmra.mxu0 %v2857_v15 }
 0x7cb   :  { %v2980_v27 = vpop.f32.mrf.mxu1 }
 0x7cc   :  { %v2825_v40 = vpop.permute.xlu0 %2824 }
 0x7cd   :  { %v2854_v53 = vsel %vm332_vm14, %v2850_v9, %v2825_v40 }
 0x7ce   :  { %v2858_v30 = vsel %vm342_vm2, %v2854_v53, %v2841_v46 }
 0x7d1   :  { %v2843_v3 = vpop.permute.xlu1 %2842 }
 0x7d2   :  { %2941 = vmatmul.f32.gmra.mxu0 %v2858_v30 }
 0x7d3   :  { %v2983_v18 = vpop.f32.mrf.mxu1 }
 0x7d4   :  { %v2827_v44 = vpop.permute.xlu0 %2826 }
 0x7d5   :  { %v2855_v39 = vsel %vm332_vm14, %v2851_v58, %v2827_v44 }
 0x7d6   :  { %v2859_v56 = vsel %vm342_vm2, %v2855_v39, %v2843_v3 }
 0x7da   :  { %2944 = vmatmul.f32.gmra.mxu0 %v2859_v56 }
 0x7dd   :  { %v2986_v54 = vpop.f32.mrf.mxu1 }
 0x7e2   :  { %v2924_v19 = vpop.f32.mrf.mxu0 }
 0x7e3   :  { %v2925_v49 = vadd.f32 %v3247_v17, %v2924_v19 }
 0x7e5   :  { %v2966_v11 = vadd.f32 %v2965_v48, %v2925_v49 }
 0x7e7   :  { %2990 = vst.msk [vmem:[%s5008_s9] sm:$0xff] %vm2989_vm3, %v2966_v11 }
 0x7ea   :  { %v2927_v8 = vpop.f32.mrf.mxu0 }
 0x7eb   :  { %v2928_v55 = vadd.f32 %v3247_v17, %v2927_v8 }
 0x7ed   :  { %v2969_v47 = vadd.f32 %v2968_v12, %v2928_v55 }
 0x7ef   :  { %2991 = vst.msk [vmem:[%s5008_s9 + $0x8] sm:$0xff] %vm2989_vm3, %v2969_v47 }
 0x7f2   :  { %v2930_v29 = vpop.f32.mrf.mxu0 }
 0x7f3   :  { %v2931_v37 = vadd.f32 %v3247_v17, %v2930_v29 }
 0x7f5   :  { %v2972_v10 = vadd.f32 %v2971_v57, %v2931_v37 }
 0x7f7   :  { %2992 = vst.msk [vmem:[%s5008_s9 + $0x10] sm:$0xff] %vm2989_vm3, %v2972_v10 }
 0x7fa   :  { %v2933_v33 = vpop.f32.mrf.mxu0 }
 0x7fb   :  { %v2934_v13 = vadd.f32 %v3247_v17, %v2933_v33 }
 0x7fd   :  { %v2975_v52 = vadd.f32 %v2974_v2, %v2934_v13 }
 0x7ff   :  { %2993 = vst.msk [vmem:[%s5008_s9 + $0x18] sm:$0xff] %vm2989_vm3, %v2975_v52 }
 0x83f   :  { %v2936_v42 = vpop.f32.mrf.mxu0 }
 0x840   :  { %v2937_v24 = vadd.f32 %v3247_v17, %v2936_v42 }
 0x842   :  { %v2978_v25 = vadd.f32 %v2977_v0, %v2937_v24 }
 0x844   :  { %2994 = vst.msk [vmem:[%s5008_s9 + $0x20] sm:$0xff] %vm2989_vm3, %v2978_v25 }
 0x847   :  { %v2939_v32 = vpop.f32.mrf.mxu0 }
 0x848   :  { %v2940_v1 = vadd.f32 %v3247_v17, %v2939_v32 }
 0x84a   :  { %v2981_v45 = vadd.f32 %v2980_v27, %v2940_v1 }
 0x84c   :  { %2995 = vst.msk [vmem:[%s5008_s9 + $0x28] sm:$0xff] %vm2989_vm3, %v2981_v45 }
 0x84f   :  { %v2942_v34 = vpop.f32.mrf.mxu0 }
 0x850   :  { %v2943_v36 = vadd.f32 %v3247_v17, %v2942_v34 }
 0x852   :  { %v2984_v43 = vadd.f32 %v2983_v18, %v2943_v36 }
 0x854   :  { %2996 = vst.msk [vmem:[%s5008_s9 + $0x30] sm:$0xff] %vm2989_vm3, %v2984_v43 }
 0x857   :  { %v2945_v21 = vpop.f32.mrf.mxu0 }
 0x858   :  { %v2946_v7 = vadd.f32 %v3247_v17, %v2945_v21 }
 0x85a   :  { %v2987_v61 = vadd.f32 %v2986_v54, %v2946_v7 }
 0x85c   :  { %2997 = vst.msk [vmem:[%s5008_s9 + $0x38] sm:$0xff] %vm2989_vm3, %v2987_v61 }

</bundles_post_ra>
